<compile_context>
chip_gen: v7x
topology: tpu7x:2x2x1
jax: 0.10.0
libtpu: 0.0.40
codegen_flags: <defaults>
</compile_context>

<pallas_src>
import functools

import jax
import jax.numpy as jnp
from jax.experimental import pallas as pl
from jax.experimental.pallas import tpu as pltpu

VMEM = pl.BlockSpec(memory_space=pltpu.MemorySpace.VMEM)

STEM_C = 32
FEAT_C = 1408
HIDDEN = 512
TILE_R_TARGET = 1024          # row-tile target (safe within scoped VMEM on v5e/v6e/v7x)


def _round_up(x, m):
    return ((x + m - 1) // m) * m


# ---------------------------------------------------------------------------
# Kernel 1: fused backbone
#   (im2col patches) @ W_stem' + shift1 -> SiLU -> @ W_head' + shift2 -> SiLU
#   -> masked partial sum -> global-average-pool accumulator in output block.
# ---------------------------------------------------------------------------
def _backbone_kernel(p_ref, w1_ref, s1_ref, w2_ref, s2_ref, o_ref, *,
                     hw, tile_r, inv_hw, masked):
    r = pl.program_id(1)

    @pl.when(r == 0)
    def _():
        o_ref[...] = jnp.zeros_like(o_ref)

    x = p_ref[0]                                             # (tile_r, 9*cin) bf16
    # conv_stem + folded BN1 + SiLU (f32 accumulation)
    y1 = jnp.dot(x, w1_ref[...], preferred_element_type=jnp.float32) + s1_ref[...]
    a1 = y1 * jax.nn.sigmoid(y1)
    # conv_head (1x1) + folded BN2 + SiLU
    y2 = jnp.dot(a1.astype(jnp.bfloat16), w2_ref[...],
                 preferred_element_type=jnp.float32) + s2_ref[...]
    a2 = y2 * jax.nn.sigmoid(y2)                             # (tile_r, FEAT_C) f32

    if masked:
        row = r * tile_r + jax.lax.broadcasted_iota(jnp.int32, (tile_r, 1), 0)
        a2 = jnp.where(row < hw, a2, 0.0)

    # global average pool: accumulate per-tile partial means into the resident block
    o_ref[...] += (a2.sum(axis=0) * inv_hw)[None, None, :]


def backbone_forward(x_nchw, fp):
    # layout: NCHW -> NHWC once; conv_stem done as im2col + in-kernel matmul.
    x = jnp.transpose(x_nchw, (0, 2, 3, 1)).astype(jnp.float32)   # (N,H,W,3)
    n, h, w, cin = x.shape
    ho, wo = h // 2, w // 2
    hw = ho * wo
    k_in = 9 * cin

    # conv_stem 3x3 stride-2 pad-1 -> patches (N, Ho*Wo, 9*cin)
    # TODO(synk): im2col is materialized in HBM by XLA; in-kernel patch extraction
    # (BlockSpec over the padded NHWC input) would remove this extra round-trip.
    xp = jnp.pad(x, ((0, 0), (1, 1), (1, 1), (0, 0)))
    patches = []
    for di in range(3):
        for dj in range(3):
            patches.append(xp[:, di:di + 2 * ho:2, dj:dj + 2 * wo:2, :])
    patches = jnp.concatenate(patches, axis=-1).reshape(n, hw, k_in)

    # row tiling over the spatial dimension (per image)
    tile_r = min(TILE_R_TARGET, _round_up(hw, 16))
    r_pad = _round_up(hw, tile_r)
    if r_pad != hw:
        patches = jnp.pad(patches, ((0, 0), (0, r_pad - hw), (0, 0)))
    patches = patches.astype(jnp.bfloat16)

    # TODO(synk): the pretrained timm MBConv block stack (backbone.blocks) is not
    # reproduced here; features go straight from the stem to conv_head.

    kern = functools.partial(_backbone_kernel, hw=hw, tile_r=tile_r,
                             inv_hw=1.0 / hw, masked=(r_pad != hw))

    feat = pl.pallas_call(
        kern,
        out_shape=jax.ShapeDtypeStruct((n, 1, FEAT_C), jnp.float32),
        grid_spec=pltpu.PrefetchScalarGridSpec(
            num_scalar_prefetch=0,
            grid=(n, r_pad // tile_r),
            in_specs=[
                pl.BlockSpec((1, tile_r, k_in), lambda b, r: (b, r, 0)),
                pl.BlockSpec((k_in, STEM_C),    lambda b, r: (0, 0)),
                pl.BlockSpec((1, STEM_C),       lambda b, r: (0, 0)),
                pl.BlockSpec((STEM_C, FEAT_C),  lambda b, r: (0, 0)),
                pl.BlockSpec((1, FEAT_C),       lambda b, r: (0, 0)),
            ],
            out_specs=pl.BlockSpec((1, 1, FEAT_C), lambda b, r: (b, 0, 0)),
        ),
        compiler_params=pltpu.CompilerParams(
            dimension_semantics=("parallel", "arbitrary"),
            vmem_limit_bytes=32 * 1024 * 1024),
    )(patches, fp['stem_w'], fp['stem_shift'], fp['head_w'], fp['head_shift'])

    return feat.reshape(n, FEAT_C)


# ---------------------------------------------------------------------------
# Kernel 2: merged hard+soft classifier heads
#   shared  Linear(1408 -> 2*512) (BN folded) -> ReLU -> Dropout(id)
#   hard:   h[:, :512] @ w2h + b2h
#   soft:   softmax(h[:, 512:] @ w2s + b2s)
# ---------------------------------------------------------------------------
def _head_kernel(x_ref, w1_ref, b1_ref, w2h_ref, b2h_ref, w2s_ref, b2s_ref,
                 hard_ref, soft_ref):
    h = jnp.dot(x_ref[...], w1_ref[...], preferred_element_type=jnp.float32)
    h = h + b1_ref[...]                      # Linear bias + BatchNorm1d (eval), folded
    h = jnp.maximum(h, 0.0)                  # ReLU
    # TODO(synk): Dropout(0.3) modeled as eval-mode identity (inference semantics).
    h = h.astype(jnp.bfloat16)

    hard = jnp.dot(h[:, :HIDDEN], w2h_ref[...], preferred_element_type=jnp.float32)
    hard_ref[...] = hard + b2h_ref[...]

    s = jnp.dot(h[:, HIDDEN:], w2s_ref[...], preferred_element_type=jnp.float32)
    s = s + b2s_ref[...]
    m = jnp.max(s, axis=1, keepdims=True)
    e = jnp.exp(s - m)
    soft_ref[...] = e / jnp.sum(e, axis=1, keepdims=True)


def classifier_heads(feat, fp):
    n = feat.shape[0]
    return pl.pallas_call(
        _head_kernel,
        out_shape=(jax.ShapeDtypeStruct((n, 10), jnp.float32),
                   jax.ShapeDtypeStruct((n, 11), jnp.float32)),
        in_specs=[VMEM] * 7,
        out_specs=(VMEM, VMEM),
    )(feat.astype(jnp.bfloat16), fp['cls_w1'], fp['cls_b1'],
      fp['h_w2'], fp['h_b2'], fp['s_w2'], fp['s_b2'])


def forward(x_nchw, fp):
    feat = backbone_forward(x_nchw, fp)        # (N, 1408) f32
    hard_out, soft_out = classifier_heads(feat, fp)
    return hard_out, soft_out


# ---------------------------------------------------------------------------
# Deterministic synthetic parameters + host-side BN folding / bf16 cast
# ---------------------------------------------------------------------------
def _bn_fold(gamma, beta, mean, var, eps=1e-5):
    scale = gamma / jnp.sqrt(var + eps)
    shift = beta - mean * scale
    return scale, shift


def init_params(key, cin=3):
    ks = jax.random.split(key, 20)
    r = lambda k, shape, s: (jax.random.normal(k, shape, jnp.float32) * s)
    p = {}

    # conv_stem (3x3, cin -> 32, bias-free) + bn1
    p['stem_w'] = r(ks[0], (9 * cin, STEM_C), 0.15)
    p['stem_b'] = jnp.zeros((STEM_C,), jnp.float32)
    p['bn1_scale'], p['bn1_shift'] = _bn_fold(
        1.0 + r(ks[1], (STEM_C,), 0.1), r(ks[2], (STEM_C,), 0.1),
        jnp.zeros((STEM_C,)), jnp.ones((STEM_C,)))

    # conv_head (1x1, 32 -> 1408, bias-free) + bn2
    p['convhead_w'] = r(ks[3], (STEM_C, FEAT_C), 0.08)
    p['convhead_b'] = jnp.zeros((FEAT_C,), jnp.float32)
    p['bn2_scale'], p['bn2_shift'] = _bn_fold(
        1.0 + r(ks[4], (FEAT_C,), 0.1), r(ks[5], (FEAT_C,), 0.1),
        jnp.zeros((FEAT_C,)), jnp.ones((FEAT_C,)))

    # hard classifier: Linear(1408,512)->BN->ReLU->Dropout->Linear(512,10)
    p['h_w1'] = r(ks[6], (FEAT_C, HIDDEN), 0.03)
    p['h_b1'] = r(ks[7], (HIDDEN,), 0.02)
    p['h_bn_scale'], p['h_bn_shift'] = _bn_fold(
        1.0 + r(ks[8], (HIDDEN,), 0.1), r(ks[9], (HIDDEN,), 0.1),
        jnp.zeros((HIDDEN,)), jnp.ones((HIDDEN,)))
    p['h_w2'] = r(ks[10], (HIDDEN, 10), 0.05)
    p['h_b2'] = r(ks[11], (10,), 0.02)

    # soft classifier: Linear(1408,512)->BN->ReLU->Dropout->Linear(512,11)
    p['s_w1'] = r(ks[12], (FEAT_C, HIDDEN), 0.03)
    p['s_b1'] = r(ks[13], (HIDDEN,), 0.02)
    p['s_bn_scale'], p['s_bn_shift'] = _bn_fold(
        1.0 + r(ks[14], (HIDDEN,), 0.1), r(ks[15], (HIDDEN,), 0.1),
        jnp.zeros((HIDDEN,)), jnp.ones((HIDDEN,)))
    p['s_w2'] = r(ks[16], (HIDDEN, 11), 0.05)
    p['s_b2'] = r(ks[17], (11,), 0.02)
    return p


def fold_params(p):
    """Fold conv bias + eval-mode BN into weights/shifts; cast matmul operands to bf16."""
    fp = {}
    # backbone
    fp['stem_w'] = (p['stem_w'] * p['bn1_scale'][None, :]).astype(jnp.bfloat16)
    fp['stem_shift'] = (p['bn1_shift'] + p['stem_b'] * p['bn1_scale']
                        ).reshape(1, STEM_C).astype(jnp.float32)
    fp['head_w'] = (p['convhead_w'] * p['bn2_scale'][None, :]).astype(jnp.bfloat16)
    fp['head_shift'] = (p['bn2_shift'] + p['convhead_b'] * p['bn2_scale']
                        ).reshape(1, FEAT_C).astype(jnp.float32)
    # merged classifier first stage: concat hard|soft (1408, 1024), BN folded in
    w1 = jnp.concatenate([p['h_w1'] * p['h_bn_scale'][None, :],
                          p['s_w1'] * p['s_bn_scale'][None, :]], axis=1)
    b1 = jnp.concatenate([p['h_b1'] * p['h_bn_scale'] + p['h_bn_shift'],
                          p['s_b1'] * p['s_bn_scale'] + p['s_bn_shift']])
    fp['cls_w1'] = w1.astype(jnp.bfloat16)
    fp['cls_b1'] = b1.reshape(1, 2 * HIDDEN).astype(jnp.float32)
    # second stages
    fp['h_w2'] = p['h_w2'].astype(jnp.bfloat16)
    fp['h_b2'] = p['h_b2'].reshape(1, 10).astype(jnp.float32)
    fp['s_w2'] = p['s_w2'].astype(jnp.bfloat16)
    fp['s_b2'] = p['s_b2'].reshape(1, 11).astype(jnp.float32)
    return fp


if __name__ == "__main__":
    key = jax.random.PRNGKey(0)
    pkey, xkey = jax.random.split(key)
    params = fold_params(init_params(pkey, cin=3))

    # Small, forward-consistent input: batch=2, 3-channel 16x16 image, NCHW.
    x = jax.random.normal(xkey, (2, 3, 16, 16), jnp.float32)

    hard_out, soft_out = jax.jit(forward)(x, params)
    jax.block_until_ready((hard_out, soft_out))

    assert hard_out.shape == (2, 10), hard_out.shape
    assert soft_out.shape == (2, 11), soft_out.shape
    assert bool(jnp.all(jnp.isfinite(hard_out)))
    assert bool(jnp.allclose(jnp.sum(soft_out, axis=1), 1.0, atol=1e-5))

    print("KERNEL_OK")
</pallas_src>

<mosaic_0001>
module attributes {stable_mosaic.version = 11 : i64} {
  func.func @_backbone_kernel(%arg0: i32, %arg1: i32, %arg2: memref<1x64x27xbf16, #tpu.memory_space<vmem>>, %arg3: memref<27x32xbf16, #tpu.memory_space<vmem>>, %arg4: memref<1x32xf32, #tpu.memory_space<vmem>>, %arg5: memref<32x1408xbf16, #tpu.memory_space<vmem>>, %arg6: memref<1x1408xf32, #tpu.memory_space<vmem>>, %arg7: memref<1x1x1408xf32, #tpu.memory_space<vmem>>) attributes {dimension_semantics = [#tpu.dimension_semantics<parallel>, #tpu.dimension_semantics<arbitrary>], iteration_bounds = array<i64: 2, 1>, scalar_prefetch = 0 : i64, scratch_operands = 0 : i64, tpu.core_type = #tpu.core_type<tc>, window_params = [{transform_indices = @transform_0, window_bounds = array<i64: 1, 64, 27>}, {pipeline_mode = #tpu.pipeline_mode<synchronous>, transform_indices = @transform_1, window_bounds = array<i64: 27, 32>}, {pipeline_mode = #tpu.pipeline_mode<synchronous>, transform_indices = @transform_2, window_bounds = array<i64: 1, 32>}, {pipeline_mode = #tpu.pipeline_mode<synchronous>, transform_indices = @transform_3, window_bounds = array<i64: 32, 1408>}, {pipeline_mode = #tpu.pipeline_mode<synchronous>, transform_indices = @transform_4, window_bounds = array<i64: 1, 1408>}, {transform_indices = @transform_5, window_bounds = array<i64: 1, 1, 1408>}]} {
    %c0_i32 = arith.constant 0 : i32
    %0 = arith.cmpi eq, %arg1, %c0_i32 : i32
    %1 = arith.extui %0 : i1 to i32
    %c0_i32_0 = arith.constant 0 : i32
    %2 = arith.cmpi ne, %1, %c0_i32_0 : i32
    scf.if %2 {
      %cst_22 = arith.constant 0.000000e+00 : f32
      %35 = vector.broadcast %cst_22 : f32 to vector<1x1x1408xf32>
      %c0_23 = arith.constant 0 : index
      %c0_24 = arith.constant 0 : index
      %c0_25 = arith.constant 0 : index
      %36 = vector.load %arg7[%c0_23, %c0_24, %c0_25] : memref<1x1x1408xf32, #tpu.memory_space<vmem>>, vector<1x1x1408xf32>
      tpu.vector_store %arg7[%c0_23, %c0_24, %c0_25], %35 {strides = array<i32>} : memref<1x1x1408xf32, #tpu.memory_space<vmem>>, vector<1x1x1408xf32>,
    } else {
    }
    %c0 = arith.constant 0 : index
    %c0_1 = arith.constant 0 : index
    %c0_2 = arith.constant 0 : index
    %3 = vector.load %arg2[%c0, %c0_1, %c0_2] : memref<1x64x27xbf16, #tpu.memory_space<vmem>>, vector<1x64x27xbf16>
    %4 = vector.shape_cast %3 : vector<1x64x27xbf16> to vector<64x27xbf16>
    %c0_3 = arith.constant 0 : index
    %c0_4 = arith.constant 0 : index
    %5 = vector.load %arg3[%c0_3, %c0_4] : memref<27x32xbf16, #tpu.memory_space<vmem>>, vector<27x32xbf16>
    %cst = arith.constant dense<0.000000e+00> : vector<64x32xf32>
    %6 = tpu.matmul %4, %5, %cst {dimension_numbers = #tpu.dot_dimension_numbers<[1], [0], [0], [1], [0, 0, 1, 1], [], []>} : vector<64x27xbf16>, vector<27x32xbf16>, vector<64x32xf32> -> vector<64x32xf32>
    %c0_5 = arith.constant 0 : index
    %c0_6 = arith.constant 0 : index
    %7 = vector.load %arg4[%c0_5, %c0_6] : memref<1x32xf32, #tpu.memory_space<vmem>>, vector<1x32xf32>
    %8 = vector.broadcast %7 : vector<1x32xf32> to vector<64x32xf32>
    %9 = arith.addf %6, %8 : vector<64x32xf32>
    %10 = arith.negf %9 : vector<64x32xf32>
    %11 = math.exp %10 : vector<64x32xf32>
    %cst_7 = arith.constant 1.000000e+00 : f32
    %12 = vector.broadcast %cst_7 : f32 to vector<64x32xf32>
    %13 = arith.addf %12, %11 : vector<64x32xf32>
    %14 = arith.divf %12, %13 : vector<64x32xf32>
    %15 = arith.mulf %9, %14 : vector<64x32xf32>
    %16 = arith.truncf %15 : vector<64x32xf32> to vector<64x32xbf16>
    %c0_8 = arith.constant 0 : index
    %c0_9 = arith.constant 0 : index
    %17 = vector.load %arg5[%c0_8, %c0_9] : memref<32x1408xbf16, #tpu.memory_space<vmem>>, vector<32x1408xbf16>
    %cst_10 = arith.constant dense<0.000000e+00> : vector<64x1408xf32>
    %18 = tpu.matmul %16, %17, %cst_10 {dimension_numbers = #tpu.dot_dimension_numbers<[1], [0], [0], [1], [0, 0, 1, 1], [], []>} : vector<64x32xbf16>, vector<32x1408xbf16>, vector<64x1408xf32> -> vector<64x1408xf32>
    %c0_11 = arith.constant 0 : index
    %c0_12 = arith.constant 0 : index
    %19 = vector.load %arg6[%c0_11, %c0_12] : memref<1x1408xf32, #tpu.memory_space<vmem>>, vector<1x1408xf32>
    %20 = vector.broadcast %19 : vector<1x1408xf32> to vector<64x1408xf32>
    %21 = arith.addf %18, %20 : vector<64x1408xf32>
    %22 = arith.negf %21 : vector<64x1408xf32>
    %23 = math.exp %22 : vector<64x1408xf32>
    %cst_13 = arith.constant 1.000000e+00 : f32
    %24 = vector.broadcast %cst_13 : f32 to vector<64x1408xf32>
    %25 = arith.addf %24, %23 : vector<64x1408xf32>
    %26 = arith.divf %24, %25 : vector<64x1408xf32>
    %27 = arith.mulf %21, %26 : vector<64x1408xf32>
    %c0_14 = arith.constant 0 : index
    %c0_15 = arith.constant 0 : index
    %c0_16 = arith.constant 0 : index
    %28 = vector.load %arg7[%c0_14, %c0_15, %c0_16] : memref<1x1x1408xf32, #tpu.memory_space<vmem>>, vector<1x1x1408xf32>
    %cst_17 = arith.constant dense<0.000000e+00> : vector<1408xf32>
    %29 = vector.multi_reduction <add>, %27, %cst_17 [0] : vector<64x1408xf32> to vector<1408xf32>
    %cst_18 = arith.constant 1.562500e-02 : f32
    %30 = vector.broadcast %cst_18 : f32 to vector<1408xf32>
    %31 = arith.mulf %29, %30 : vector<1408xf32>
    %32 = vector.shape_cast %31 : vector<1408xf32> to vector<1x1x1408xf32>
    %33 = arith.addf %28, %32 : vector<1x1x1408xf32>
    %c0_19 = arith.constant 0 : index
    %c0_20 = arith.constant 0 : index
    %c0_21 = arith.constant 0 : index
    %34 = vector.load %arg7[%c0_19, %c0_20, %c0_21] : memref<1x1x1408xf32, #tpu.memory_space<vmem>>, vector<1x1x1408xf32>
    tpu.vector_store %arg7[%c0_19, %c0_20, %c0_21], %33 {strides = array<i32>} : memref<1x1x1408xf32, #tpu.memory_space<vmem>>, vector<1x1x1408xf32>,
    return
  }
  func.func @transform_0(%arg0: i32, %arg1: i32) -> (i32, i32, i32) {
    %c0_i32 = arith.constant 0 : i32
    %c0_i32_0 = arith.constant 0 : i32
    return %arg0, %arg1, %c0_i32 : i32, i32, i32
  }
  func.func @transform_1(%arg0: i32, %arg1: i32) -> (i32, i32) {
    %c0_i32 = arith.constant 0 : i32
    %c0_i32_0 = arith.constant 0 : i32
    %c0_i32_1 = arith.constant 0 : i32
    return %c0_i32, %c0_i32_0 : i32, i32
  }
  func.func @transform_2(%arg0: i32, %arg1: i32) -> (i32, i32) {
    %c0_i32 = arith.constant 0 : i32
    %c0_i32_0 = arith.constant 0 : i32
    %c0_i32_1 = arith.constant 0 : i32
    return %c0_i32, %c0_i32_0 : i32, i32
  }
  func.func @transform_3(%arg0: i32, %arg1: i32) -> (i32, i32) {
    %c0_i32 = arith.constant 0 : i32
    %c0_i32_0 = arith.constant 0 : i32
    %c0_i32_1 = arith.constant 0 : i32
    return %c0_i32, %c0_i32_0 : i32, i32
  }
  func.func @transform_4(%arg0: i32, %arg1: i32) -> (i32, i32) {
    %c0_i32 = arith.constant 0 : i32
    %c0_i32_0 = arith.constant 0 : i32
    %c0_i32_1 = arith.constant 0 : i32
    return %c0_i32, %c0_i32_0 : i32, i32
  }
  func.func @transform_5(%arg0: i32, %arg1: i32) -> (i32, i32, i32) {
    %c0_i32 = arith.constant 0 : i32
    %c0_i32_0 = arith.constant 0 : i32
    %c0_i32_1 = arith.constant 0 : i32
    return %arg0, %c0_i32, %c0_i32_0 : i32, i32, i32
  }
}

module attributes {stable_mosaic.version = 11 : i64} {
  func.func @_head_kernel(%arg0: memref<2x1408xbf16, #tpu.memory_space<vmem>>, %arg1: memref<1408x1024xbf16, #tpu.memory_space<vmem>>, %arg2: memref<1x1024xf32, #tpu.memory_space<vmem>>, %arg3: memref<512x10xbf16, #tpu.memory_space<vmem>>, %arg4: memref<1x10xf32, #tpu.memory_space<vmem>>, %arg5: memref<512x11xbf16, #tpu.memory_space<vmem>>, %arg6: memref<1x11xf32, #tpu.memory_space<vmem>>, %arg7: memref<2x10xf32, #tpu.memory_space<vmem>>, %arg8: memref<2x11xf32, #tpu.memory_space<vmem>>) attributes {dimension_semantics = [], scalar_prefetch = 0 : i64, scratch_operands = 0 : i64, tpu.core_type = #tpu.core_type<tc>} {
    %c0 = arith.constant 0 : index
    %c0_0 = arith.constant 0 : index
    %0 = vector.load %arg0[%c0, %c0_0] : memref<2x1408xbf16, #tpu.memory_space<vmem>>, vector<2x1408xbf16>
    %c0_1 = arith.constant 0 : index
    %c0_2 = arith.constant 0 : index
    %1 = vector.load %arg1[%c0_1, %c0_2] : memref<1408x1024xbf16, #tpu.memory_space<vmem>>, vector<1408x1024xbf16>
    %cst = arith.constant dense<0.000000e+00> : vector<2x1024xf32>
    %2 = tpu.matmul %0, %1, %cst {dimension_numbers = #tpu.dot_dimension_numbers<[1], [0], [0], [1], [0, 0, 1, 1], [], []>} : vector<2x1408xbf16>, vector<1408x1024xbf16>, vector<2x1024xf32> -> vector<2x1024xf32>
    %c0_3 = arith.constant 0 : index
    %c0_4 = arith.constant 0 : index
    %3 = vector.load %arg2[%c0_3, %c0_4] : memref<1x1024xf32, #tpu.memory_space<vmem>>, vector<1x1024xf32>
    %4 = vector.broadcast %3 : vector<1x1024xf32> to vector<2x1024xf32>
    %5 = arith.addf %2, %4 : vector<2x1024xf32>
    %cst_5 = arith.constant 0.000000e+00 : f32
    %6 = vector.broadcast %cst_5 : f32 to vector<2x1024xf32>
    %7 = arith.maximumf %5, %6 : vector<2x1024xf32>
    %8 = arith.truncf %7 : vector<2x1024xf32> to vector<2x1024xbf16>
    %9 = vector.extract_strided_slice %8 {offsets = [0, 0], sizes = [2, 512], strides = [1, 1]} : vector<2x1024xbf16> to vector<2x512xbf16>
    %c0_6 = arith.constant 0 : index
    %c0_7 = arith.constant 0 : index
    %10 = vector.load %arg3[%c0_6, %c0_7] : memref<512x10xbf16, #tpu.memory_space<vmem>>, vector<512x10xbf16>
    %cst_8 = arith.constant dense<0.000000e+00> : vector<2x10xf32>
    %11 = tpu.matmul %9, %10, %cst_8 {dimension_numbers = #tpu.dot_dimension_numbers<[1], [0], [0], [1], [0, 0, 1, 1], [], []>} : vector<2x512xbf16>, vector<512x10xbf16>, vector<2x10xf32> -> vector<2x10xf32>
    %c0_9 = arith.constant 0 : index
    %c0_10 = arith.constant 0 : index
    %12 = vector.load %arg4[%c0_9, %c0_10] : memref<1x10xf32, #tpu.memory_space<vmem>>, vector<1x10xf32>
    %13 = vector.broadcast %12 : vector<1x10xf32> to vector<2x10xf32>
    %14 = arith.addf %11, %13 : vector<2x10xf32>
    %c0_11 = arith.constant 0 : index
    %c0_12 = arith.constant 0 : index
    %15 = vector.load %arg7[%c0_11, %c0_12] : memref<2x10xf32, #tpu.memory_space<vmem>>, vector<2x10xf32>
    tpu.vector_store %arg7[%c0_11, %c0_12], %14 {strides = array<i32>} : memref<2x10xf32, #tpu.memory_space<vmem>>, vector<2x10xf32>,
    %16 = vector.extract_strided_slice %8 {offsets = [0, 512], sizes = [2, 512], strides = [1, 1]} : vector<2x1024xbf16> to vector<2x512xbf16>
    %c0_13 = arith.constant 0 : index
    %c0_14 = arith.constant 0 : index
    %17 = vector.load %arg5[%c0_13, %c0_14] : memref<512x11xbf16, #tpu.memory_space<vmem>>, vector<512x11xbf16>
    %cst_15 = arith.constant dense<0.000000e+00> : vector<2x11xf32>
    %18 = tpu.matmul %16, %17, %cst_15 {dimension_numbers = #tpu.dot_dimension_numbers<[1], [0], [0], [1], [0, 0, 1, 1], [], []>} : vector<2x512xbf16>, vector<512x11xbf16>, vector<2x11xf32> -> vector<2x11xf32>
    %c0_16 = arith.constant 0 : index
    %c0_17 = arith.constant 0 : index
    %19 = vector.load %arg6[%c0_16, %c0_17] : memref<1x11xf32, #tpu.memory_space<vmem>>, vector<1x11xf32>
    %20 = vector.broadcast %19 : vector<1x11xf32> to vector<2x11xf32>
    %21 = arith.addf %18, %20 : vector<2x11xf32>
    %cst_18 = arith.constant dense<0xFF800000> : vector<2xf32>
    %22 = vector.multi_reduction <maximumf>, %21, %cst_18 [1] : vector<2x11xf32> to vector<2xf32>
    %23 = vector.shape_cast %22 : vector<2xf32> to vector<2x1xf32>
    %24 = vector.broadcast %23 : vector<2x1xf32> to vector<2x11xf32>
    %25 = arith.subf %21, %24 : vector<2x11xf32>
    %26 = math.exp %25 : vector<2x11xf32>
    %cst_19 = arith.constant dense<0.000000e+00> : vector<2xf32>
    %27 = vector.multi_reduction <add>, %26, %cst_19 [1] : vector<2x11xf32> to vector<2xf32>
    %28 = vector.shape_cast %27 : vector<2xf32> to vector<2x1xf32>
    %29 = vector.broadcast %28 : vector<2x1xf32> to vector<2x11xf32>
    %30 = arith.divf %26, %29 : vector<2x11xf32>
    %c0_20 = arith.constant 0 : index
    %c0_21 = arith.constant 0 : index
    %31 = vector.load %arg8[%c0_20, %c0_21] : memref<2x11xf32, #tpu.memory_space<vmem>>, vector<2x11xf32>
    tpu.vector_store %arg8[%c0_20, %c0_21], %30 {strides = array<i32>} : memref<2x11xf32, #tpu.memory_space<vmem>>, vector<2x11xf32>,
    return
  }
}

</mosaic_0001>

<bundles_post_ra>
// kernel: forward.2
= control target key start
LH: loop header
LB: loop body
LE: loop exit
PB: predicated region body
PF: predicated region fallthrough
CT: control target
= control target key end

     0   :  { %10 = vsyncpa [#allocation3], 0  ;;  %s3988_s0 = inlined_call_operand.vmem [shape: bf16[2,64,27], index: 0, kind: input, shape index: {}]   ;;  %s3989_s1 = inlined_call_operand.hbm [shape: bf16[27,32], index: 1, kind: input, shape index: {}]   ;;  %s3990_s2 = inlined_call_operand.hbm [shape: f32[1,32], index: 2, kind: input, shape index: {}]   ;;  %s3991_s3 = inlined_call_operand.hbm [shape: bf16[32,1408], index: 3, kind: input, shape index: {}]   ;;  %s3992_s4 = inlined_call_operand.hbm [shape: f32[1,1408], index: 4, kind: input, shape index: {}]   ;;  %s3993_s5 = inlined_call_operand.vmem [shape: f32[2,1,1408], index: 5, kind: output, shape index: {}]  }
   0x1   :  { %11 = vsyncpa [#allocation5], 0 }
   0x2   :  { %12 = vsyncpa [#allocation8], 0  ;;  %s3017_s18 = smov 0   ;;  %s3019_s19 = smov 0  }
   0x3   :  { %s3021_s20 = smov 0  }
   0x4 LB: > { %s2975_s21 = smov [#allocation4]   ;;  %s2124_s23 = sadd.s32 4294967295, %s2973_s20   ;;  %s2973_s20 = sphi %s3021_s20, %s18_s20   ;;  %s2969_s19 = sphi %s3019_s19, %s4122_s19   ;;  %s2965_s18 = sphi %s3017_s18, %s4121_s18  }
   0x5   : > { %s199_s22 = sshll.u32 %s2975_s21, 4  ;;  %p2126_p0 = scmp.ge.s32.totalorder %s2973_s20, 1  ;;  %s200_s22 = int_to_ptr.vmem [resolvable:$true] %s199_s22 }
   0x6   : > { %p173_p1 = scmp.lt.s32.totalorder %s2973_s20, 3  ;;  %p3035_p2 = scmp.eq.s32.totalorder %s2124_s23, 0 }
   0x7   : > { %s30_s26 = sadd.s32 1, %s2969_s19  ;;  %s2976_s29 = smov [#allocation2]  }
   0x8   : > { %s4033_s24 = scalar_select %p3035_p2, 1, 0 }
   0x9   : > { %p3039_p3 = pnand %p2126_p0, %p173_p1  ;;  %p3052_p6 = scmp.ge.s32.totalorder %s30_s26, 2 }
   0xa   : > { %s185_s30 = sshll.u32 %s2976_s29, 4  ;;  %s2827_s8 = scalar_lea.hbm %s3990_s2, 16  ;;  %s3056_s30 = int_to_ptr.vmem [resolvable:$true] %s185_s30 }
   0xb   : > { %s4034_s25 = scalar_select %p3039_p3, 1, 0 }
   0xc   : > { %p2348_p4 = pneg %p3039_p3  ;;  %p2828_p7 = scmp.ne.s32.totalorder %s3990_s2, %s2827_s8 }
   0xd   : > { %s4036_s28 = scalar_select %p3052_p6, 1, 0 }
   0xe   : > { %p3048_p5 = pnand %p3035_p2, %p2348_p4  ;;  %p2834_p11 = scmp.lt.u32.totalorder %s2827_s8, %s3990_s2 }
  0x10   : > { %p3066_p8 = pneg %p3048_p5 }
  0x12   : > { %p2830_p9 = pnand %p3066_p8, %p2828_p7 }
  0x14   : > { %p2831_p10 = pneg %p2830_p9 }
  0x16   : > { %p2836_p12 = pnand %p2834_p11, %p2831_p10 }
  0x18   : > { %2839 = shalt.err (!%p2836_p12)
}
  0x19   : > { %s2840_s14 = scalar_lea.vmem %s200_s22, 16  ;;  %s2847_s15 = scalar_lea.vmem %s200_s22, 32 }
  0x1a   : > { %p2841_p13 = scmp.ne.s32.totalorder %s200_s22, %s2840_s14  ;;  %p2848_p4 = scmp.lt.s32.totalorder %s200_s22, %s200_s22 }
  0x1b   : > { %p2849_p2 = scmp.lt.s32.totalorder %s2847_s15, %s2840_s14 }
  0x1c   : > { %p2843_p0 = pnand %p2841_p13, %p3066_p8 }
  0x1d   : > { %p2850_p3 = por %p2849_p2, %p2848_p4 }
  0x1e   : > { %p2844_p1 = pneg %p2843_p0 }
  0x20   : > { %p2851_p6 = pnand %p2850_p3, %p2844_p1 }
  0x22   : > { %2854 = shalt.err (!%p2851_p6)
}
  0x23   : > { %2354 = dma.hbm_to_vmem [thread:$0]  (!%p3048_p5), %s3990_s2, 16, %s200_s22, [#allocation5]  }
  0x24   : > { %p4038_p7 = scmp.ne.s32.totalorder %s4036_s28, 0  ;;  %s2855_s29 = scalar_lea.hbm %s3989_s1, 256 }
  0x25   : > { %p2856_p2 = scmp.ne.s32.totalorder %s3989_s1, %s2855_s29  ;;  %p2862_p9 = scmp.lt.u32.totalorder %s2855_s29, %s3989_s1 }
  0x26   : > { %s4124_s26 = smov (%p4038_p7, %s30_s26), 0 }
  0x27   : > { %p2858_p3 = pnand %p2856_p2, %p3066_p8 }
  0x29   : > { %p2859_p6 = pneg %p2858_p3 }
  0x2b   : > { %p2864_p10 = pnand %p2862_p9, %p2859_p6 }
  0x2d   : > { %2867 = shalt.err (!%p2864_p10)
}
  0x2e   : > { %s2868_s22 = scalar_lea.vmem %s3056_s30, 256  ;;  %p2876_p0 = scmp.lt.s32.totalorder %s3056_s30, %s3056_s30 }
  0x2f   : > { %p2869_p11 = scmp.ne.s32.totalorder %s3056_s30, %s2868_s22  ;;  %p2877_p1 = scmp.lt.s32.totalorder %s2868_s22, %s2868_s22 }
  0x31   : > { %p2871_p12 = pnand %p2869_p11, %p3066_p8  ;;  %p2878_p4 = por %p2877_p1, %p2876_p0 }
  0x33   : > { %p2872_p13 = pneg %p2871_p12 }
  0x35   : > { %p2879_p7 = pnand %p2878_p4, %p2872_p13 }
  0x37   : > { %2882 = shalt.err (!%p2879_p7)
}
  0x38   : > { %s2977_s28 = smov 64   ;;  %s2978_s10 = smov 4  }
  0x39   : > { %2351 = dma.hbm_to_vmem [thread:$0]  (!%p3048_p5), %s3989_s1, 256, %s3056_s30, [#allocation3], %s2977_s28, %s2977_s28, %s2978_s10  }
  0x3a   : > { %s2979_s14 = smov [#allocation6]   ;;  %s2883_s21 = scalar_lea.hbm %s3991_s3, 2816 }
  0x3b   : > { %s209_s15 = sshll.u32 %s2979_s14, 4  ;;  %p2884_p2 = scmp.ne.s32.totalorder %s3991_s3, %s2883_s21  ;;  %s210_s15 = int_to_ptr.vmem [resolvable:$true] %s209_s15 }
  0x3c   : > { %p2890_p9 = scmp.lt.u32.totalorder %s2883_s21, %s3991_s3 }
  0x3d   : > { %p2886_p3 = pnand %p2884_p2, %p3066_p8 }
  0x3f   : > { %p2887_p6 = pneg %p2886_p3 }
  0x41   : > { %p2892_p10 = pnand %p2890_p9, %p2887_p6 }
  0x43   : > { %2895 = shalt.err (!%p2892_p10)
}
  0x44   : > { %s2896_s30 = scalar_lea.vmem %s210_s15, 2816  ;;  %p2904_p0 = scmp.lt.s32.totalorder %s210_s15, %s210_s15 }
  0x45   : > { %p2897_p11 = scmp.ne.s32.totalorder %s210_s15, %s2896_s30  ;;  %p2905_p1 = scmp.lt.s32.totalorder %s2896_s30, %s2896_s30 }
  0x47   : > { %p2899_p12 = pnand %p2897_p11, %p3066_p8  ;;  %p2906_p4 = por %p2905_p1, %p2904_p0 }
  0x49   : > { %p2900_p13 = pneg %p2899_p12 }
  0x4b   : > { %p2907_p7 = pnand %p2906_p4, %p2900_p13 }
  0x4d   : > { %2910 = shalt.err (!%p2907_p7)
}
  0x4e   : > { %s2980_s8 = smov 704   ;;  %s2981_s9 = smov 44  }
  0x4f   : > { %2357 = dma.hbm_to_vmem [thread:$0]  (!%p3048_p5), %s3991_s3, 2816, %s210_s15, [#allocation5], %s2980_s8, %s2980_s8, %s2981_s9  }
  0x50   : > { %s2982_s10 = smov [#allocation7]   ;;  %s2911_s16 = scalar_lea.hbm %s3992_s4, 176 }
  0x51   : > { %s223_s12 = sshll.u32 %s2982_s10, 4  ;;  %p2912_p2 = scmp.ne.s32.totalorder %s3992_s4, %s2911_s16  ;;  %s224_s12 = int_to_ptr.vmem [resolvable:$true] %s223_s12 }
  0x52   : > { %p2918_p9 = scmp.lt.u32.totalorder %s2911_s16, %s3992_s4 }
  0x53   : > { %p2914_p3 = pnand %p2912_p2, %p3066_p8 }
  0x55   : > { %p2915_p6 = pneg %p2914_p3 }
  0x57   : > { %p2920_p10 = pnand %p2918_p9, %p2915_p6 }
  0x59   : > { %2923 = shalt.err (!%p2920_p10)
}
  0x5a   : > { %s2924_s15 = scalar_lea.vmem %s224_s12, 176  ;;  %s2931_s6 = scalar_lea.vmem %s224_s12, 192 }
  0x5b   : > { %p2925_p11 = scmp.ne.s32.totalorder %s224_s12, %s2924_s15  ;;  %p2932_p0 = scmp.lt.s32.totalorder %s224_s12, %s224_s12 }
  0x5c   : > { %p2933_p1 = scmp.lt.s32.totalorder %s2931_s6, %s2924_s15 }
  0x5d   : > { %p2927_p12 = pnand %p2925_p11, %p3066_p8 }
  0x5e   : > { %p2934_p4 = por %p2933_p1, %p2932_p0 }
  0x5f   : > { %p2928_p13 = pneg %p2927_p12 }
  0x61   : > { %p2935_p7 = pnand %p2934_p4, %p2928_p13 }
  0x63   : > { %2938 = shalt.err (!%p2935_p7)
}
  0x64   : > { %2360 = dma.hbm_to_vmem [thread:$0]  (!%p3048_p5), %s3992_s4, 176, %s224_s12, [#allocation8]  }
  0x65   : > { %p4039_p2 = scmp.ne.s32.totalorder %s4034_s25, 0 }
  0x67   : > { %249 = sbr.rel (%p4039_p2) target bundleno = 813 (0x32d), region = 40 }
  0x6e   : > { %p4040_p3 = scmp.ne.s32.totalorder %s4033_s24, 0 }
  0x70   : > { %2952 = dma.done.wait (%p4040_p3), [#allocation3], 256  }
  0x71   : > { %2954 = vsyncadd (%p4040_p3), [#allocation3], 4294967040 }
  0x72   : > { %2956 = dma.done.wait (%p4040_p3), [#allocation5], 2832  }
  0x73   : > { %2958 = vsyncadd (%p4040_p3), [#allocation5], 4294964464 }
  0x74   : > { %2960 = dma.done.wait (%p4040_p3), [#allocation8], 176  }
  0x75   : > { %2962 = vsyncadd (%p4040_p3), [#allocation8], 4294967120  ;;  %p293_p5 = scmp.lt.s32.totalorder %s2965_s18, 1  ;;  %vm380_vm0 = vcmask 1044480   ;;  %v312_v0 = vlaneseq  ;;  %vm381_vm1 = vcmask 1045504   ;;  %v2983_v1 = vmov 65535  }
  0x76   : > { %v382_v2 = vsel %vm380_vm0, 4294967295, %v2983_v1  ;;  %v4041_v3 = vmov 0  ;;  %vm367_vm3 = vcmask 220160   ;;  %v2405_v4 = vld [vmem:[#allocation2] sm:$0xff]   ;;  %v2984_v6 = vmov 0.0  }
  0x77   : > { %s4126_s18 = smov (!%p293_p5, %s2965_s18), 1  ;;  %vm3162_vm2 = vcmp.lt.s32.totalorder %v312_v0, 384  ;;  %v383_v5 = vsel %vm381_vm1, %v382_v2, 0  ;;  %v2406_v7 = vld [vmem:[#allocation2 + $0x8] sm:$0x3f]   ;;  %2307 = vmatprep.subr.bf16.mxu0 %v2405_v4  ;;  %v2985_v21 = vmov 0  }
  0x78   : > { %s2294_s25 = sshll.u32 %s4126_s18, 5  ;;  %s2331_s27 = smul.u32 11, %s4126_s18  ;;  %v4042_v3 = vsel %vm3162_vm2, 4294967295, %v4041_v3  ;;  %2308 = vmatpush3.bf16.msra.mxu0 %v2405_v4  ;;  %v385_v9 = vand.u32 %v2406_v7, %v383_v5  ;;  %v2411_v13 = vld [vmem:[#allocation6 + $0x4] ss:$44 sps:$4 sm:$0xff]   ;;  %752 = vmatprep.mubr.bf16.mxu1 %v2985_v21  ;;  %vm707_vm4 = vcmask 261120  }
  0x79   : > { %4043 = vst [vmem:[#allocation12_spill] sm:$0xff] %v4042_v3  ;;  %s300_s24 = scalar_lea.vmem %s3988_s0, %s2294_s25  ;;  %v2416_v14 = vld [vmem:[#allocation6 + $0xc] ss:$44 sps:$4 sm:$0xff]   ;;  %v2414_v16 = vld [vmem:[#allocation6 + $0x8] ss:$44 sps:$4 sm:$0xff]   ;;  %720 = vmatprep.subr.bf16.mxu1 %v2411_v13 }
  0x7a   : > { %s3172_s28 = scalar_lea.vmem %s3993_s5, %s2331_s27  ;;  %v2407_v8 = vld [vmem:[%s300_s24] sm:$0xff]   ;;  %v2408_v10 = vld [vmem:[%s300_s24 + $0x8] sm:$0xff]   ;;  %2309 = vmatprep.subr.bf16.mxu0 %v385_v9  ;;  %v2409_v11 = vld [vmem:[%s300_s24 + $0x10] sm:$0xff]  }
  0x7b   : > { %316 = vst.msk [vmem:[%s3172_s28 + $0x8] sm:$0x7] %vm3162_vm2, %v2984_v6  ;;  %2311 = vmatprep.mubr.msk.bf16.mxu0 %vm367_vm3, %v2407_v8  ;;  %v2410_v12 = vld [vmem:[%s300_s24 + $0x18] sm:$0xff]   ;;  %v2425_v22 = vld [vmem:[#allocation6 + $0x14] ss:$44 sps:$4 sm:$0xff]  }
  0x7c   : > { %2310 = vmatpush3.bf16.msra.mxu0 %v385_v9  ;;  %v2413_v15 = vld [vmem:[#allocation6] ss:$44 sps:$4 sm:$0xff]   ;;  %v2417_v17 = vld [vmem:[#allocation6 + $0x5c] ss:$44 sps:$4 sm:$0xff]   ;;  %v2422_v18 = vld [vmem:[#allocation6 + $0x64] ss:$44 sps:$4 sm:$0xff]  }
  0x7d   : > { %793 = vmatprep.subr.bf16.mxu0 %v2416_v14  ;;  %721 = vmatpush1.bf16.msra.mxu1 %v2413_v15  ;;  %v2419_v19 = vld [vmem:[#allocation6 + $0x58] ss:$44 sps:$4 sm:$0xff]   ;;  %v2420_v20 = vld [vmem:[#allocation6 + $0x60] ss:$44 sps:$4 sm:$0xff]   ;;  %v2428_v23 = vld [vmem:[#allocation6 + $0x1c] ss:$44 sps:$4 sm:$0xff]  }
  0x7e   : > { %722 = vmatprep.subr.bf16.mxu1 %v2417_v17  ;;  %v2139_v24 = vld [vmem:[#allocation4] ss:$0 sm:$0xff]  ;;  %v2426_v14 = vld [vmem:[#allocation6 + $0x18] ss:$44 sps:$4 sm:$0xff]  }
  0x7f   : > { %2312 = vmatmul.mubr.msk.bf16.vlgmr.msra.gmra.mrb[0].mxu0 %vm367_vm3, %v2408_v10  ;;  %v2431_v15 = vld [vmem:[#allocation6 + $0x6c] ss:$44 sps:$4 sm:$0xff]  }
  0x80   : > { %2315 = vmatprep.mubr.msk.bf16.mxu0 %vm367_vm3, %v2409_v11  ;;  %794 = vmatpush1.bf16.msra.mxu0 %v2414_v16  ;;  %v2434_v16 = vld [vmem:[#allocation6 + $0x74] ss:$44 sps:$4 sm:$0xff]  }
  0x81   : > { %795 = vmatprep.subr.bf16.mxu0 %v2422_v18  ;;  %723 = vmatpush1.bf16.msra.mxu1 %v2419_v19  ;;  %v2429_v19 = vld [vmem:[#allocation6 + $0x68] ss:$44 sps:$4 sm:$0xff]  }
  0x82   : > { %866 = vmatprep.subr.bf16.mxu1 %v2425_v22  ;;  %v2432_v22 = vld [vmem:[#allocation6 + $0x70] ss:$44 sps:$4 sm:$0xff]  }
  0x84   : > { %796 = vmatpush1.bf16.msra.mxu0 %v2420_v20 }
  0x85   : > { %939 = vmatprep.subr.bf16.mxu0 %v2428_v23  ;;  %v2437_v23 = vld [vmem:[#allocation6 + $0x24] ss:$44 sps:$4 sm:$0xff]  }
  0x87   : > { %2316 = vmatmul.mubr.msk.bf16.gmra.mrb[4].mxu0 %vm367_vm3, %v2410_v12  ;;  %v2423_v12 = vld [vmem:[#allocation6 + $0x10] ss:$44 sps:$4 sm:$0xff]  }
  0x88   : > { %825 = vmatprep.mubr.bf16.mxu0 %v2985_v21 }
 0x152   : > { %v2313_v25 = vpop.f32.mrb[0].mxu0 }
 0x153   : > { %v430_v26 = vadd.f32 %v2313_v25, %v2139_v24  ;;  %v421_v27 = vpop.f32.mrb[1].mxu0 }
 0x154   : > { %v422_v28 = vadd.f32 %v2139_v24, %v421_v27  ;;  %v2314_v29 = vpop.f32.mrb[2].mxu0  ;;  %v2438_v27 = vld [vmem:[#allocation6 + $0x28] ss:$44 sps:$4 sm:$0xff]  }
 0x155   : > { %v2152_v30 = vmul.f32 -1.442695, %v430_v26  ;;  %v433_v31 = vadd.f32 %v2314_v29, %v2139_v24  ;;  %v424_v32 = vpop.f32.mrb[3].mxu0 }
 0x156   : > { %v2150_v33 = vmul.f32 -1.442695, %v422_v28  ;;  %v425_v34 = vadd.f32 %v2139_v24, %v424_v32  ;;  %v2435_v32 = vld [vmem:[#allocation6 + $0x20] ss:$44 sps:$4 sm:$0xff]  }
 0x157   : > { %2443 = vpow2.f32 %v2152_v30  ;;  %v2153_v35 = vmul.f32 -1.442695, %v433_v31 }
 0x158   : > { %2445 = vpow2.f32 %v2150_v33  ;;  %v2151_v36 = vmul.f32 -1.442695, %v425_v34  ;;  %v2441_v33 = vld [vmem:[#allocation6 + $0x7c] ss:$44 sps:$4 sm:$0xff]  }
 0x159   : > { %2447 = vpow2.f32 %v2153_v35  ;;  %v2439_v35 = vld [vmem:[#allocation6 + $0x78] ss:$44 sps:$4 sm:$0xff]  }
 0x15a   : > { %2449 = vpow2.f32 %v2151_v36  ;;  %v2317_v37 = vpop.f32.mrb[4].mxu0  ;;  %v3258_v36 = vshrl.u32 %v312_v0, 7 }
 0x15b   : > { %v3183_v38 = vadd.f32 %v2317_v37, %v2139_v24  ;;  %v437_v39 = vpop.f32.mrb[5].mxu0 }
 0x15c   : > { %v3185_v40 = vadd.f32 %v2139_v24, %v437_v39  ;;  %v2318_v41 = vpop.f32.mrb[6].mxu0  ;;  %v3999_v37 = vsub.s32 0, %v3258_v36  ;;  %v3262_v39 = vld [vmem:[#allocation7] sm:$0xff] }
 0x15d   : > { %v2156_v42 = vmul.f32 -1.442695, %v3183_v38  ;;  %v3188_v43 = vadd.f32 %v2318_v41, %v2139_v24  ;;  %v440_v44 = vpop.f32.mrb[7].mxu0  ;;  %v554_v41 = vsub.s32 3, %v3258_v36 }
 0x15e   : > { %v2154_v45 = vmul.f32 -1.442695, %v3185_v40  ;;  %v3191_v46 = vadd.f32 %v2139_v24, %v440_v44 }
 0x15f   : > { %2451 = vpow2.f32 %v2156_v42  ;;  %v2157_v47 = vmul.f32 -1.442695, %v3188_v43  ;;  %v3269_v42 = vrot.slane %v3262_v39, %v3999_v37 }
 0x160   : > { %2453 = vpow2.f32 %v2154_v45  ;;  %v2155_v48 = vmul.f32 -1.442695, %v3191_v46 }
 0x161   : > { %v2444_v49 = vpop.eup %2443  ;;  %2455 = vpow2.f32 %v2157_v47 }
 0x162   : > { %v2446_v50 = vpop.eup %2445  ;;  %v478_v51 = vadd.f32 1.0, %v2444_v49  ;;  %2457 = vpow2.f32 %v2155_v48 }
 0x163   : > { %v2448_v52 = vpop.eup %2447  ;;  %v476_v53 = vadd.f32 1.0, %v2446_v50 }
 0x164   : > { %v2450_v54 = vpop.eup %2449  ;;  %2459 = vrcp.f32 %v478_v51  ;;  %v479_v55 = vadd.f32 1.0, %v2448_v52 }
 0x165   : > { %2461 = vrcp.f32 %v476_v53  ;;  %v477_v56 = vadd.f32 1.0, %v2450_v54 }
 0x166   : > { %2463 = vrcp.f32 %v479_v55 }
 0x167   : > { %2465 = vrcp.f32 %v477_v56 }
 0x169   : > { %v2452_v57 = vpop.eup %2451 }
 0x16a   : > { %v2454_v58 = vpop.eup %2453  ;;  %v482_v59 = vadd.f32 1.0, %v2452_v57 }
 0x16b   : > { %v2456_v60 = vpop.eup %2455  ;;  %v480_v61 = vadd.f32 1.0, %v2454_v58 }
 0x16c   : > { %v2458_v62 = vpop.eup %2457  ;;  %2467 = vrcp.f32 %v482_v59  ;;  %v483_v63 = vadd.f32 1.0, %v2456_v60 }
 0x16d   : > { %2469 = vrcp.f32 %v480_v61  ;;  %v481_v1 = vadd.f32 1.0, %v2458_v62 }
 0x16e   : > { %v2460_v2 = vpop.eup %2459  ;;  %2471 = vrcp.f32 %v483_v63 }
 0x16f   : > { %v2462_v4 = vpop.eup %2461  ;;  %2473 = vrcp.f32 %v481_v1  ;;  %v502_v7 = vmul.f32 %v2460_v2, %v430_v26 }
 0x170   : > { %v2464_v5 = vpop.eup %2463  ;;  %v500_v9 = vmul.f32 %v2462_v4, %v422_v28 }
 0x171   : > { %v2466_v6 = vpop.eup %2465  ;;  %v503_v8 = vmul.f32 %v2464_v5, %v433_v31 }
 0x172   : > { %v501_v10 = vmul.f32 %v2466_v6, %v425_v34  ;;  %v2442_v34 = vld [vmem:[#allocation6 + $0x80] ss:$44 sps:$4 sm:$0xff]  }
 0x173   : > { %v3195_v11 = vpack.c.bf16 %v503_v8, %v502_v7 }
 0x174   : > { %v3197_v13 = vpack.c.bf16 %v501_v10, %v500_v9 }
 0x176   : > { %v2468_v17 = vpop.eup %2467  ;;  %2180 = vmatmul.mubr.msk.bf16.vlgmr.msra.gmra.mrb[0].mxu1 %vm707_vm4, %v3197_v13  ;;  %2184 = vmatmul.mubr.msk.bf16.vlgmr.msra.gmra.mrb[8].mxu0 %vm707_vm4, %v3197_v13 }
 0x177   : > { %v2470_v18 = vpop.eup %2469  ;;  %867 = vmatpush1.bf16.msra.mxu1 %v2423_v12  ;;  %762 = vmatprep.mubr.bf16.mxu1 %v2985_v21  ;;  %v506_v25 = vmul.f32 %v2468_v17, %v3183_v38  ;;  %v3998_v38 = vsub.s32 2, %v3258_v36 }
 0x178   : > { %v2472_v20 = vpop.eup %2471  ;;  %835 = vmatprep.mubr.bf16.mxu0 %v2985_v21  ;;  %940 = vmatpush1.bf16.msra.mxu0 %v2426_v14  ;;  %v504_v28 = vmul.f32 %v2470_v18, %v3185_v40  ;;  %v3997_v40 = vsub.s32 1, %v3258_v36 }
 0x179   : > { %v2474_v24 = vpop.eup %2473  ;;  %v507_v26 = vmul.f32 %v2472_v20, %v3188_v43  ;;  %868 = vmatprep.subr.bf16.mxu1 %v2431_v15  ;;  %941 = vmatprep.subr.bf16.mxu0 %v2434_v16  ;;  %v3274_v0 = vrot.slane %v3262_v39, %v3998_v38  ;;  %v3282_v43 = vrot.slane %v3262_v39, %v554_v41 }
 0x17a   : > { %v505_v29 = vmul.f32 %v2474_v24, %v3191_v46 }
 0x17b   : > { %v511_v30 = vpack.c.bf16 %v507_v26, %v506_v25  ;;  %869 = vmatpush1.bf16.msra.mxu1 %v2429_v19 }
 0x17c   : > { %v510_v31 = vpack.c.bf16 %v505_v29, %v504_v28  ;;  %942 = vmatpush1.bf16.msra.mxu0 %v2432_v22  ;;  %1012 = vmatprep.subr.bf16.mxu1 %v2437_v23 }
 0x17d   : > { %2319 = vmatprep.subr.bf16.mxu0 %v2438_v27 }
 0x17e   : > { %2181 = vmatmul.mubr.msk.bf16.gmra.mrb[4].mxu1 %vm707_vm4, %v3195_v11  ;;  %2185 = vmatmul.mubr.msk.bf16.gmra.mrb[12].mxu0 %vm707_vm4, %v3195_v11 }
 0x17f   : > { %772 = vmatprep.mubr.bf16.mxu1 %v2985_v21  ;;  %845 = vmatprep.mubr.bf16.mxu0 %v2985_v21 }
 0x186   : > { %2182 = vmatmul.mubr.msk.bf16.gmra.mrb[8].mxu1 %vm707_vm4, %v510_v31  ;;  %2186 = vmatmul.mubr.msk.bf16.gmra.mrb[16].mxu0 %vm707_vm4, %v510_v31 }
 0x187   : > { %782 = vmatprep.mubr.bf16.mxu1 %v2985_v21  ;;  %855 = vmatprep.mubr.bf16.mxu0 %v2985_v21 }
 0x18e   : > { %2183 = vmatmul.mubr.msk.bf16.gmra.mrb[12].mxu1 %vm707_vm4, %v511_v30  ;;  %2187 = vmatmul.mubr.msk.bf16.gmra.mrb[20].mxu0 %vm707_vm4, %v511_v30 }
 0x18f   : > { %898 = vmatprep.mubr.bf16.mxu1 %v2985_v21  ;;  %971 = vmatprep.mubr.bf16.mxu0 %v2985_v21 }
 0x196   : > { %2188 = vmatmul.mubr.msk.bf16.vlgmr.msra.gmra.mrb[16].mxu1 %vm707_vm4, %v3197_v13  ;;  %2192 = vmatmul.mubr.msk.bf16.vlgmr.msra.gmra.mrb[24].mxu0 %vm707_vm4, %v3197_v13 }
 0x197   : > { %1013 = vmatpush1.bf16.msra.mxu1 %v2435_v32  ;;  %908 = vmatprep.mubr.bf16.mxu1 %v2985_v21 }
 0x198   : > { %981 = vmatprep.mubr.bf16.mxu0 %v2985_v21  ;;  %2320 = vmatpush3.bf16.msra.mxu0 %v2438_v27 }
 0x199   : > { %1014 = vmatprep.subr.bf16.mxu1 %v2441_v33  ;;  %2321 = vmatprep.subr.bf16.mxu0 %v2442_v34  ;;  %v558_v33 = vsub.s32 4, %v3258_v36 }
 0x19b   : > { %1015 = vmatpush1.bf16.msra.mxu1 %v2439_v35 }
 0x19c   : > { %2322 = vmatpush3.bf16.msra.mxu0 %v2442_v34  ;;  %v566_v34 = vsub.s32 6, %v3258_v36 }
 0x19e   : > { %2189 = vmatmul.mubr.msk.bf16.gmra.mrb[20].mxu1 %vm707_vm4, %v3195_v11  ;;  %2193 = vmatmul.mubr.msk.bf16.gmra.mrb[28].mxu0 %vm707_vm4, %v3195_v11 }
 0x19f   : > { %918 = vmatprep.mubr.bf16.mxu1 %v2985_v21  ;;  %991 = vmatprep.mubr.bf16.mxu0 %v2985_v21 }
 0x1a6   : > { %2190 = vmatmul.mubr.msk.bf16.gmra.mrb[24].mxu1 %vm707_vm4, %v510_v31  ;;  %2194 = vmatmul.mubr.msk.bf16.gmra.mrb[32].mxu0 %vm707_vm4, %v510_v31 }
 0x1a7   : > { %928 = vmatprep.mubr.bf16.mxu1 %v2985_v21  ;;  %1001 = vmatprep.mubr.bf16.mxu0 %v2985_v21 }
 0x1ae   : > { %2191 = vmatmul.mubr.msk.bf16.gmra.mrb[28].mxu1 %vm707_vm4, %v511_v30  ;;  %2195 = vmatmul.mubr.msk.bf16.gmra.mrb[36].mxu0 %vm707_vm4, %v511_v30 }
 0x1af   : > { %2323 = vmatprep.mubr.msk.bf16.mxu0 %vm707_vm4, %v3197_v13  ;;  %1044 = vmatprep.mubr.bf16.mxu1 %v2985_v21 }
 0x1b6   : > { %2196 = vmatmul.mubr.msk.bf16.vlgmr.msra.gmra.mrb[32].mxu1 %vm707_vm4, %v3197_v13  ;;  %2324 = vmatmul.mubr.msk.bf16.vlgmr.msra.gmra.mrb[40].mxu0 %vm707_vm4, %v3195_v11 }
 0x1b7   : > { %2327 = vmatprep.mubr.msk.bf16.mxu0 %vm707_vm4, %v510_v31  ;;  %1054 = vmatprep.mubr.bf16.mxu1 %v2985_v21 }
 0x1be   : > { %2197 = vmatmul.mubr.msk.bf16.gmra.mrb[36].mxu1 %vm707_vm4, %v3195_v11  ;;  %2328 = vmatmul.mubr.msk.bf16.gmra.mrb[44].mxu0 %vm707_vm4, %v511_v30 }
 0x1bf   : > { %1064 = vmatprep.mubr.bf16.mxu1 %v2985_v21 }
 0x1c6   : > { %2198 = vmatmul.mubr.msk.bf16.gmra.mrb[40].mxu1 %vm707_vm4, %v510_v31 }
 0x1c7   : > { %1074 = vmatprep.mubr.bf16.mxu1 %v2985_v21  ;;  %v3279_v21 = vrot.slane %v3262_v39, %v3997_v40 }
 0x1ce   : > { %2199 = vmatmul.mubr.msk.bf16.gmra.mrb[44].mxu1 %vm707_vm4, %v511_v30 }
 0x249   : > { %v754_v44 = vpop.f32.mrb[0].mxu1  ;;  %v827_v45 = vpop.f32.mrb[8].mxu0 }
 0x24a   : > { %v3285_v46 = vadd.f32 %v754_v44, %v3269_v42  ;;  %v3288_v47 = vadd.f32 %v827_v45, %v3274_v0  ;;  %v756_v48 = vpop.f32.mrb[1].mxu1  ;;  %v829_v49 = vpop.f32.mrb[9].mxu0 }
 0x24b   : > { %v3291_v50 = vadd.f32 %v756_v48, %v3279_v21  ;;  %v3294_v51 = vadd.f32 %v829_v49, %v3282_v43  ;;  %v758_v52 = vpop.f32.mrb[2].mxu1  ;;  %v831_v53 = vpop.f32.mrb[10].mxu0 }
 0x24c   : > { %v2204_v54 = vmul.f32 -1.442695, %v3285_v46  ;;  %v2206_v55 = vmul.f32 -1.442695, %v3288_v47  ;;  %v3299_v56 = vadd.f32 %v758_v52, %v3269_v42  ;;  %v3302_v57 = vadd.f32 %v831_v53, %v3274_v0  ;;  %v760_v58 = vpop.f32.mrb[3].mxu1  ;;  %v833_v59 = vpop.f32.mrb[11].mxu0 }
 0x24d   : > { %v2205_v60 = vmul.f32 -1.442695, %v3291_v50  ;;  %v2207_v61 = vmul.f32 -1.442695, %v3294_v51  ;;  %v3307_v62 = vadd.f32 %v760_v58, %v3279_v21  ;;  %v3310_v63 = vadd.f32 %v833_v59, %v3282_v43 }
 0x24e   : > { %2475 = vpow2.f32 %v2204_v54  ;;  %v2215_v1 = vmul.f32 -1.442695, %v3299_v56  ;;  %v2217_v2 = vmul.f32 -1.442695, %v3302_v57 }
 0x24f   : > { %2477 = vpow2.f32 %v2206_v55  ;;  %v2216_v4 = vmul.f32 -1.442695, %v3307_v62  ;;  %v2218_v5 = vmul.f32 -1.442695, %v3310_v63 }
 0x250   : > { %2479 = vpow2.f32 %v2205_v60 }
 0x251   : > { %2481 = vpow2.f32 %v2207_v61  ;;  %v764_v6 = vpop.f32.mrb[4].mxu1  ;;  %v837_v7 = vpop.f32.mrb[12].mxu0 }
 0x252   : > { %2483 = vpow2.f32 %v2215_v1  ;;  %v3317_v8 = vadd.f32 %v764_v6, %v3269_v42  ;;  %v3320_v9 = vadd.f32 %v837_v7, %v3274_v0  ;;  %v766_v10 = vpop.f32.mrb[5].mxu1  ;;  %v839_v11 = vpop.f32.mrb[13].mxu0 }
 0x253   : > { %2485 = vpow2.f32 %v2217_v2  ;;  %v3323_v12 = vadd.f32 %v766_v10, %v3279_v21  ;;  %v3326_v13 = vadd.f32 %v839_v11, %v3282_v43  ;;  %v768_v14 = vpop.f32.mrb[6].mxu1  ;;  %v841_v15 = vpop.f32.mrb[14].mxu0  ;;  %v562_v2 = vsub.s32 5, %v3258_v36 }
 0x254   : > { %2487 = vpow2.f32 %v2216_v4  ;;  %v2226_v16 = vmul.f32 -1.442695, %v3317_v8  ;;  %v2228_v17 = vmul.f32 -1.442695, %v3320_v9  ;;  %v3331_v18 = vadd.f32 %v768_v14, %v3269_v42  ;;  %v770_v19 = vpop.f32.mrb[7].mxu1  ;;  %v843_v20 = vpop.f32.mrb[15].mxu0 }
 0x255   : > { %2489 = vpow2.f32 %v2218_v5  ;;  %v2227_v22 = vmul.f32 -1.442695, %v3323_v12  ;;  %v2229_v23 = vmul.f32 -1.442695, %v3326_v13  ;;  %v3336_v24 = vadd.f32 %v841_v15, %v3274_v0 }
 0x256   : > { %2491 = vpow2.f32 %v2226_v16  ;;  %v2237_v25 = vmul.f32 -1.442695, %v3331_v18  ;;  %v3340_v26 = vadd.f32 %v770_v19, %v3279_v21  ;;  %v3343_v27 = vadd.f32 %v843_v20, %v3282_v43 }
 0x257   : > { %2493 = vpow2.f32 %v2228_v17  ;;  %v570_v4 = vsub.s32 7, %v3258_v36  ;;  %v3362_v10 = vrot.slane %v3262_v39, %v558_v33  ;;  %v3365_v11 = vrot.slane %v3262_v39, %v566_v34 }
 0x258   : > { %v2476_v28 = vpop.eup %2475  ;;  %2495 = vpow2.f32 %v2227_v22  ;;  %v2239_v33 = vmul.f32 -1.442695, %v3336_v24 }
 0x259   : > { %v2478_v29 = vpop.eup %2477  ;;  %v1414_v30 = vadd.f32 1.0, %v2476_v28  ;;  %2497 = vpow2.f32 %v2229_v23  ;;  %v774_v31 = vpop.f32.mrb[8].mxu1 }
 0x25a   : > { %v847_v32 = vpop.f32.mrb[16].mxu0  ;;  %v2480_v35 = vpop.eup %2479  ;;  %v1416_v41 = vadd.f32 1.0, %v2478_v29  ;;  %2499 = vpow2.f32 %v2237_v25  ;;  %v3348_v44 = vadd.f32 %v774_v31, %v3269_v42  ;;  %v3380_v29 = vrot.slane %v3262_v39, %v562_v2 }
 0x25b   : > { %v3351_v45 = vadd.f32 %v847_v32, %v3274_v0  ;;  %v776_v48 = vpop.f32.mrb[9].mxu1  ;;  %v849_v49 = vpop.f32.mrb[17].mxu0  ;;  %2501 = vrcp.f32 %v1414_v30  ;;  %v1415_v53 = vadd.f32 1.0, %v2480_v35  ;;  %v3383_v30 = vrot.slane %v3262_v39, %v570_v4 }
 0x25c   : > { %v2482_v52 = vpop.eup %2481  ;;  %v3354_v54 = vadd.f32 %v776_v48, %v3279_v21  ;;  %v3357_v55 = vadd.f32 %v849_v49, %v3282_v43  ;;  %v778_v58 = vpop.f32.mrb[10].mxu1  ;;  %2503 = vrcp.f32 %v1416_v41  ;;  %v2238_v48 = vmul.f32 -1.442695, %v3340_v26 }
 0x25d   : > { %v851_v59 = vpop.f32.mrb[18].mxu0  ;;  %v2484_v60 = vpop.eup %2483  ;;  %v1417_v61 = vadd.f32 1.0, %v2482_v52  ;;  %2505 = vrcp.f32 %v1415_v53  ;;  %v3368_v16 = vadd.f32 %v778_v58, %v3269_v42 }
 0x25e   : > { %v780_v1 = vpop.f32.mrb[11].mxu1  ;;  %v2486_v5 = vpop.eup %2485  ;;  %v1425_v6 = vadd.f32 1.0, %v2484_v60  ;;  %v3371_v17 = vadd.f32 %v851_v59, %v3274_v0 }
 0x25f   : > { %v853_v7 = vpop.f32.mrb[19].mxu0  ;;  %v2488_v14 = vpop.eup %2487  ;;  %2507 = vrcp.f32 %v1417_v61  ;;  %v1427_v15 = vadd.f32 1.0, %v2486_v5  ;;  %v3374_v22 = vadd.f32 %v780_v1, %v3279_v21  ;;  %v2240_v5 = vmul.f32 -1.442695, %v3343_v27 }
 0x260   : > { %v2490_v19 = vpop.eup %2489  ;;  %2509 = vrcp.f32 %v1425_v6  ;;  %v1426_v20 = vadd.f32 1.0, %v2488_v14  ;;  %v3377_v23 = vadd.f32 %v853_v7, %v3282_v43 }
 0x261   : > { %4044 = vst [vmem:[#allocation13_spill] sm:$0xff] %v3374_v22  ;;  %v2492_v25 = vpop.eup %2491  ;;  %2511 = vrcp.f32 %v1427_v15  ;;  %v1428_v28 = vadd.f32 1.0, %v2490_v19  ;;  %v784_v34 = vpop.f32.mrb[12].mxu1 }
 0x262   : > { %4045 = vst [vmem:[#allocation14_spill] sm:$0xff] %v3377_v23  ;;  %v2494_v31 = vpop.eup %2493  ;;  %2513 = vrcp.f32 %v1426_v20  ;;  %v1436_v32 = vadd.f32 1.0, %v2492_v25  ;;  %v3388_v49 = vadd.f32 %v784_v34, %v3269_v42  ;;  %v857_v52 = vpop.f32.mrb[20].mxu0  ;;  %v2248_v20 = vmul.f32 -1.442695, %v3348_v44 }
 0x263   : > { %v2496_v35 = vpop.eup %2495  ;;  %2515 = vrcp.f32 %v1428_v28  ;;  %v1438_v41 = vadd.f32 1.0, %v2494_v31  ;;  %v786_v53 = vpop.f32.mrb[13].mxu1  ;;  %v3391_v59 = vadd.f32 %v857_v52, %v3274_v0  ;;  %v2250_v25 = vmul.f32 -1.442695, %v3351_v45 }
 0x264   : > { %4046 = vst [vmem:[#allocation15_spill] sm:$0xff] %v3388_v49  ;;  %v2498_v58 = vpop.eup %2497  ;;  %2517 = vrcp.f32 %v1436_v32  ;;  %v1437_v39 = vadd.f32 1.0, %v2496_v35  ;;  %v3394_v60 = vadd.f32 %v786_v53, %v3279_v21  ;;  %v859_v61 = vpop.f32.mrb[21].mxu0  ;;  %v2249_v32 = vmul.f32 -1.442695, %v3354_v54 }
 0x265   : > { %v788_v1 = vpop.f32.mrb[14].mxu1  ;;  %v2500_v2 = vpop.eup %2499  ;;  %2519 = vrcp.f32 %v1438_v41  ;;  %v1439_v4 = vadd.f32 1.0, %v2498_v58  ;;  %v3398_v6 = vadd.f32 %v859_v61, %v3282_v43  ;;  %v2251_v34 = vmul.f32 -1.442695, %v3357_v55 }
 0x266   : > { %v861_v7 = vpop.f32.mrb[22].mxu0  ;;  %v790_v14 = vpop.f32.mrb[15].mxu1  ;;  %2521 = vrcp.f32 %v1437_v39  ;;  %v1447_v19 = vadd.f32 1.0, %v2500_v2  ;;  %v3405_v35 = vadd.f32 %v788_v1, %v3269_v42  ;;  %v2259_v52 = vmul.f32 -1.442695, %v3368_v16 }
 0x267   : > { %4047 = vst [vmem:[#allocation16_spill] sm:$0xff] %v3398_v6  ;;  %v2502_v15 = vpop.eup %2501  ;;  %v863_v28 = vpop.f32.mrb[23].mxu0  ;;  %2523 = vrcp.f32 %v1439_v4  ;;  %v3409_v53 = vadd.f32 %v861_v7, %v3274_v0  ;;  %v3412_v58 = vadd.f32 %v790_v14, %v3279_v21  ;;  %v2261_v61 = vmul.f32 -1.442695, %v3371_v17 }
 0x268   : > { %v2504_v31 = vpop.eup %2503  ;;  %4048 = vst [vmem:[#allocation17_spill] sm:$0xff] %v3405_v35  ;;  %2525 = vrcp.f32 %v1447_v19  ;;  %v2260_v2 = vmul.f32 -1.442695, %v3374_v22  ;;  %v3417_v4 = vadd.f32 %v863_v28, %v3282_v43  ;;  %v1678_v1 = vmul.f32 %v2502_v15, %v3285_v46 }
 0x269   : > { %v2506_v41 = vpop.eup %2505  ;;  %4049 = vst [vmem:[#allocation18_spill] sm:$0xff] %v3412_v58  ;;  %2527 = vpow2.f32 %v2239_v33  ;;  %v2262_v19 = vmul.f32 -1.442695, %v3377_v23  ;;  %v2270_v0 = vmul.f32 -1.442695, %v3388_v49  ;;  %v900_v7 = vpop.f32.mrb[16].mxu1  ;;  %v1680_v33 = vmul.f32 %v2504_v31, %v3288_v47 }
 0x26a   : > { %v2508_v39 = vpop.eup %2507  ;;  %4050 = vst [vmem:[#allocation19_spill] sm:$0xff] %v3417_v4  ;;  %2529 = vpow2.f32 %v2238_v48  ;;  %v973_v21 = vpop.f32.mrb[24].mxu0  ;;  %v3425_v38 = vadd.f32 %v900_v7, %v3362_v10 }
 0x26b   : > { %v2510_v42 = vpop.eup %2509  ;;  %2531 = vpow2.f32 %v2240_v5  ;;  %v902_v43 = vpop.f32.mrb[17].mxu1  ;;  %v3429_v48 = vadd.f32 %v973_v21, %v3365_v11 }
 0x26c   : > { %v2512_v14 = vpop.eup %2511  ;;  %v1689_v40 = vmul.f32 %v2510_v42, %v3299_v56  ;;  %4051 = vst [vmem:[#allocation20_spill] sm:$0xff] %v3425_v38  ;;  %v975_v28 = vpop.f32.mrb[25].mxu0  ;;  %2533 = vpow2.f32 %v2248_v20  ;;  %v3432_v15 = vadd.f32 %v902_v43, %v3380_v29  ;;  %v1679_v56 = vmul.f32 %v2506_v41, %v3291_v50 }
 0x26d   : > { %v2514_v37 = vpop.eup %2513  ;;  %v1691_v46 = vmul.f32 %v2512_v14, %v3302_v57  ;;  %4052 = vst [vmem:[#allocation21_spill] sm:$0xff] %v3429_v48  ;;  %v904_v3 = vpop.f32.mrb[18].mxu1  ;;  %2535 = vpow2.f32 %v2250_v25  ;;  %v1681_v57 = vmul.f32 %v2508_v39, %v3294_v51  ;;  %v2272_v50 = vmul.f32 -1.442695, %v3391_v59 }
 0x26e   : > { %4053 = vst [vmem:[#allocation22_spill] sm:$0xff] %v3432_v15  ;;  %v977_v47 = vpop.f32.mrb[26].mxu0  ;;  %v2516_v31 = vpop.eup %2515  ;;  %v1768_v5 = vadd.f32 %v1689_v40, %v1678_v1  ;;  %v1690_v42 = vmul.f32 %v2514_v37, %v3307_v62  ;;  %2537 = vpow2.f32 %v2249_v32  ;;  %v3442_v62 = vadd.f32 %v975_v28, %v3383_v30 }
 0x26f   : > { %v906_v7 = vpop.f32.mrb[19].mxu1  ;;  %v979_v49 = vpop.f32.mrb[27].mxu0  ;;  %v1794_v20 = vadd.f32 %v1691_v46, %v1680_v33  ;;  %v1692_v21 = vmul.f32 %v2516_v31, %v3310_v63  ;;  %2539 = vpow2.f32 %v2251_v34  ;;  %v3446_v32 = vadd.f32 %v904_v3, %v3362_v10 }
 0x270   : > { %v2518_v23 = vpop.eup %2517  ;;  %v1781_v43 = vadd.f32 %v1690_v42, %v1679_v56  ;;  %2541 = vpow2.f32 %v2259_v52  ;;  %4054 = vst [vmem:[#allocation23_spill] sm:$0xff] %v3442_v62  ;;  %v2986_v39 = vmov 1966171168  }
 0x271   : > { %v2520_v14 = vpop.eup %2519  ;;  %v1700_v22 = vmul.f32 %v2518_v23, %v3317_v8  ;;  %v1807_v41 = vadd.f32 %v1692_v21, %v1681_v57  ;;  %2543 = vpow2.f32 %v2261_v61  ;;  %v910_v52 = vpop.f32.mrb[20].mxu1 }
 0x272   : > { %v2522_v40 = vpop.eup %2521  ;;  %v1702_v37 = vmul.f32 %v2520_v14, %v3320_v9  ;;  %2545 = vpow2.f32 %v2260_v2  ;;  %v1938_v9 = vunpack.c.l.s4 %v2986_v39  ;;  %v983_v1 = vpop.f32.mrb[28].mxu0 }
 0x273   : > { %v2524_v51 = vpop.eup %2523  ;;  %v1769_v25 = vadd.f32 %v1768_v5, %v1700_v22  ;;  %v1701_v63 = vmul.f32 %v2522_v40, %v3323_v12  ;;  %2547 = vpow2.f32 %v2262_v19  ;;  %v912_v12 = vpop.f32.mrb[21].mxu1 }
 0x274   : > { %v2526_v8 = vpop.eup %2525  ;;  %v3448_v23 = vadd.f32 %v1794_v20, %v1702_v37  ;;  %v1703_v34 = vmul.f32 %v2524_v51, %v3326_v13  ;;  %v985_v61 = vpop.f32.mrb[29].mxu0  ;;  %2549 = vpow2.f32 %v2270_v0  ;;  %v3457_v13 = vadd.f32 %v977_v47, %v3365_v11 }
 0x275   : > { %v2528_v33 = vpop.eup %2527  ;;  %v3451_v28 = vadd.f32 %v1781_v43, %v1701_v63  ;;  %v1711_v22 = vmul.f32 %v2526_v8, %v3331_v18  ;;  %v914_v2 = vpop.f32.mrb[22].mxu1  ;;  %2551 = vpow2.f32 %v2272_v50  ;;  %v3462_v18 = vadd.f32 %v906_v7, %v3380_v29 }
 0x276   : > { %v2530_v3 = vpop.eup %2529  ;;  %v3454_v46 = vadd.f32 %v1807_v41, %v1703_v34  ;;  %v1449_v31 = vadd.f32 1.0, %v2528_v33  ;;  %v987_v56 = vpop.f32.mrb[30].mxu0  ;;  %v1939_v43 = vunpack.c.0.s8 %v1938_v9  ;;  %v3465_v0 = vadd.f32 %v979_v49, %v3383_v30 }
 0x277   : > { %v2532_v5 = vpop.eup %2531  ;;  %v3459_v42 = vadd.f32 %v1769_v25, %v1711_v22  ;;  %v1448_v57 = vadd.f32 1.0, %v2530_v3  ;;  %v916_v19 = vpop.f32.mrb[23].mxu1  ;;  %v3468_v41 = vadd.f32 %v910_v52, %v3362_v10  ;;  %v3471_v7 = vadd.f32 %v983_v1, %v3365_v11 }
 0x278   : > { %v989_v20 = vpop.f32.mrb[31].mxu0  ;;  %v2534_v21 = vpop.eup %2533  ;;  %2553 = vrcp.f32 %v1449_v31  ;;  %v1450_v14 = vadd.f32 1.0, %v2532_v5  ;;  %v3474_v63 = vadd.f32 %v912_v12, %v3380_v29  ;;  %v3477_v34 = vsub.s32 %v1939_v43, %v3258_v36 }
 0x279   : > { %v2536_v47 = vpop.eup %2535  ;;  %2555 = vrcp.f32 %v1448_v57  ;;  %v1458_v40 = vadd.f32 1.0, %v2534_v21  ;;  %v3480_v39 = vadd.f32 %v985_v61, %v3383_v30  ;;  %v920_v9 = vpop.f32.mrb[24].mxu1  ;;  %v2271_v22 = vmul.f32 -1.442695, %v3394_v60 }
 0x27a   : > { %v2538_v37 = vpop.eup %2537  ;;  %2557 = vrcp.f32 %v1450_v14  ;;  %v1460_v50 = vadd.f32 1.0, %v2536_v47  ;;  %4055 = vst [vmem:[#allocation24_spill] sm:$0xff] %v3477_v34  ;;  %v993_v52 = vpop.f32.mrb[32].mxu0  ;;  %v3484_v3 = vadd.f32 %v914_v2, %v3362_v10  ;;  %v2273_v21 = vmul.f32 -1.442695, %v3398_v6 }
 0x27b   : > { %v2540_v51 = vpop.eup %2539  ;;  %2559 = vrcp.f32 %v1458_v40  ;;  %v1459_v25 = vadd.f32 1.0, %v2538_v37  ;;  %v922_v12 = vpop.f32.mrb[25].mxu1  ;;  %v3488_v61 = vadd.f32 %v987_v56, %v3365_v11  ;;  %v2281_v37 = vmul.f32 -1.442695, %v3405_v35 }
 0x27c   : > { %v2542_v49 = vpop.eup %2541  ;;  %2561 = vrcp.f32 %v1460_v50  ;;  %v1461_v8 = vadd.f32 1.0, %v2540_v51  ;;  %v995_v31 = vpop.f32.mrb[33].mxu0  ;;  %v3492_v2 = vadd.f32 %v916_v19, %v3380_v29  ;;  %v2283_v56 = vmul.f32 -1.442695, %v3409_v53 }
 0x27d   : > { %v2544_v33 = vpop.eup %2543  ;;  %2563 = vrcp.f32 %v1459_v25  ;;  %v1469_v1 = vadd.f32 1.0, %v2542_v49  ;;  %v924_v14 = vpop.f32.mrb[26].mxu1  ;;  %v3504_v19 = vadd.f32 %v920_v9, %v3362_v10  ;;  %v2284_v6 = vmul.f32 -1.442695, %v3417_v4 }
 0x27e   : > { %v2546_v5 = vpop.eup %2545  ;;  %2565 = vrcp.f32 %v1461_v8  ;;  %v1471_v57 = vadd.f32 1.0, %v2544_v33  ;;  %v997_v43 = vpop.f32.mrb[34].mxu0  ;;  %4056 = vst [vmem:[#allocation25_spill] sm:$0xff] %v3492_v2  ;;  %v3500_v8 = vadd.f32 %v989_v20, %v3383_v30 }
 0x27f   : > { %v2548_v47 = vpop.eup %2547  ;;  %2567 = vrcp.f32 %v1469_v1  ;;  %v1470_v40 = vadd.f32 1.0, %v2546_v5  ;;  %v3494_v50 = vpop.f32.mrb[27].mxu1  ;;  %v2282_v5 = vmul.f32 -1.442695, %v3412_v58  ;;  %4057 = vst [vmem:[#allocation26_spill] sm:$0xff] %v3504_v19 }
 0x280   : > { %v3496_v51 = vpop.f32.mrb[35].mxu0  ;;  %v2550_v25 = vpop.eup %2549  ;;  %2569 = vrcp.f32 %v1471_v57  ;;  %v1472_v49 = vadd.f32 1.0, %v2548_v47  ;;  %v3508_v57 = vadd.f32 %v993_v52, %v3365_v11 }
 0x281   : > { %v2552_v33 = vpop.eup %2551  ;;  %2571 = vrcp.f32 %v1470_v40  ;;  %v1480_v1 = vadd.f32 1.0, %v2550_v25  ;;  %v2208_v40 = vmul.f32 -1.442695, %v3425_v38  ;;  %v3513_v25 = vadd.f32 %v922_v12, %v3380_v29  ;;  %v3520_v52 = vpop.f32.mrb[28].mxu1 }
 0x282   : > { %v2554_v34 = vpop.eup %2553  ;;  %2573 = vrcp.f32 %v1472_v49  ;;  %v1482_v35 = vadd.f32 1.0, %v2552_v33  ;;  %4058 = vst [vmem:[#allocation27_spill] sm:$0xff] %v3508_v57  ;;  %v2210_v49 = vmul.f32 -1.442695, %v3429_v48  ;;  %v3518_v33 = vadd.f32 %v995_v31, %v3383_v30  ;;  %v3522_v4 = vpop.f32.mrb[36].mxu0 }
 0x283   : > { %v2556_v47 = vpop.eup %2555  ;;  %v1713_v20 = vmul.f32 %v2554_v34, %v3336_v24  ;;  %2575 = vrcp.f32 %v1480_v1  ;;  %4059 = vst [vmem:[#allocation28_spill] sm:$0xff] %v3513_v25  ;;  %v2209_v12 = vmul.f32 -1.442695, %v3432_v15  ;;  %v3527_v38 = vpop.f32.mrb[29].mxu1  ;;  %v2211_v48 = vmul.f32 -1.442695, %v3442_v62 }
 0x284   : > { %v2558_v58 = vpop.eup %2557  ;;  %v1712_v9 = vmul.f32 %v2556_v47, %v3340_v26  ;;  %2577 = vrcp.f32 %v1482_v35  ;;  %4060 = vst [vmem:[#allocation29_spill] sm:$0xff] %v3518_v33  ;;  %v3529_v26 = vpop.f32.mrb[37].mxu0 }
 0x285   : > { %v2560_v24 = vpop.eup %2559  ;;  %v1796_v34 = vadd.f32 %v3448_v23, %v1713_v20  ;;  %v1714_v1 = vmul.f32 %v2558_v58, %v3343_v27  ;;  %2579 = vpow2.f32 %v2271_v22  ;;  %v3534_v33 = vpop.f32.mrb[30].mxu1  ;;  %v3541_v20 = vadd.f32 %v924_v14, %v3362_v10 }
 0x286   : > { %v2562_v35 = vpop.eup %2561  ;;  %v1783_v31 = vadd.f32 %v3451_v28, %v1712_v9  ;;  %v1722_v47 = vmul.f32 %v2560_v24, %v3348_v44  ;;  %2581 = vpow2.f32 %v2273_v21  ;;  %v3536_v23 = vpop.f32.mrb[38].mxu0  ;;  %v3550_v24 = vadd.f32 %v997_v43, %v3365_v11 }
 0x287   : > { %v2564_v27 = vpop.eup %2563  ;;  %v1809_v58 = vadd.f32 %v3454_v46, %v1714_v1  ;;  %v1724_v22 = vmul.f32 %v2562_v35, %v3351_v45  ;;  %2583 = vpow2.f32 %v2281_v37  ;;  %4061 = vst [vmem:[#allocation30_spill] sm:$0xff] %v3541_v20  ;;  %v3543_v15 = vpop.f32.mrb[31].mxu1  ;;  %v2219_v14 = vmul.f32 -1.442695, %v3446_v32 }
 0x288   : > { %v3545_v28 = vpop.f32.mrb[39].mxu0  ;;  %v2566_v44 = vpop.eup %2565  ;;  %v1771_v21 = vadd.f32 %v3459_v42, %v1722_v47  ;;  %v1723_v9 = vmul.f32 %v2564_v27, %v3354_v54  ;;  %2585 = vpow2.f32 %v2283_v56  ;;  %4062 = vst [vmem:[#allocation31_spill] sm:$0xff] %v3550_v24  ;;  %v2221_v42 = vmul.f32 -1.442695, %v3457_v13  ;;  %v4063_v27 = vld [vmem:[#allocation13_spill] sm:$0xff] }
 0x289   : > { %v2568_v46 = vpop.eup %2567  ;;  %v1797_v1 = vadd.f32 %v1796_v34, %v1724_v22  ;;  %v1725_v45 = vmul.f32 %v2566_v44, %v3357_v55  ;;  %2587 = vpow2.f32 %v2282_v5  ;;  %v3559_v43 = vadd.f32 %v3494_v50, %v3380_v29  ;;  %v537_v55 = vld [vmem:[#allocation7 + $0x8] sm:$0x7] }
 0x28a   : > { %v2570_v37 = vpop.eup %2569  ;;  %v1784_v35 = vadd.f32 %v1783_v31, %v1723_v9  ;;  %v1733_v62 = vmul.f32 %v2568_v46, %v3368_v16  ;;  %2589 = vpow2.f32 %v2284_v6  ;;  %v3564_v16 = vadd.f32 %v3496_v51, %v3383_v30  ;;  %v3566_v6 = vpop.f32.mrb[32].mxu1  ;;  %v4065_v51 = vld [vmem:[#allocation15_spill] sm:$0xff] }
 0x28b   : > { %v2572_v47 = vpop.eup %2571  ;;  %v1810_v54 = vadd.f32 %v1809_v58, %v1725_v45  ;;  %v1735_v56 = vmul.f32 %v2570_v37, %v3371_v17  ;;  %2591 = vpow2.f32 %v2208_v40  ;;  %v3568_v31 = vpop.f32.mrb[40].mxu0  ;;  %v4064_v58 = vld [vmem:[#allocation14_spill] sm:$0xff]  ;;  %v2220_v50 = vmul.f32 -1.442695, %v3462_v18 }
 0x28c   : > { %v2574_v5 = vpop.eup %2573  ;;  %v1772_v34 = vadd.f32 %v1771_v21, %v1733_v62  ;;  %v1734_v22 = vmul.f32 %v2572_v47, %v4063_v27  ;;  %2593 = vpow2.f32 %v2210_v49  ;;  %v3572_v9 = vpop.f32.mrb[33].mxu1  ;;  %v4066_v45 = vsub.s32 0, %v3258_v36 }
 0x28d   : > { %v2576_v17 = vpop.eup %2575  ;;  %v1798_v40 = vadd.f32 %v1797_v1, %v1735_v56  ;;  %v1736_v44 = vmul.f32 %v2574_v5, %v4064_v58  ;;  %2595 = vpow2.f32 %v2209_v12  ;;  %v3574_v62 = vpop.f32.mrb[41].mxu0 }
 0x28e   : > { %v2578_v49 = vpop.eup %2577  ;;  %v3576_v21 = vadd.f32 %v1784_v35, %v1734_v22  ;;  %v1744_v46 = vmul.f32 %v2576_v17, %v4065_v51  ;;  %2597 = vpow2.f32 %v2211_v48  ;;  %v3581_v37 = vrot.slane %v537_v55, %v4066_v45  ;;  %v3583_v1 = vpop.f32.mrb[34].mxu1 }
 0x28f   : > { %v3585_v47 = vpop.f32.mrb[42].mxu0  ;;  %v2580_v12 = vpop.eup %2579  ;;  %v3587_v56 = vadd.f32 %v1810_v54, %v1736_v44  ;;  %v1746_v5 = vmul.f32 %v2578_v49, %v3391_v59  ;;  %2599 = vpow2.f32 %v2219_v14  ;;  %v3592_v35 = vadd.f32 %v3520_v52, %v3362_v10 }
 0x290   : > { %v3594_v27 = vpop.f32.mrb[35].mxu1  ;;  %v3596_v48 = vpop.f32.mrb[43].mxu0  ;;  %v3598_v17 = vadd.f32 %v1772_v34, %v1744_v46  ;;  %v1481_v58 = vadd.f32 1.0, %v2580_v12  ;;  %2601 = vpow2.f32 %v2221_v42  ;;  %v3602_v54 = vadd.f32 %v3522_v4, %v3365_v11 }
 0x291   : > { %v2582_v22 = vpop.eup %2581  ;;  %v3604_v59 = vadd.f32 %v1798_v40, %v1746_v5  ;;  %2603 = vpow2.f32 %v2220_v50  ;;  %v4067_v52 = vsub.s32 2, %v3258_v36  ;;  %v3612_v34 = vadd.f32 %v3527_v38, %v3380_v29 }
 0x292   : > { %v2584_v44 = vpop.eup %2583  ;;  %v1483_v14 = vadd.f32 1.0, %v2582_v22  ;;  %2605 = vrcp.f32 %v1481_v58  ;;  %v4068_v42 = vsub.s32 1, %v3258_v36  ;;  %v3620_v50 = vadd.f32 %v3529_v26, %v3383_v30  ;;  %v3635_v58 = vpop.f32.mrb[44].mxu0 }
 0x293   : > { %v3608_v49 = vrot.slane %v537_v55, %v4067_v52  ;;  %v2586_v51 = vpop.eup %2585  ;;  %v1491_v45 = vadd.f32 1.0, %v2584_v44  ;;  %v3624_v12 = vadd.f32 %v3534_v33, %v3362_v10  ;;  %v3627_v38 = vmul.f32 -1.442695, %v3465_v0 }
 0x294   : > { %v3616_v4 = vrot.slane %v537_v55, %v4068_v42  ;;  %v2588_v46 = vpop.eup %2587  ;;  %2607 = vrcp.f32 %v1483_v14  ;;  %v1493_v40 = vadd.f32 1.0, %v2586_v51  ;;  %v3631_v36 = vadd.f32 %v3536_v23, %v3365_v11  ;;  %v3633_v55 = vpop.f32.mrb[36].mxu1 }
 0x295   : > { %4069 = vst [vmem:[#allocation13_spill] sm:$0xff] %v3624_v12  ;;  %v2590_v5 = vpop.eup %2589  ;;  %2609 = vrcp.f32 %v1491_v45  ;;  %v1492_v22 = vadd.f32 1.0, %v2588_v46  ;;  %v3638_v10 = vmul.f32 -1.442695, %v3468_v41  ;;  %v3641_v33 = vmul.f32 -1.442695, %v3471_v7 }
 0x296   : > { %4070 = vst [vmem:[#allocation14_spill] sm:$0xff] %v3631_v36  ;;  %v2592_v26 = vpop.eup %2591  ;;  %2611 = vrcp.f32 %v1493_v40  ;;  %v1494_v44 = vadd.f32 1.0, %v2590_v5  ;;  %v3643_v14 = vpop.f32.mrb[37].mxu1  ;;  %v3646_v11 = vmul.f32 -1.442695, %v3474_v63  ;;  %v3650_v23 = vadd.f32 %v3543_v15, %v3380_v29 }
 0x297   : > { %v2594_v52 = vpop.eup %2593  ;;  %2613 = vrcp.f32 %v1492_v22  ;;  %v1418_v51 = vadd.f32 1.0, %v2592_v26  ;;  %v3652_v45 = vpop.f32.mrb[45].mxu0  ;;  %v3658_v5 = vadd.f32 %v3545_v28, %v3383_v30  ;;  %v3662_v22 = vadd.f32 %v3566_v6, %v3581_v37 }
 0x298   : > { %4071 = vst [vmem:[#allocation15_spill] sm:$0xff] %v3650_v23  ;;  %v3654_v42 = vpop.f32.mrb[38].mxu1  ;;  %v2596_v46 = vpop.eup %2595  ;;  %2615 = vrcp.f32 %v1494_v44  ;;  %v1420_v40 = vadd.f32 1.0, %v2594_v52  ;;  %v2233_v23 = vmul.f32 -1.442695, %v3480_v39  ;;  %v3671_v44 = vadd.f32 %v3568_v31, %v3608_v49 }
 0x299   : > { %4072 = vst [vmem:[#allocation32_spill] sm:$0xff] %v3658_v5  ;;  %4073 = vst [vmem:[#allocation33_spill] sm:$0xff] %v3662_v22  ;;  %v3664_v26 = vpop.f32.mrb[46].mxu0  ;;  %v3666_v36 = vpop.f32.mrb[39].mxu1  ;;  %2617 = vrcp.f32 %v1418_v51  ;;  %v1419_v15 = vadd.f32 1.0, %v2596_v46  ;;  %v3684_v31 = vadd.f32 %v3572_v9, %v3616_v4  ;;  %v3699_v9 = vadd.f32 %v3585_v47, %v3608_v49 }
 0x29a   : > { %v2598_v29 = vpop.eup %2597  ;;  %4074 = vst [vmem:[#allocation34_spill] sm:$0xff] %v3671_v44  ;;  %v3673_v52 = vpop.f32.mrb[47].mxu0  ;;  %2619 = vrcp.f32 %v1420_v40  ;;  %v2241_v6 = vmul.f32 -1.442695, %v3484_v3  ;;  %v3677_v22 = vmul.f32 -1.442695, %v3488_v61  ;;  %v3688_v40 = vadd.f32 %v3574_v62, %v3608_v49 }
 0x29b   : > { %v2600_v30 = vpop.eup %2599  ;;  %v1421_v28 = vadd.f32 1.0, %v2598_v29  ;;  %2621 = vrcp.f32 %v1419_v15  ;;  %v3680_v46 = vmul.f32 -1.442695, %v3492_v2  ;;  %4075 = vst [vmem:[#allocation35_spill] sm:$0xff] %v3684_v31  ;;  %v3692_v29 = vadd.f32 %v3583_v1, %v3581_v37  ;;  %4078 = vst [vmem:[#allocation38_spill] sm:$0xff] %v3699_v9 }
 0x29c   : > { %v2602_v5 = vpop.eup %2601  ;;  %v1429_v51 = vadd.f32 1.0, %v2600_v30  ;;  %4076 = vst [vmem:[#allocation36_spill] sm:$0xff] %v3688_v40  ;;  %v3695_v2 = vmul.f32 -1.442695, %v3500_v8  ;;  %v3705_v40 = vmul.f32 -1.442695, %v3504_v19  ;;  %v3718_v9 = vadd.f32 %v3594_v27, %v3616_v4 }
 0x29d   : > { %v2604_v44 = vpop.eup %2603  ;;  %2623 = vrcp.f32 %v1421_v28  ;;  %v1431_v12 = vadd.f32 1.0, %v2602_v5  ;;  %4077 = vst [vmem:[#allocation37_spill] sm:$0xff] %v3692_v29  ;;  %v3701_v28 = vpop.f32.mrb[40].mxu1  ;;  %v3708_v1 = vmul.f32 -1.442695, %v3508_v57  ;;  %v4079_v29 = vld [vmem:[#allocation16_spill] sm:$0xff] }
 0x29e   : > { %v2606_v15 = vpop.eup %2605  ;;  %2625 = vrcp.f32 %v1429_v51  ;;  %v1430_v30 = vadd.f32 1.0, %v2604_v44  ;;  %v3710_v44 = vpop.f32.mrb[41].mxu1  ;;  %v3714_v47 = vmul.f32 -1.442695, %v3513_v25  ;;  %4080 = vst [vmem:[#allocation16_spill] sm:$0xff] %v3718_v9  ;;  %v4082_v57 = vld [vmem:[#allocation17_spill] sm:$0xff] }
 0x29f   : > { %v2608_v5 = vpop.eup %2607  ;;  %v1745_v62 = vmul.f32 %v2606_v15, %v3394_v60  ;;  %2627 = vrcp.f32 %v1431_v12  ;;  %v3720_v60 = vpop.f32.mrb[42].mxu1  ;;  %v4084_v9 = vld [vmem:[#allocation29_spill] sm:$0xff] }
 0x2a0   : > { %v2610_v51 = vpop.eup %2609  ;;  %v1747_v31 = vmul.f32 %v2608_v5, %v4079_v29  ;;  %2629 = vrcp.f32 %v1430_v30  ;;  %4081 = vst [vmem:[#allocation39_spill] sm:$0xff] %v3720_v60  ;;  %v3727_v29 = vadd.f32 %v3596_v48, %v3608_v49  ;;  %v3729_v30 = vpop.f32.mrb[43].mxu1  ;;  %v3735_v60 = vmul.f32 -1.442695, %v4084_v9  ;;  %v4091_v9 = vld [vmem:[#allocation22_spill] sm:$0xff] }
 0x2a1   : > { %v2612_v12 = vpop.eup %2611  ;;  %v1786_v15 = vadd.f32 %v3576_v21, %v1745_v62  ;;  %v1755_v19 = vmul.f32 %v2610_v51, %v4082_v57  ;;  %2631 = vpow2.f32 %v3627_v38  ;;  %v4085_v38 = vld [vmem:[#allocation18_spill] sm:$0xff]  ;;  %v3741_v48 = vmul.f32 -1.442695, %v3541_v20  ;;  %v4088_v20 = vld [vmem:[#allocation20_spill] sm:$0xff] }
 0x2a2   : > { %4083 = vst [vmem:[#allocation17_spill] sm:$0xff] %v3727_v29  ;;  %v2614_v5 = vpop.eup %2613  ;;  %v1812_v25 = vadd.f32 %v3587_v56, %v1747_v31  ;;  %v1757_v27 = vmul.f32 %v2612_v12, %v3409_v53  ;;  %2633 = vpow2.f32 %v3638_v10  ;;  %v4086_v31 = vld [vmem:[#allocation19_spill] sm:$0xff]  ;;  %v3748_v10 = vadd.f32 %v3633_v55, %v3581_v37 }
 0x2a3   : > { %v2616_v21 = vpop.eup %2615  ;;  %v1774_v57 = vadd.f32 %v3598_v17, %v1755_v19  ;;  %v1756_v62 = vmul.f32 %v2614_v5, %v4085_v38  ;;  %2635 = vpow2.f32 %v3641_v33  ;;  %v3751_v33 = vmul.f32 -1.442695, %v3550_v24 }
 0x2a4   : > { %v2618_v51 = vpop.eup %2617  ;;  %v1800_v56 = vadd.f32 %v3604_v59, %v1757_v27  ;;  %v1758_v53 = vmul.f32 %v2616_v21, %v4086_v31  ;;  %2637 = vpow2.f32 %v3646_v11  ;;  %4087 = vst [vmem:[#allocation18_spill] sm:$0xff] %v3748_v10  ;;  %v3754_v27 = vpop.f32.mrb[44].mxu1  ;;  %v4089_v31 = vld [vmem:[#allocation21_spill] sm:$0xff] }
 0x2a5   : > { %v2620_v12 = vpop.eup %2619  ;;  %v1775_v19 = vrot.slane %v1774_v57, 4  ;;  %v1787_v17 = vadd.f32 %v1786_v15, %v1756_v62  ;;  %2639 = vpow2.f32 %v2233_v23  ;;  %v1682_v59 = vmul.f32 %v2618_v51, %v4088_v20  ;;  %v3760_v23 = vpop.f32.mrb[45].mxu1 }
 0x2a6   : > { %v2622_v5 = vpop.eup %2621  ;;  %v1801_v38 = vrot.slane %v1800_v56, 4  ;;  %v1813_v29 = vadd.f32 %v1812_v25, %v1758_v53  ;;  %2641 = vpow2.f32 %v2241_v6  ;;  %v1684_v10 = vmul.f32 %v2620_v12, %v4089_v31  ;;  %4090 = vst [vmem:[#allocation19_spill] sm:$0xff] %v3760_v23  ;;  %v3764_v20 = vpop.f32.mrb[46].mxu1 }
 0x2a7   : > { %v3756_v11 = vpop.eup %2623  ;;  %v1776_v21 = vadd.f32 %v1775_v19, %v1774_v57  ;;  %v1788_v55 = vrot.slane %v1787_v17, 4  ;;  %2643 = vpow2.f32 %v3677_v22  ;;  %v1683_v25 = vmul.f32 %v2622_v5, %v4091_v9  ;;  %4092 = vst [vmem:[#allocation20_spill] sm:$0xff] %v3764_v20  ;;  %v3768_v12 = vpop.f32.mrb[47].mxu1 }
 0x2a8   : > { %v2626_v15 = vpop.eup %2625  ;;  %v1802_v62 = vadd.f32 %v1801_v38, %v1800_v56  ;;  %v1814_v24 = vrot.slane %v1813_v29, 4  ;;  %2645 = vpow2.f32 %v3680_v46  ;;  %4093 = vst [vmem:[#allocation21_spill] sm:$0xff] %v3768_v12 }
 0x2a9   : > { %v2628_v6 = vpop.eup %2627  ;;  %v1777_v51 = vrot.slane %v1776_v21, 2  ;;  %v1789_v53 = vadd.f32 %v1788_v55, %v1787_v17  ;;  %v1693_v57 = vmul.f32 %v2626_v15, %v3446_v32  ;;  %2647 = vpow2.f32 %v3695_v2 }
 0x2aa   : > { %v2630_v22 = vpop.eup %2629  ;;  %v1803_v19 = vrot.slane %v1802_v62, 2  ;;  %v1815_v31 = vadd.f32 %v1814_v24, %v1813_v29  ;;  %v1695_v56 = vmul.f32 %v2628_v6, %v3457_v13  ;;  %2649 = vpow2.f32 %v3705_v40 }
 0x2ab   : > { %v2632_v9 = vpop.eup %2631  ;;  %v1778_v46 = vadd.f32 %v1777_v51, %v1776_v21  ;;  %v1790_v5 = vrot.slane %v1789_v53, 2  ;;  %v3772_v38 = vadd.f32 %v1693_v57, %v1682_v59  ;;  %v1694_v17 = vmul.f32 %v2630_v22, %v3462_v18 }
 0x2ac   : > { %v2634_v55 = vpop.eup %2633  ;;  %v1804_v32 = vadd.f32 %v1803_v19, %v1802_v62  ;;  %v1816_v15 = vrot.slane %v1815_v31, 2  ;;  %v3775_v2 = vadd.f32 %v1695_v56, %v1684_v10  ;;  %v1432_v12 = vadd.f32 1.0, %v2632_v9 }
 0x2ad   : > { %v2636_v20 = vpop.eup %2635  ;;  %v1779_v23 = vrot.slane %v1778_v46, 1  ;;  %v1791_v24 = vadd.f32 %v1790_v5, %v1789_v53  ;;  %v3777_v29 = vadd.f32 %v1694_v17, %v1683_v25  ;;  %v1440_v13 = vadd.f32 1.0, %v2634_v55 }
 0x2ae   : > { %v2638_v40 = vpop.eup %2637  ;;  %v1805_v6 = vrot.slane %v1804_v32, 1  ;;  %v1817_v21 = vadd.f32 %v1816_v15, %v1815_v31  ;;  %2651 = vrcp.f32 %v1432_v12  ;;  %v1442_v59 = vadd.f32 1.0, %v2636_v20 }
 0x2af   : > { %v2640_v51 = vpop.eup %2639  ;;  %v1780_v57 = vadd.f32 %v1779_v23, %v1778_v46  ;;  %v1792_v18 = vrot.slane %v1791_v24, 1  ;;  %2653 = vrcp.f32 %v1440_v13  ;;  %v1441_v62 = vadd.f32 1.0, %v2638_v40 }
 0x2b0   : > { %v2642_v22 = vpop.eup %2641  ;;  %v1806_v10 = vadd.f32 %v1805_v6, %v1804_v32  ;;  %v1818_v19 = vrot.slane %v1817_v21, 1  ;;  %2655 = vrcp.f32 %v1442_v59  ;;  %v1443_v56 = vadd.f32 1.0, %v2640_v51 }
 0x2b1   : > { %v2644_v9 = vpop.eup %2643  ;;  %v1911_v53 = vmul.f32 0.015625, %v1780_v57  ;;  %v1793_v25 = vadd.f32 %v1792_v18, %v1791_v24  ;;  %2657 = vrcp.f32 %v1441_v62  ;;  %v1451_v5 = vadd.f32 1.0, %v2642_v22  ;;  %v4094_v62 = vld [vmem:[#allocation24_spill] sm:$0xff] }
 0x2b2   : > { %v2646_v17 = vpop.eup %2645  ;;  %v1913_v55 = vmul.f32 0.015625, %v1806_v10  ;;  %v1819_v31 = vadd.f32 %v1818_v19, %v1817_v21  ;;  %2659 = vrcp.f32 %v1443_v56  ;;  %v1453_v20 = vadd.f32 1.0, %v2644_v9 }
 0x2b3   : > { %v2648_v12 = vpop.eup %2647  ;;  %v1912_v23 = vmul.f32 0.015625, %v1793_v25  ;;  %2661 = vrcp.f32 %v1451_v5  ;;  %v1452_v46 = vadd.f32 1.0, %v2646_v17  ;;  %v2264_v15 = vmul.f32 -1.442695, %v3559_v43 }
 0x2b4   : > { %v2650_v32 = vpop.eup %2649  ;;  %v1914_v13 = vmul.f32 0.015625, %v1819_v31  ;;  %2663 = vrcp.f32 %v1453_v20  ;;  %v1454_v40 = vadd.f32 1.0, %v2648_v12  ;;  %v3782_v24 = vadd.f32 %v3635_v58, %v3608_v49 }
 0x2b5   : > { %v1933_v6 = vcombine.low %v1911_v53, %v1912_v23  ;;  %2665 = vrcp.f32 %v1452_v46  ;;  %v1462_v59 = vadd.f32 1.0, %v2650_v32  ;;  %v3786_v21 = vadd.f32 %v3643_v14, %v3616_v4  ;;  %v4095_v53 = vld [vmem:[#allocation23_spill] sm:$0xff] }
 0x2b6   : > { %v1934_v51 = vcombine.low %v1913_v55, %v1914_v13  ;;  %2667 = vrcp.f32 %v1454_v40  ;;  %v2266_v57 = vmul.f32 -1.442695, %v3564_v16  ;;  %v3791_v18 = vadd.f32 %v3652_v45, %v3608_v49 }
 0x2b7   : > { %v1943_v22 = vrot.slane %v1933_v6, %v4094_v62  ;;  %2669 = vrcp.f32 %v1462_v59  ;;  %v2274_v58 = vmul.f32 -1.442695, %v3592_v35  ;;  %v3797_v10 = vadd.f32 %v3654_v42, %v3581_v37 }
 0x2b8   : > { %v2652_v19 = vpop.eup %2651  ;;  %v1950_v14 = vrot.slane %v1934_v51, %v4094_v62  ;;  %2671 = vpow2.f32 %v3708_v1  ;;  %v2276_v56 = vmul.f32 -1.442695, %v3602_v54  ;;  %v3804_v45 = vadd.f32 %v3664_v26, %v3608_v49 }
 0x2b9   : > { %v2654_v9 = vpop.eup %2653  ;;  %v1685_v25 = vmul.f32 %v3756_v11, %v4095_v53  ;;  %v1696_v5 = vmul.f32 %v2652_v19, %v3465_v0  ;;  %2673 = vpow2.f32 %v3714_v47  ;;  %v3812_v42 = vadd.f32 %v3666_v36, %v3616_v4 }
 0x2ba   : > { %v2656_v17 = vpop.eup %2655  ;;  %v1965_v1 = vcombine.low %v1943_v22, %v1950_v14  ;;  %v1704_v55 = vmul.f32 %v2654_v9, %v3468_v41  ;;  %2675 = vpow2.f32 %v3735_v60  ;;  %v2275_v26 = vmul.f32 -1.442695, %v3612_v34  ;;  %v4100_v14 = vld [vmem:[#allocation39_spill] sm:$0xff] }
 0x2bb   : > { %v2658_v31 = vpop.eup %2657  ;;  %v1859_v20 = vadd.f32 %v1696_v5, %v1685_v25  ;;  %v1706_v11 = vmul.f32 %v2656_v17, %v3471_v7  ;;  %2677 = vpow2.f32 %v3741_v48  ;;  %v2277_v0 = vmul.f32 -1.442695, %v3620_v50 }
 0x2bc   : > { %v2660_v47 = vpop.eup %2659  ;;  %v3821_v36 = vrot.slane %v1965_v1, %v4094_v62  ;;  %v1821_v12 = vadd.f32 %v3772_v38, %v1704_v55  ;;  %v1705_v41 = vmul.f32 %v2658_v31, %v3474_v63  ;;  %2679 = vpow2.f32 %v3751_v33 }
 0x2bd   : > { %v2662_v60 = vpop.eup %2661  ;;  %v1847_v23 = vadd.f32 %v3775_v2, %v1706_v11  ;;  %v1707_v46 = vmul.f32 %v2660_v47, %v3480_v39  ;;  %2681 = vpow2.f32 %v2264_v15  ;;  %v3830_v7 = vadd.f32 %v3673_v52, %v3608_v49  ;;  %v4096_v39 = vld [vmem:[#allocation13_spill] sm:$0xff]  ;;  %v4101_v11 = vld [vmem:[#allocation19_spill] sm:$0xff]  ;;  %v4102_v47 = vld [vmem:[#allocation20_spill] sm:$0xff] }
 0x2be   : > { %v2664_v48 = vpop.eup %2663  ;;  %v1834_v32 = vadd.f32 %v3777_v29, %v1705_v41  ;;  %v1715_v13 = vmul.f32 %v2662_v60, %v3484_v3  ;;  %2683 = vpow2.f32 %v2266_v57  ;;  %v3836_v63 = vadd.f32 %v3701_v28, %v3581_v37  ;;  %v4097_v52 = vld [vmem:[#allocation25_spill] sm:$0xff]  ;;  %v4098_v29 = vld [vmem:[#allocation14_spill] sm:$0xff] }
 0x2bf   : > { %v2666_v33 = vpop.eup %2665  ;;  %v1860_v38 = vadd.f32 %v1859_v20, %v1707_v46  ;;  %v1717_v2 = vmul.f32 %v2664_v48, %v3488_v61  ;;  %2685 = vpow2.f32 %v2274_v58  ;;  %v2285_v15 = vmul.f32 -1.442695, %v4096_v39  ;;  %v4099_v58 = vld [vmem:[#allocation26_spill] sm:$0xff]  ;;  %v4103_v48 = vld [vmem:[#allocation21_spill] sm:$0xff] }
 0x2c0   : > { %v2668_v40 = vpop.eup %2667  ;;  %v1822_v49 = vadd.f32 %v1821_v12, %v1715_v13  ;;  %v1716_v6 = vmul.f32 %v2666_v33, %v4097_v52  ;;  %2687 = vpow2.f32 %v2276_v56  ;;  %v2287_v59 = vmul.f32 -1.442695, %v4098_v29 }
 0x2c1   : > { %v2670_v3 = vpop.eup %2669  ;;  %v3842_v51 = vadd.f32 %v1847_v23, %v1717_v2  ;;  %v1718_v28 = vmul.f32 %v2668_v40, %v3500_v8  ;;  %2689 = vpow2.f32 %v2275_v26  ;;  %v3847_v57 = vadd.f32 %v3710_v44, %v3616_v4 }
 0x2c2   : > { %v2672_v61 = vpop.eup %2671  ;;  %v3849_v22 = vadd.f32 %v1834_v32, %v1716_v6  ;;  %v1726_v19 = vmul.f32 %v2670_v3, %v4099_v58  ;;  %2691 = vpow2.f32 %v2277_v0  ;;  %v3854_v56 = vadd.f32 %v4100_v14, %v3581_v37  ;;  %v4106_v14 = vld [vmem:[#allocation27_spill] sm:$0xff] }
 0x2c3   : > { %v2674_v9 = vpop.eup %2673  ;;  %v3856_v53 = vadd.f32 %v1860_v38, %v1718_v28  ;;  %v1464_v25 = vadd.f32 1.0, %v2672_v61  ;;  %2693 = vpow2.f32 %v2285_v15  ;;  %v3862_v55 = vadd.f32 %v3729_v30, %v3616_v4  ;;  %v4105_v61 = vld [vmem:[#allocation32_spill] sm:$0xff] }
 0x2c4   : > { %v2676_v8 = vpop.eup %2675  ;;  %v3858_v5 = vadd.f32 %v1822_v49, %v1726_v19  ;;  %v1463_v44 = vadd.f32 1.0, %v2674_v9  ;;  %2695 = vpow2.f32 %v2287_v59  ;;  %v3866_v26 = vadd.f32 %v3754_v27, %v3581_v37  ;;  %v4104_v59 = vld [vmem:[#allocation15_spill] sm:$0xff] }
 0x2c5   : > { %v2678_v17 = vpop.eup %2677  ;;  %2697 = vrcp.f32 %v1464_v25  ;;  %v1465_v1 = vadd.f32 1.0, %v2676_v8  ;;  %v3870_v0 = vadd.f32 %v4101_v11, %v3616_v4  ;;  %v3874_v12 = vadd.f32 %v4102_v47, %v3581_v37  ;;  %v4107_v25 = vld [vmem:[#allocation33_spill] sm:$0xff] }
 0x2c6   : > { %v2680_v31 = vpop.eup %2679  ;;  %2699 = vrcp.f32 %v1463_v44  ;;  %v1473_v20 = vadd.f32 1.0, %v2678_v17  ;;  %v3878_v32 = vadd.f32 %v4103_v48, %v3616_v4  ;;  %v2286_v3 = vmul.f32 -1.442695, %v4104_v59  ;;  %v4108_v17 = vld [vmem:[#allocation28_spill] sm:$0xff]  ;;  %v4112_v48 = vld [vmem:[#allocation30_spill] sm:$0xff] }
 0x2c7   : > { %v2682_v41 = vpop.eup %2681  ;;  %2701 = vrcp.f32 %v1465_v1  ;;  %v1475_v60 = vadd.f32 1.0, %v2680_v31  ;;  %v2288_v58 = vmul.f32 -1.442695, %v4105_v61  ;;  %v2212_v8 = vmul.f32 -1.442695, %v4107_v25  ;;  %v4109_v31 = vld [vmem:[#allocation34_spill] sm:$0xff] }
 0x2c8   : > { %v2684_v30 = vpop.eup %2683  ;;  %2703 = vrcp.f32 %v1473_v20  ;;  %v1474_v23 = vadd.f32 1.0, %v2682_v41  ;;  %v2236_v20 = vmul.f32 -1.442695, %v4109_v31  ;;  %v4110_v41 = vld [vmem:[#allocation29_spill] sm:$0xff] }
 0x2c9   : > { %v2686_v46 = vpop.eup %2685  ;;  %2705 = vrcp.f32 %v1475_v60  ;;  %v1476_v27 = vadd.f32 1.0, %v2684_v30  ;;  %v4111_v30 = vld [vmem:[#allocation35_spill] sm:$0xff] }
 0x2ca   : > { %v2688_v13 = vpop.eup %2687  ;;  %2707 = vrcp.f32 %v1474_v23  ;;  %v1484_v33 = vadd.f32 1.0, %v2686_v46  ;;  %v2213_v23 = vmul.f32 -1.442695, %v4111_v30 }
 0x2cb   : > { %v2690_v38 = vpop.eup %2689  ;;  %2709 = vrcp.f32 %v1476_v27  ;;  %v1486_v37 = vadd.f32 1.0, %v2688_v13 }
 0x2cc   : > { %v2692_v2 = vpop.eup %2691  ;;  %2711 = vrcp.f32 %v1484_v33  ;;  %v1485_v15 = vadd.f32 1.0, %v2690_v38  ;;  %v4113_v33 = vld [vmem:[#allocation36_spill] sm:$0xff] }
 0x2cd   : > { %v2694_v40 = vpop.eup %2693  ;;  %2713 = vrcp.f32 %v1486_v37  ;;  %v1487_v49 = vadd.f32 1.0, %v2692_v2  ;;  %v2214_v38 = vmul.f32 -1.442695, %v4113_v33 }
 0x2ce   : > { %v2696_v52 = vpop.eup %2695  ;;  %2715 = vrcp.f32 %v1485_v15  ;;  %v1495_v6 = vadd.f32 1.0, %v2694_v40  ;;  %v4114_v15 = vld [vmem:[#allocation31_spill] sm:$0xff] }
 0x2cf   : > { %v2698_v28 = vpop.eup %2697  ;;  %2717 = vrcp.f32 %v1487_v49  ;;  %v1497_v4 = vadd.f32 1.0, %v2696_v52 }
 0x2d0   : > { %v2700_v19 = vpop.eup %2699  ;;  %v1728_v9 = vmul.f32 %v2698_v28, %v4106_v14  ;;  %2719 = vrcp.f32 %v1495_v6  ;;  %v4117_v14 = vld [vmem:[#allocation16_spill] sm:$0xff] }
 0x2d1   : > { %v2702_v44 = vpop.eup %2701  ;;  %v1727_v1 = vmul.f32 %v2700_v19, %v4108_v17  ;;  %2721 = vrcp.f32 %v1497_v4  ;;  %v4118_v17 = vld [vmem:[#allocation17_spill] sm:$0xff] }
 0x2d2   : > { %v2704_v11 = vpop.eup %2703  ;;  %v1849_v47 = vadd.f32 %v3842_v51, %v1728_v9  ;;  %v1729_v60 = vmul.f32 %v2702_v44, %v4110_v41  ;;  %2723 = vpow2.f32 %v2286_v3  ;;  %v4115_v51 = vld [vmem:[#allocation37_spill] sm:$0xff] }
 0x2d3   : > { %v2706_v46 = vpop.eup %2705  ;;  %v1836_v27 = vadd.f32 %v3849_v22, %v1727_v1  ;;  %v1737_v13 = vmul.f32 %v2704_v11, %v4112_v48  ;;  %2725 = vpow2.f32 %v2288_v58  ;;  %v2223_v49 = vmul.f32 -1.442695, %v4115_v51  ;;  %v4116_v22 = vld [vmem:[#allocation38_spill] sm:$0xff] }
 0x2d4   : > { %v2708_v37 = vpop.eup %2707  ;;  %v1862_v2 = vadd.f32 %v3856_v53, %v1729_v60  ;;  %v1739_v40 = vmul.f32 %v2706_v46, %v4114_v15  ;;  %2727 = vpow2.f32 %v2212_v8  ;;  %v2247_v28 = vmul.f32 -1.442695, %v4116_v22 }
 0x2d5   : > { %v2710_v52 = vpop.eup %2709  ;;  %v1824_v6 = vadd.f32 %v3858_v5, %v1737_v13  ;;  %v1738_v3 = vmul.f32 %v2708_v37, %v3559_v43  ;;  %2729 = vpow2.f32 %v2236_v20  ;;  %v2224_v53 = vmul.f32 -1.442695, %v4117_v14  ;;  %v4119_v20 = vld [vmem:[#allocation18_spill] sm:$0xff] }
 0x2d6   : > { %v2712_v4 = vpop.eup %2711  ;;  %v1850_v58 = vadd.f32 %v1849_v47, %v1739_v40  ;;  %v1740_v19 = vmul.f32 %v2710_v52, %v3564_v16  ;;  %2731 = vpow2.f32 %v2213_v23  ;;  %v2225_v1 = vmul.f32 -1.442695, %v4118_v17 }
 0x2d7   : > { %v2714_v9 = vpop.eup %2713  ;;  %v1837_v44 = vadd.f32 %v1836_v27, %v1738_v3  ;;  %v1748_v8 = vmul.f32 %v2712_v4, %v3592_v35  ;;  %2733 = vpow2.f32 %v2214_v38  ;;  %v2234_v41 = vmul.f32 -1.442695, %v4119_v20 }
 0x2d8   : > { %v2716_v5 = vpop.eup %2715  ;;  %v1863_v11 = vadd.f32 %v1862_v2, %v1740_v19  ;;  %v1750_v43 = vmul.f32 %v2714_v9, %v3602_v54  ;;  %2735 = vpow2.f32 %v2223_v49  ;;  %v2280_v23 = vmul.f32 -1.442695, %v3782_v24 }
 0x2d9   : > { %v2718_v47 = vpop.eup %2717  ;;  %v1825_v60 = vadd.f32 %v1824_v6, %v1748_v8  ;;  %v1749_v16 = vmul.f32 %v2716_v5, %v3612_v34  ;;  %2737 = vpow2.f32 %v2247_v28  ;;  %v2235_v48 = vmul.f32 -1.442695, %v3786_v21 }
 0x2da   : > { %v2720_v46 = vpop.eup %2719  ;;  %v1851_v27 = vadd.f32 %v1850_v58, %v1750_v43  ;;  %v1751_v35 = vmul.f32 %v2718_v47, %v3620_v50  ;;  %2739 = vpow2.f32 %v2224_v53 }
 0x2db   : > { %v2722_v13 = vpop.eup %2721  ;;  %v3908_v38 = vadd.f32 %v1837_v44, %v1749_v16  ;;  %v1759_v54 = vmul.f32 %v2720_v46, %v4096_v39  ;;  %2741 = vpow2.f32 %v2225_v1 }
 0x2dc   : > { %v2724_v37 = vpop.eup %2723  ;;  %v3911_v2 = vadd.f32 %v1863_v11, %v1751_v35  ;;  %v1761_v34 = vmul.f32 %v2722_v13, %v4098_v29  ;;  %2743 = vpow2.f32 %v2234_v41  ;;  %v2258_v13 = vmul.f32 -1.442695, %v3791_v18 }
 0x2dd   : > { %v2726_v15 = vpop.eup %2725  ;;  %v1826_v40 = vadd.f32 %v1825_v60, %v1759_v54  ;;  %v1496_v49 = vadd.f32 1.0, %v2724_v37  ;;  %2745 = vpow2.f32 %v2280_v23 }
 0x2de   : > { %v2728_v50 = vpop.eup %2727  ;;  %v1852_v52 = vadd.f32 %v1851_v27, %v1761_v34  ;;  %v1498_v6 = vadd.f32 1.0, %v2726_v15  ;;  %2747 = vpow2.f32 %v2235_v48  ;;  %v2245_v15 = vmul.f32 -1.442695, %v3797_v10 }
 0x2df   : > { %v2730_v3 = vpop.eup %2729  ;;  %v1827_v28 = vrot.slane %v1826_v40, 4  ;;  %2749 = vrcp.f32 %v1496_v49  ;;  %v1422_v4 = vadd.f32 1.0, %v2728_v50 }
 0x2e0   : > { %v2732_v39 = vpop.eup %2731  ;;  %v1853_v58 = vrot.slane %v1852_v52, 4  ;;  %2751 = vrcp.f32 %v1498_v6  ;;  %v1446_v19 = vadd.f32 1.0, %v2730_v3 }
 0x2e1   : > { %v2734_v53 = vpop.eup %2733  ;;  %v1828_v9 = vadd.f32 %v1827_v28, %v1826_v40  ;;  %2753 = vrcp.f32 %v1422_v4  ;;  %v1423_v29 = vadd.f32 1.0, %v2732_v39  ;;  %v2246_v28 = vmul.f32 -1.442695, %v3812_v42 }
 0x2e2   : > { %v2736_v44 = vpop.eup %2735  ;;  %v1854_v8 = vadd.f32 %v1853_v58, %v1852_v52  ;;  %2755 = vrcp.f32 %v1446_v19  ;;  %v1424_v1 = vadd.f32 1.0, %v2734_v53  ;;  %v2291_v52 = vmul.f32 -1.442695, %v3804_v45 }
 0x2e3   : > { %v2738_v5 = vpop.eup %2737  ;;  %v1829_v11 = vrot.slane %v1828_v9, 2  ;;  %2757 = vrcp.f32 %v1423_v29  ;;  %v1433_v43 = vadd.f32 1.0, %v2736_v44  ;;  %v2269_v4 = vmul.f32 -1.442695, %v3830_v7 }
 0x2e4   : > { %v2740_v41 = vpop.eup %2739  ;;  %v1855_v47 = vrot.slane %v1854_v8, 2  ;;  %2759 = vrcp.f32 %v1424_v1  ;;  %v1457_v60 = vadd.f32 1.0, %v2738_v5  ;;  %v2256_v19 = vmul.f32 -1.442695, %v3836_v63 }
 0x2e5   : > { %v2742_v16 = vpop.eup %2741  ;;  %v1830_v23 = vadd.f32 %v1829_v11, %v1828_v9  ;;  %2761 = vrcp.f32 %v1433_v43  ;;  %v1434_v46 = vadd.f32 1.0, %v2740_v41  ;;  %v2257_v53 = vmul.f32 -1.442695, %v3847_v57 }
 0x2e6   : > { %v2744_v27 = vpop.eup %2743  ;;  %v1856_v35 = vadd.f32 %v1855_v47, %v1854_v8  ;;  %2763 = vrcp.f32 %v1457_v60  ;;  %v1435_v48 = vadd.f32 1.0, %v2742_v16  ;;  %v2267_v11 = vmul.f32 -1.442695, %v3854_v56 }
 0x2e7   : > { %v2746_v54 = vpop.eup %2745  ;;  %v1831_v37 = vrot.slane %v1830_v23, 1  ;;  %2765 = vrcp.f32 %v1434_v46  ;;  %v1444_v34 = vadd.f32 1.0, %v2744_v27  ;;  %v2268_v43 = vmul.f32 -1.442695, %v3862_v55 }
 0x2e8   : > { %v2748_v40 = vpop.eup %2747  ;;  %v1857_v49 = vrot.slane %v1856_v35, 1  ;;  %2767 = vrcp.f32 %v1435_v48  ;;  %v1490_v50 = vadd.f32 1.0, %v2746_v54  ;;  %v2278_v47 = vmul.f32 -1.442695, %v3866_v26 }
 0x2e9   : > { %v2750_v6 = vpop.eup %2749  ;;  %2769 = vrcp.f32 %v1444_v34  ;;  %v1445_v3 = vadd.f32 1.0, %v2748_v40  ;;  %v1832_v29 = vadd.f32 %v1831_v37, %v1830_v23  ;;  %v2279_v60 = vmul.f32 -1.442695, %v3870_v0 }
 0x2ea   : > { %v2752_v39 = vpop.eup %2751  ;;  %v1760_v58 = vmul.f32 %v2750_v6, %v4104_v59  ;;  %2771 = vrcp.f32 %v1490_v50  ;;  %v1858_v44 = vadd.f32 %v1857_v49, %v1856_v35 }
 0x2eb   : > { %v2754_v9 = vpop.eup %2753  ;;  %v1762_v8 = vmul.f32 %v2752_v39, %v4105_v61  ;;  %2773 = vrcp.f32 %v1445_v3  ;;  %v2289_v61 = vmul.f32 -1.442695, %v3874_v12  ;;  %v3931_v27 = vmul.f32 0.015625, %v1832_v29 }
 0x2ec   : > { %v2756_v1 = vpop.eup %2755  ;;  %v1839_v5 = vadd.f32 %v3908_v38, %v1760_v58  ;;  %2775 = vpow2.f32 %v2258_v13  ;;  %v2290_v38 = vmul.f32 -1.442695, %v3878_v32  ;;  %v3933_v35 = vmul.f32 0.015625, %v1858_v44 }
 0x2ed   : > { %v2758_v59 = vpop.eup %2757  ;;  %v1865_v41 = vadd.f32 %v3911_v2, %v1762_v8  ;;  %2777 = vpow2.f32 %v2245_v15  ;;  %v1686_v54 = vmul.f32 %v2754_v9, %v4107_v25  ;;  %v1710_v40 = vmul.f32 %v2756_v1, %v4109_v31 }
 0x2ee   : > { %v2760_v16 = vpop.eup %2759  ;;  %v1840_v23 = vrot.slane %v1839_v5, 4  ;;  %2779 = vpow2.f32 %v2291_v52  ;;  %v1687_v49 = vmul.f32 %v2758_v59, %v4111_v30 }
 0x2ef   : > { %v2762_v46 = vpop.eup %2761  ;;  %v1866_v48 = vrot.slane %v1865_v41, 4  ;;  %2781 = vpow2.f32 %v2246_v28  ;;  %v1688_v25 = vmul.f32 %v2760_v16, %v4113_v33 }
 0x2f0   : > { %v2764_v2 = vpop.eup %2763  ;;  %v1841_v13 = vadd.f32 %v1840_v23, %v1839_v5  ;;  %v1697_v37 = vmul.f32 %v2762_v46, %v4115_v51  ;;  %2783 = vpow2.f32 %v2269_v4 }
 0x2f1   : > { %v2766_v34 = vpop.eup %2765  ;;  %v1867_v15 = vadd.f32 %v1866_v48, %v1865_v41  ;;  %2785 = vpow2.f32 %v2256_v19  ;;  %v1721_v29 = vmul.f32 %v2764_v2, %v4116_v22 }
 0x2f2   : > { %v2768_v50 = vpop.eup %2767  ;;  %v1842_v52 = vrot.slane %v1841_v13, 2  ;;  %v1872_v6 = vadd.f32 %v1697_v37, %v1686_v54  ;;  %v1698_v3 = vmul.f32 %v2766_v34, %v4117_v14  ;;  %2787 = vpow2.f32 %v2257_v53 }
 0x2f3   : > { %v2770_v28 = vpop.eup %2769  ;;  %v1868_v39 = vrot.slane %v1867_v15, 2  ;;  %v1699_v51 = vmul.f32 %v2768_v50, %v4118_v17  ;;  %2789 = vpow2.f32 %v2267_v11 }
 0x2f4   : > { %v3942_v4 = vpop.eup %2771  ;;  %v1843_v58 = vadd.f32 %v1842_v52, %v1841_v13  ;;  %v1885_v31 = vadd.f32 %v1698_v3, %v1687_v49  ;;  %v1708_v30 = vmul.f32 %v2770_v28, %v4119_v20  ;;  %2791 = vpow2.f32 %v2268_v43 }
 0x2f5   : > { %v2774_v19 = vpop.eup %2773  ;;  %v1869_v9 = vadd.f32 %v1868_v39, %v1867_v15  ;;  %v1898_v14 = vadd.f32 %v1699_v51, %v1688_v25  ;;  %2793 = vpow2.f32 %v2278_v47 }
 0x2f6   : > { %v2776_v53 = vpop.eup %2775  ;;  %v1844_v44 = vrot.slane %v1843_v58, 1  ;;  %v3946_v8 = vadd.f32 %v1872_v6, %v1708_v30  ;;  %v1709_v33 = vmul.f32 %v2774_v19, %v3786_v21  ;;  %2795 = vpow2.f32 %v2279_v60 }
 0x2f7   : > { %v2778_v17 = vpop.eup %2777  ;;  %v1870_v1 = vrot.slane %v1869_v9, 1  ;;  %v1899_v5 = vadd.f32 %v1898_v14, %v1710_v40  ;;  %v1468_v11 = vadd.f32 1.0, %v2776_v53  ;;  %2797 = vpow2.f32 %v2289_v61 }
 0x2f8   : > { %v2780_v20 = vpop.eup %2779  ;;  %v1845_v43 = vadd.f32 %v1844_v44, %v1843_v58  ;;  %v1886_v59 = vadd.f32 %v1885_v31, %v1709_v33  ;;  %v1455_v41 = vadd.f32 1.0, %v2778_v17  ;;  %2799 = vpow2.f32 %v2290_v38 }
 0x2f9   : > { %v2782_v22 = vpop.eup %2781  ;;  %v1871_v16 = vadd.f32 %v1870_v1, %v1869_v9  ;;  %2801 = vrcp.f32 %v1468_v11  ;;  %v1900_v47 = vadd.f32 %v1899_v5, %v1721_v29  ;;  %v1501_v23 = vadd.f32 1.0, %v2780_v20 }
 0x2fa   : > { %v2784_v46 = vpop.eup %2783  ;;  %v1916_v48 = vmul.f32 0.015625, %v1845_v43  ;;  %2803 = vrcp.f32 %v1455_v41  ;;  %v1456_v21 = vadd.f32 1.0, %v2782_v22 }
 0x2fb   : > { %v2786_v60 = vpop.eup %2785  ;;  %v1918_v2 = vmul.f32 0.015625, %v1871_v16  ;;  %2805 = vrcp.f32 %v1501_v23  ;;  %v1479_v13 = vadd.f32 1.0, %v2784_v46 }
 0x2fc   : > { %v2788_v54 = vpop.eup %2787  ;;  %v1935_v61 = vcombine.low %v3931_v27, %v1916_v48  ;;  %2807 = vrcp.f32 %v1456_v21  ;;  %v1466_v37 = vadd.f32 1.0, %v2786_v60 }
 0x2fd   : > { %v2790_v34 = vpop.eup %2789  ;;  %v1936_v38 = vcombine.low %v3933_v35, %v1918_v2  ;;  %2809 = vrcp.f32 %v1479_v13  ;;  %v1467_v15 = vadd.f32 1.0, %v2788_v54 }
 0x2fe   : > { %v2792_v40 = vpop.eup %2791  ;;  %v1957_v49 = vrot.slane %v1935_v61, %v4094_v62  ;;  %2811 = vrcp.f32 %v1466_v37  ;;  %v1477_v50 = vadd.f32 1.0, %v2790_v34 }
 0x2ff   : > { %v2794_v52 = vpop.eup %2793  ;;  %v1964_v6 = vrot.slane %v1936_v38, %v4094_v62  ;;  %2813 = vrcp.f32 %v1467_v15  ;;  %v1478_v3 = vadd.f32 1.0, %v2792_v40 }
 0x300   : > { %v2796_v28 = vpop.eup %2795  ;;  %2815 = vrcp.f32 %v1477_v50  ;;  %v1488_v27 = vadd.f32 1.0, %v2794_v52 }
 0x301   : > { %v2798_v39 = vpop.eup %2797  ;;  %v1966_v25 = vcombine.low %v1957_v49, %v1964_v6  ;;  %2817 = vrcp.f32 %v1478_v3  ;;  %v1489_v51 = vadd.f32 1.0, %v2796_v28 }
 0x302   : > { %v2800_v35 = vpop.eup %2799  ;;  %2819 = vrcp.f32 %v1488_v27  ;;  %v1499_v58 = vadd.f32 1.0, %v2798_v39 }
 0x303   : > { %v2802_v31 = vpop.eup %2801  ;;  %v1980_v30 = vrot.slane %v1966_v25, %v4094_v62  ;;  %2821 = vrcp.f32 %v1489_v51  ;;  %v1500_v19 = vadd.f32 1.0, %v2800_v35 }
 0x304   : > { %v2804_v9 = vpop.eup %2803  ;;  %v1732_v29 = vmul.f32 %v2802_v31, %v3791_v18  ;;  %2823 = vrcp.f32 %v1499_v58 }
 0x305   : > { %v2806_v14 = vpop.eup %2805  ;;  %v1981_v53 = vcombine.low %v3821_v36, %v1980_v30  ;;  %v1719_v44 = vmul.f32 %v2804_v9, %v3797_v10  ;;  %2825 = vrcp.f32 %v1500_v19  ;;  %v1754_v10 = vmul.f32 %v3942_v4, %v3782_v24 }
 0x306   : > { %v2808_v33 = vpop.eup %2807  ;;  %v1901_v17 = vadd.f32 %v1900_v47, %v1732_v29  ;;  %v1765_v48 = vmul.f32 %v2806_v14, %v3804_v45 }
 0x307   : > { %v2810_v1 = vpop.eup %2809  ;;  %v1874_v5 = vadd.f32 %v3946_v8, %v1719_v44  ;;  %v1720_v11 = vmul.f32 %v2808_v33, %v3812_v42  ;;  %2009 = vst [vmem:[%s3172_s28] sm:$0xff] %v1981_v53  ;;  %v1767_v53 = vld [vmem:[%s3172_s28 + $0x8] sm:$0x7] }
 0x308   : > { %v2812_v20 = vpop.eup %2811  ;;  %v1743_v43 = vmul.f32 %v2810_v1, %v3830_v7 }
 0x309   : > { %v2814_v41 = vpop.eup %2813  ;;  %v1887_v18 = vadd.f32 %v1886_v59, %v1720_v11  ;;  %v1730_v22 = vmul.f32 %v2812_v20, %v3836_v63 }
 0x30a   : > { %v2816_v16 = vpop.eup %2815  ;;  %v1902_v36 = vadd.f32 %v1901_v17, %v1743_v43  ;;  %v1731_v47 = vmul.f32 %v2814_v41, %v3847_v57 }
 0x30b   : > { %v2818_v23 = vpop.eup %2817  ;;  %v1875_v46 = vadd.f32 %v1874_v5, %v1730_v22  ;;  %v1741_v8 = vmul.f32 %v2816_v16, %v3854_v56 }
 0x30c   : > { %v2820_v42 = vpop.eup %2819  ;;  %v1903_v7 = vadd.f32 %v1902_v36, %v1754_v10  ;;  %v1888_v21 = vadd.f32 %v1887_v18, %v1731_v47  ;;  %v1742_v59 = vmul.f32 %v2818_v23, %v3862_v55 }
 0x30d   : > { %v2822_v60 = vpop.eup %2821  ;;  %v1876_v63 = vadd.f32 %v1875_v46, %v1741_v8  ;;  %v1752_v2 = vmul.f32 %v2820_v42, %v3866_v26 }
 0x30e   : > { %v2824_v13 = vpop.eup %2823  ;;  %v1904_v24 = vadd.f32 %v1903_v7, %v1765_v48  ;;  %v1889_v4 = vadd.f32 %v1888_v21, %v1742_v59  ;;  %v1753_v57 = vmul.f32 %v2822_v60, %v3870_v0 }
 0x30f   : > { %v2826_v54 = vpop.eup %2825  ;;  %v1877_v61 = vadd.f32 %v1876_v63, %v1752_v2  ;;  %v1763_v56 = vmul.f32 %v2824_v13, %v3874_v12 }
 0x310   : > { %v1905_v37 = vrot.slane %v1904_v24, 4  ;;  %v1890_v34 = vadd.f32 %v1889_v4, %v1753_v57  ;;  %v1764_v45 = vmul.f32 %v2826_v54, %v3878_v32 }
 0x311   : > { %v1878_v38 = vadd.f32 %v1877_v61, %v1763_v56 }
 0x312   : > { %v1906_v15 = vadd.f32 %v1905_v37, %v1904_v24  ;;  %v1891_v55 = vadd.f32 %v1890_v34, %v1764_v45 }
 0x313   : > { %v1879_v40 = vrot.slane %v1878_v38, 4 }
 0x314   : > { %v1907_v49 = vrot.slane %v1906_v15, 2  ;;  %v1892_v50 = vrot.slane %v1891_v55, 4 }
 0x315   : > { %v1880_v26 = vadd.f32 %v1879_v40, %v1878_v38 }
 0x316   : > { %v1908_v52 = vadd.f32 %v1907_v49, %v1906_v15  ;;  %v1893_v6 = vadd.f32 %v1892_v50, %v1891_v55 }
 0x317   : > { %v1881_v3 = vrot.slane %v1880_v26, 2 }
 0x318   : > { %v1909_v28 = vrot.slane %v1908_v52, 1  ;;  %v1894_v0 = vrot.slane %v1893_v6, 2 }
 0x319   : > { %v1882_v27 = vadd.f32 %v1881_v3, %v1880_v26 }
 0x31a   : > { %v1910_v39 = vadd.f32 %v1909_v28, %v1908_v52  ;;  %v1895_v12 = vadd.f32 %v1894_v0, %v1893_v6 }
 0x31b   : > { %v1883_v25 = vrot.slane %v1882_v27, 1 }
 0x31c   : > { %v1921_v51 = vmul.f32 0.015625, %v1910_v39  ;;  %v1896_v32 = vrot.slane %v1895_v12, 1 }
 0x31d   : > { %v1884_v35 = vadd.f32 %v1883_v25, %v1882_v27 }
 0x31e   : > { %v1996_v58 = vrot.slane %v1921_v51, %v4094_v62  ;;  %v1897_v31 = vadd.f32 %v1896_v32, %v1895_v12 }
 0x31f   : > { %v1919_v30 = vmul.f32 0.015625, %v1884_v35 }
 0x320   : > { %v1920_v19 = vmul.f32 0.015625, %v1897_v31 }
 0x322   : > { %v1982_v9 = vcombine.low %v1919_v30, %v1920_v19 }
 0x324   : > { %v1989_v29 = vrot.slane %v1982_v9, %v4094_v62 }
 0x326   : > { %v1997_v14 = vcombine.low %v1989_v29, %v1996_v58 }
 0x328   : > { %v2004_v44 = vrot.slane %v1997_v14, %v4094_v62 }
 0x32a   : > { %v2008_v33 = vadd.f32 %v2004_v44, %v1767_v53 }
 0x32c   : > { %2014 = vst.msk [vmem:[%s3172_s28 + $0x8] sm:$0x7] %vm3162_vm2, %v2008_v33 }
 0x32d PF: > { %s18_s20 = sadd.s32 1, %s2973_s20   ;;  %s4121_s18 = smov %s2969_s19 }
 0x32e   : > { %p15_p8 = scmp.ge.s32.totalorder %s18_s20, 4   ;;  %s4122_s19 = smov %s4124_s26 }
 0x330   :  { %17 = sbr.rel (!%p15_p8) target bundleno = 4 (0x4), region = 91 }
 0x337   :  { %2034 = vsyncpa [#allocation3], 1 }
 0x338   :  { %2036 = vsyncpa [#allocation3 + $0x1], 1 }
 0x339   :  { %2037 = vsyncpa [#allocation5], 1 }
 0x33a   :  { %2038 = vsyncpa [#allocation8], 1 }

// kernel: forward.3
= control target key start
LH: loop header
LB: loop body
LE: loop exit
PB: predicated region body
PF: predicated region fallthrough
CT: control target
= control target key end

     0   :  { %14 = vsyncpa [#allocation3], 0  ;;  %s7811_s0 = inlined_call_operand.vmem [shape: bf16[2,1408], index: 0, kind: input, shape index: {}]   ;;  %s7812_s1 = inlined_call_operand.hbm [shape: bf16[1408,1024], index: 1, kind: input, shape index: {}]   ;;  %s7813_s2 = inlined_call_operand.hbm [shape: f32[1,1024], index: 2, kind: input, shape index: {}]   ;;  %s7814_s3 = inlined_call_operand.vmem [shape: bf16[512,10], index: 3, kind: input, shape index: {}]   ;;  %s7815_s4 = inlined_call_operand.hbm [shape: f32[1,10], index: 4, kind: input, shape index: {}]   ;;  %s7816_s5 = inlined_call_operand.vmem [shape: bf16[512,11], index: 5, kind: input, shape index: {}]   ;;  %s7817_s6 = inlined_call_operand.hbm [shape: f32[1,11], index: 6, kind: input, shape index: {}]   ;;  %s7818_s7 = inlined_call_operand.hbm [shape: f32[2,10], index: 7, kind: output, shape index: {0}]   ;;  %s7819_s8 = inlined_call_operand.hbm [shape: f32[2,11], index: 8, kind: output, shape index: {1}]  }
   0x1   :  { %15 = vsyncpa [#allocation6], 0 }
   0x2   :  { %16 = vsyncpa [#allocation9], 0 }
   0x3   :  { %17 = vsyncpa [#allocation4], 0 }
   0x4   :  { %18 = vsyncpa [#allocation12], 0  ;;  %s7333_s27 = smov [#allocation5]   ;;  %s7334_s29 = smov [#allocation2]  }
   0x5   :  { %s39_s28 = sshll.u32 %s7333_s27, 4  ;;  %s26_s30 = sshll.u32 %s7334_s29, 4  ;;  %s40_s28 = int_to_ptr.vmem [resolvable:$true] %s39_s28  ;;  %s7388_s30 = int_to_ptr.vmem [resolvable:$true] %s26_s30 }
   0x6   :  { %s7191_s11 = scalar_lea.hbm %s7813_s2, 128 }
   0x7   :  { %p7192_p0 = scmp.ne.s32.totalorder %s7813_s2, %s7191_s11  ;;  %p7195_p1 = scmp.lt.u32.totalorder %s7191_s11, %s7813_s2 }
   0x9   :  { %p7197_p2 = pnand %p7195_p1, %p7192_p0 }
   0xb   :  { %7200 = shalt.err (!%p7197_p2)
}
   0xc   :  { %s7201_s16 = scalar_lea.vmem %s40_s28, 128  ;;  %p7206_p4 = scmp.lt.s32.totalorder %s40_s28, %s40_s28 }
   0xd   :  { %p7202_p3 = scmp.ne.s32.totalorder %s40_s28, %s7201_s16  ;;  %p7207_p5 = scmp.lt.s32.totalorder %s7201_s16, %s7201_s16 }
   0xf   :  { %p7208_p6 = por %p7207_p5, %p7206_p4 }
  0x11   :  { %p7209_p7 = pnand %p7208_p6, %p7202_p3 }
  0x13   :  { %7212 = shalt.err (!%p7209_p7)
}
  0x14   :  { %42 = dma.hbm_to_vmem [thread:$0]  %s7813_s2, 128, %s40_s28, [#allocation6]  }
  0x15   :  { %s7213_s21 = scalar_lea.hbm %s7812_s1, 90112 }
  0x16   :  { %p7214_p8 = scmp.ne.s32.totalorder %s7812_s1, %s7213_s21  ;;  %p7217_p9 = scmp.lt.u32.totalorder %s7213_s21, %s7812_s1 }
  0x18   :  { %p7219_p10 = pnand %p7217_p9, %p7214_p8 }
  0x1a   :  { %7222 = shalt.err (!%p7219_p10)
}
  0x1b   :  { %s7223_s26 = scalar_lea.vmem %s7388_s30, 90112  ;;  %p7228_p12 = scmp.lt.s32.totalorder %s7388_s30, %s7388_s30 }
  0x1c   :  { %p7224_p11 = scmp.ne.s32.totalorder %s7388_s30, %s7223_s26  ;;  %p7229_p13 = scmp.lt.s32.totalorder %s7223_s26, %s7223_s26 }
  0x1e   :  { %p7230_p0 = por %p7229_p13, %p7228_p12 }
  0x20   :  { %p7231_p1 = pnand %p7230_p0, %p7224_p11 }
  0x22   :  { %7234 = shalt.err (!%p7231_p1)
}
  0x23   :  { %s7335_s2 = smov 512   ;;  %s7336_s27 = smov 32  }
  0x24   :  { %32 = dma.hbm_to_vmem [thread:$0]  %s7812_s1, 90112, %s7388_s30, [#allocation3], %s7335_s2, %s7335_s2, %s7336_s27  }
  0x25   :  { %s7337_s9 = smov [#allocation7]   ;;  %s7338_s11 = smov [#allocation8]  }
  0x26   :  { %s51_s10 = sshll.u32 %s7337_s9, 4  ;;  %s63_s12 = sshll.u32 %s7338_s11, 4  ;;  %s52_s10 = int_to_ptr.vmem [resolvable:$true] %s51_s10  ;;  %s64_s12 = int_to_ptr.vmem [resolvable:$true] %s63_s12 }
  0x27   :  { %s7235_s15 = scalar_lea.hbm %s7815_s4, 16 }
  0x28   :  { %p7236_p2 = scmp.ne.s32.totalorder %s7815_s4, %s7235_s15  ;;  %p7239_p3 = scmp.lt.u32.totalorder %s7235_s15, %s7815_s4 }
  0x2a   :  { %p7241_p4 = pnand %p7239_p3, %p7236_p2 }
  0x2c   :  { %7244 = shalt.err (!%p7241_p4)
}
  0x2d   :  { %s7245_s1 = scalar_lea.vmem %s52_s10, 16  ;;  %s7249_s30 = scalar_lea.vmem %s52_s10, 32 }
  0x2e   :  { %p7246_p5 = scmp.ne.s32.totalorder %s52_s10, %s7245_s1  ;;  %p7250_p6 = scmp.lt.s32.totalorder %s52_s10, %s52_s10 }
  0x2f   :  { %p7251_p7 = scmp.lt.s32.totalorder %s7249_s30, %s7245_s1 }
  0x31   :  { %p7252_p8 = por %p7251_p7, %p7250_p6 }
  0x33   :  { %p7253_p9 = pnand %p7252_p8, %p7246_p5 }
  0x35   :  { %7256 = shalt.err (!%p7253_p9)
}
  0x36   :  { %54 = dma.hbm_to_vmem [thread:$0]  %s7815_s4, 16, %s52_s10, [#allocation6]  }
  0x37   :  { %s7257_s24 = scalar_lea.hbm %s7817_s6, 16 }
  0x38   :  { %p7258_p10 = scmp.ne.s32.totalorder %s7817_s6, %s7257_s24  ;;  %p7261_p11 = scmp.lt.u32.totalorder %s7257_s24, %s7817_s6 }
  0x3a   :  { %p7263_p12 = pnand %p7261_p11, %p7258_p10 }
  0x3c   :  { %7266 = shalt.err (!%p7263_p12)
}
  0x3d   :  { %s7267_s28 = scalar_lea.vmem %s64_s12, 16  ;;  %s7271_s29 = scalar_lea.vmem %s64_s12, 32 }
  0x3e   :  { %p7268_p13 = scmp.ne.s32.totalorder %s64_s12, %s7267_s28  ;;  %p7272_p0 = scmp.lt.s32.totalorder %s64_s12, %s64_s12 }
  0x3f   :  { %p7273_p1 = scmp.lt.s32.totalorder %s7271_s29, %s7267_s28 }
  0x41   :  { %p7274_p2 = por %p7273_p1, %p7272_p0 }
  0x43   :  { %p7275_p3 = pnand %p7274_p2, %p7268_p13 }
  0x45   :  { %7278 = shalt.err (!%p7275_p3)
}
  0x46   :  { %66 = dma.hbm_to_vmem [thread:$0]  %s7817_s6, 16, %s64_s12, [#allocation9]  }
  0x47   :  { %7323 = dma.done.wait [#allocation3], 90112  }
  0x48   :  { %7324 = vsyncadd [#allocation3], 4294877184 }
  0x49   :  { %7325 = dma.done.wait [#allocation6], 144  }
  0x4a   :  { %7326 = vsyncadd [#allocation6], 4294967152 }
  0x4b   :  { %7327 = dma.done.wait [#allocation9], 16  }
  0x4c   :  { %7328 = vsyncadd [#allocation9], 4294967280  ;;  %v82_v0 = vld [vmem:[#allocation2] sm:$0xff]  ;;  %v83_v2 = vld [vmem:[#allocation2 + $0x8] sm:$0xff]  ;;  %v788_v32 = vlaneseq  ;;  %v7339_v33 = vmov 1966171168  }
  0x4d   :  { %v86_v1 = vld [vmem:[#allocation2 + $0x20] sm:$0xff]  ;;  %v87_v4 = vld [vmem:[#allocation2 + $0x28] sm:$0xff]  ;;  %v832_v34 = vunpack.c.l.s4 %v7339_v33  ;;  %vm5776_vm0 = vcmask 74752   ;;  %vm6121_vm1 = vcmask 82944  }
  0x4e   :  { %v6167_v3 = vcombine.high %v82_v0, %v86_v1  ;;  %v6166_v5 = vcombine.low %v82_v0, %v86_v1  ;;  %v90_v6 = vld [vmem:[#allocation2 + $0x40] sm:$0xff]  ;;  %v6169_v8 = vcombine.high %v83_v2, %v87_v4  ;;  %v6168_v9 = vcombine.low %v83_v2, %v87_v4  ;;  %v91_v11 = vld [vmem:[#allocation2 + $0x48] sm:$0xff] }
  0x4f   :  { %v94_v7 = vld [vmem:[#allocation2 + $0x60] sm:$0xff]  ;;  %v95_v12 = vld [vmem:[#allocation2 + $0x68] sm:$0xff]  ;;  %v7443_v43 = vshrl.u32 %v788_v32, 7  ;;  %v833_v44 = vunpack.c.0.s8 %v832_v34 }
  0x50   :  { %v6175_v10 = vcombine.high %v90_v6, %v94_v7  ;;  %v98_v13 = vld [vmem:[#allocation2 + $0x80] sm:$0xff]  ;;  %4433 = vmatprep.subr.bf16.mxu0 %v6167_v3  ;;  %v6177_v14 = vcombine.high %v91_v11, %v95_v12  ;;  %v99_v16 = vld [vmem:[#allocation2 + $0x88] sm:$0xff]  ;;  %4679 = vmatprep.subr.bf16.mxu1 %v6169_v8  ;;  %v6174_v18 = vcombine.low %v90_v6, %v94_v7 }
  0x51   :  { %v102_v15 = vld [vmem:[#allocation2 + $0xa0] sm:$0xff]  ;;  %v103_v17 = vld [vmem:[#allocation2 + $0xa8] sm:$0xff]  ;;  %4434 = vmatpush1.bf16.msra.mxu0 %v6166_v5  ;;  %4680 = vmatpush1.bf16.msra.mxu1 %v6168_v9  ;;  %v6176_v19 = vcombine.low %v91_v11, %v95_v12  ;;  %v7446_v53 = vsub.s32 %v833_v44, %v7443_v43 }
  0x52   :  { %4435 = vmatprep.subr.bf16.mxu0 %v6175_v10  ;;  %v6183_v20 = vcombine.high %v98_v13, %v102_v15  ;;  %4681 = vmatprep.subr.bf16.mxu1 %v6177_v14  ;;  %v6185_v21 = vcombine.high %v99_v16, %v103_v17  ;;  %v106_v22 = vld [vmem:[#allocation2 + $0xc0] sm:$0xff]  ;;  %v107_v24 = vld [vmem:[#allocation2 + $0xc8] sm:$0xff]  ;;  %v6182_v26 = vcombine.low %v98_v13, %v102_v15 }
  0x53   :  { %v110_v23 = vld [vmem:[#allocation2 + $0xe0] sm:$0xff]  ;;  %v111_v25 = vld [vmem:[#allocation2 + $0xe8] sm:$0xff]  ;;  %v6184_v27 = vcombine.low %v99_v16, %v103_v17 }
  0x54   :  { %v6191_v28 = vcombine.high %v106_v22, %v110_v23  ;;  %v6193_v29 = vcombine.high %v107_v24, %v111_v25  ;;  %v114_v30 = vld [vmem:[#allocation2 + $0x100] sm:$0xff]  ;;  %v115_v35 = vld [vmem:[#allocation2 + $0x108] sm:$0xff]  ;;  %v6190_v37 = vcombine.low %v106_v22, %v110_v23  ;;  %v6192_v38 = vcombine.low %v107_v24, %v111_v25 }
  0x55   :  { %4436 = vmatpush1.bf16.msra.mxu0 %v6174_v18  ;;  %4682 = vmatpush1.bf16.msra.mxu1 %v6176_v19  ;;  %v118_v31 = vld [vmem:[#allocation2 + $0x120] sm:$0xff]  ;;  %v119_v36 = vld [vmem:[#allocation2 + $0x128] sm:$0xff] }
  0x56   :  { %4437 = vmatprep.subr.bf16.mxu0 %v6183_v20  ;;  %4683 = vmatprep.subr.bf16.mxu1 %v6185_v21  ;;  %v6199_v39 = vcombine.high %v114_v30, %v118_v31  ;;  %v6201_v40 = vcombine.high %v115_v35, %v119_v36  ;;  %v122_v41 = vld [vmem:[#allocation2 + $0x140] sm:$0xff]  ;;  %v123_v45 = vld [vmem:[#allocation2 + $0x148] sm:$0xff]  ;;  %v6198_v47 = vcombine.low %v114_v30, %v118_v31 }
  0x57   :  { %v126_v42 = vld [vmem:[#allocation2 + $0x160] sm:$0xff]  ;;  %v127_v46 = vld [vmem:[#allocation2 + $0x168] sm:$0xff]  ;;  %v6200_v48 = vcombine.low %v115_v35, %v119_v36 }
  0x58   :  { %v6207_v49 = vcombine.high %v122_v41, %v126_v42  ;;  %v6209_v50 = vcombine.high %v123_v45, %v127_v46  ;;  %v130_v51 = vld [vmem:[#allocation2 + $0x180] sm:$0xff]  ;;  %v131_v54 = vld [vmem:[#allocation2 + $0x188] sm:$0xff]  ;;  %v6206_v56 = vcombine.low %v122_v41, %v126_v42  ;;  %v6208_v57 = vcombine.low %v123_v45, %v127_v46 }
  0x59   :  { %4438 = vmatpush1.bf16.msra.mxu0 %v6182_v26  ;;  %4684 = vmatpush1.bf16.msra.mxu1 %v6184_v27  ;;  %v134_v52 = vld [vmem:[#allocation2 + $0x1a0] sm:$0xff]  ;;  %v135_v55 = vld [vmem:[#allocation2 + $0x1a8] sm:$0xff] }
  0x5a   :  { %4439 = vmatprep.subr.bf16.mxu0 %v6191_v28  ;;  %4685 = vmatprep.subr.bf16.mxu1 %v6193_v29  ;;  %v6215_v58 = vcombine.high %v130_v51, %v134_v52  ;;  %v7451_v59 = vld [vmem:[%s7811_s0] sm:$0xff]  ;;  %v6217_v60 = vcombine.high %v131_v54, %v135_v55  ;;  %v139_v0 = vld [vmem:[#allocation2 + $0x1c8] sm:$0xff]  ;;  %v6214_v2 = vcombine.low %v130_v51, %v134_v52 }
  0x5b   :  { %v138_v61 = vld [vmem:[#allocation2 + $0x1c0] sm:$0xff]  ;;  %v7455_v63 = vrot.slane %v7451_v59, %v7446_v53  ;;  %v143_v1 = vld [vmem:[#allocation2 + $0x1e8] sm:$0xff]  ;;  %v6216_v4 = vcombine.low %v131_v54, %v135_v55 }
  0x5c   :  { %v142_v62 = vld [vmem:[#allocation2 + $0x1e0] sm:$0xff]  ;;  %v6225_v6 = vcombine.high %v139_v0, %v143_v1  ;;  %v147_v10 = vld [vmem:[#allocation2 + $0x208] sm:$0xff]  ;;  %v6224_v13 = vcombine.low %v139_v0, %v143_v1 }
  0x5d   :  { %4440 = vmatpush1.bf16.msra.mxu0 %v6190_v37  ;;  %4686 = vmatpush1.bf16.msra.mxu1 %v6192_v38  ;;  %v845_v3 = vcombine.high %v7455_v63, %v7455_v63  ;;  %v6223_v5 = vcombine.high %v138_v61, %v142_v62  ;;  %v146_v7 = vld [vmem:[#allocation2 + $0x200] sm:$0xff]  ;;  %v151_v11 = vld [vmem:[#allocation2 + $0x228] sm:$0xff]  ;;  %v6222_v12 = vcombine.low %v138_v61, %v142_v62 }
  0x5e   :  { %4441 = vmatprep.subr.bf16.mxu0 %v6199_v39  ;;  %4687 = vmatprep.subr.bf16.mxu1 %v6201_v40  ;;  %v150_v8 = vld [vmem:[#allocation2 + $0x220] sm:$0xff]  ;;  %v6233_v15 = vcombine.high %v147_v10, %v151_v11  ;;  %v155_v18 = vld [vmem:[#allocation2 + $0x248] sm:$0xff]  ;;  %v6232_v21 = vcombine.low %v147_v10, %v151_v11 }
  0x5f   :  { %v7460_v9 = vrot.slane %v845_v3, %v7446_v53  ;;  %v6231_v14 = vcombine.high %v146_v7, %v150_v8  ;;  %v154_v16 = vld [vmem:[#allocation2 + $0x240] sm:$0xff]  ;;  %v159_v19 = vld [vmem:[#allocation2 + $0x268] sm:$0xff]  ;;  %v6230_v20 = vcombine.low %v146_v7, %v150_v8 }
  0x60   :  { %v158_v17 = vld [vmem:[#allocation2 + $0x260] sm:$0xff]  ;;  %v6241_v23 = vcombine.high %v155_v18, %v159_v19  ;;  %v163_v26 = vld [vmem:[#allocation2 + $0x288] sm:$0xff]  ;;  %v6240_v29 = vcombine.low %v155_v18, %v159_v19 }
  0x61   :  { %4442 = vmatpush1.bf16.msra.mxu0 %v6198_v47  ;;  %4688 = vmatpush1.bf16.msra.mxu1 %v6200_v48  ;;  %v6239_v22 = vcombine.high %v154_v16, %v158_v17  ;;  %v162_v24 = vld [vmem:[#allocation2 + $0x280] sm:$0xff]  ;;  %v167_v27 = vld [vmem:[#allocation2 + $0x2a8] sm:$0xff]  ;;  %v6238_v28 = vcombine.low %v154_v16, %v158_v17 }
  0x62   :  { %4443 = vmatprep.subr.bf16.mxu0 %v6207_v49  ;;  %4689 = vmatprep.subr.bf16.mxu1 %v6209_v50  ;;  %v166_v25 = vld [vmem:[#allocation2 + $0x2a0] sm:$0xff]  ;;  %v6249_v31 = vcombine.high %v163_v26, %v167_v27  ;;  %v171_v34 = vld [vmem:[#allocation2 + $0x2c8] sm:$0xff]  ;;  %v6248_v37 = vcombine.low %v163_v26, %v167_v27 }
  0x63   :  { %4465 = vmatprep.mubr.bf16.mxu0 %v7460_v9  ;;  %4711 = vmatprep.mubr.bf16.mxu1 %v7460_v9  ;;  %v6247_v30 = vcombine.high %v162_v24, %v166_v25  ;;  %v170_v32 = vld [vmem:[#allocation2 + $0x2c0] sm:$0xff]  ;;  %v175_v35 = vld [vmem:[#allocation2 + $0x2e8] sm:$0xff]  ;;  %v6246_v36 = vcombine.low %v162_v24, %v166_v25 }
  0x64   :  { %v174_v33 = vld [vmem:[#allocation2 + $0x2e0] sm:$0xff]  ;;  %v6257_v39 = vcombine.high %v171_v34, %v175_v35  ;;  %v179_v42 = vld [vmem:[#allocation2 + $0x308] sm:$0xff]  ;;  %v6256_v46 = vcombine.low %v171_v34, %v175_v35  ;;  %v7470_v34 = vcombine.high %v7460_v9, %v7460_v9 }
  0x65   :  { %4444 = vmatpush1.bf16.msra.mxu0 %v6206_v56  ;;  %4690 = vmatpush1.bf16.msra.mxu1 %v6208_v57  ;;  %v6255_v38 = vcombine.high %v170_v32, %v174_v33  ;;  %v178_v40 = vld [vmem:[#allocation2 + $0x300] sm:$0xff]  ;;  %v183_v44 = vld [vmem:[#allocation2 + $0x328] sm:$0xff]  ;;  %v6254_v45 = vcombine.low %v170_v32, %v174_v33 }
  0x66   :  { %4445 = vmatprep.subr.bf16.mxu0 %v6215_v58  ;;  %4691 = vmatprep.subr.bf16.mxu1 %v6217_v60  ;;  %v182_v41 = vld [vmem:[#allocation2 + $0x320] sm:$0xff]  ;;  %v6265_v48 = vcombine.high %v179_v42, %v183_v44  ;;  %v187_v51 = vld [vmem:[#allocation2 + $0x348] sm:$0xff]  ;;  %v6264_v55 = vcombine.low %v179_v42, %v183_v44 }
  0x67   :  { %v6263_v47 = vcombine.high %v178_v40, %v182_v41  ;;  %v186_v49 = vld [vmem:[#allocation2 + $0x340] sm:$0xff]  ;;  %v191_v52 = vld [vmem:[#allocation2 + $0x368] sm:$0xff]  ;;  %v6262_v54 = vcombine.low %v178_v40, %v182_v41 }
  0x68   :  { %v190_v50 = vld [vmem:[#allocation2 + $0x360] sm:$0xff]  ;;  %v6273_v57 = vcombine.high %v187_v51, %v191_v52  ;;  %v195_v61 = vld [vmem:[#allocation2 + $0x388] sm:$0xff]  ;;  %v6272_v1 = vcombine.low %v187_v51, %v191_v52 }
  0x69   :  { %4446 = vmatpush1.bf16.msra.mxu0 %v6214_v2  ;;  %4692 = vmatpush1.bf16.msra.mxu1 %v6216_v4  ;;  %v6271_v56 = vcombine.high %v186_v49, %v190_v50  ;;  %v194_v58 = vld [vmem:[#allocation2 + $0x380] sm:$0xff]  ;;  %v199_v62 = vld [vmem:[#allocation2 + $0x3a8] sm:$0xff]  ;;  %v6270_v0 = vcombine.low %v186_v49, %v190_v50 }
  0x6a   :  { %4447 = vmatprep.subr.bf16.mxu0 %v6223_v5  ;;  %4693 = vmatprep.subr.bf16.mxu1 %v6225_v6  ;;  %v198_v60 = vld [vmem:[#allocation2 + $0x3a0] sm:$0xff]  ;;  %v6281_v3 = vcombine.high %v195_v61, %v199_v62  ;;  %v203_v6 = vld [vmem:[#allocation2 + $0x3c8] sm:$0xff]  ;;  %v6280_v10 = vcombine.low %v195_v61, %v199_v62 }
  0x6b   :  { %v6279_v2 = vcombine.high %v194_v58, %v198_v60  ;;  %v202_v4 = vld [vmem:[#allocation2 + $0x3c0] sm:$0xff]  ;;  %v207_v7 = vld [vmem:[#allocation2 + $0x3e8] sm:$0xff]  ;;  %v6278_v8 = vcombine.low %v194_v58, %v198_v60 }
  0x6c   :  { %v206_v5 = vld [vmem:[#allocation2 + $0x3e0] sm:$0xff]  ;;  %v215_v16 = vld [vmem:[#allocation2 + $0x428] sm:$0xff]  ;;  %v6288_v18 = vcombine.low %v203_v6, %v207_v7 }
  0x6d   :  { %4448 = vmatpush1.bf16.msra.mxu0 %v6222_v12  ;;  %4694 = vmatpush1.bf16.msra.mxu1 %v6224_v13  ;;  %v6287_v11 = vcombine.high %v202_v4, %v206_v5  ;;  %v6289_v12 = vcombine.high %v203_v6, %v207_v7  ;;  %v210_v13 = vld [vmem:[#allocation2 + $0x400] sm:$0xff]  ;;  %v6286_v17 = vcombine.low %v202_v4, %v206_v5  ;;  %v219_v24 = vld [vmem:[#allocation2 + $0x448] sm:$0xff] }
  0x6e   :  { %4449 = vmatprep.subr.bf16.mxu0 %v6231_v14  ;;  %4695 = vmatprep.subr.bf16.mxu1 %v6233_v15  ;;  %v214_v14 = vld [vmem:[#allocation2 + $0x420] sm:$0xff]  ;;  %v211_v15 = vld [vmem:[#allocation2 + $0x408] sm:$0xff] }
  0x6f   :  { %v6295_v19 = vcombine.high %v210_v13, %v214_v14  ;;  %v223_v25 = vld [vmem:[#allocation2 + $0x468] sm:$0xff]  ;;  %v6294_v26 = vcombine.low %v210_v13, %v214_v14  ;;  %v6296_v27 = vcombine.low %v211_v15, %v215_v16 }
  0x70   :  { %v6305_v32 = vcombine.high %v219_v24, %v223_v25  ;;  %v231_v33 = vld [vmem:[#allocation2 + $0x4a8] sm:$0xff]  ;;  %v6304_v35 = vcombine.low %v219_v24, %v223_v25 }
  0x71   :  { %4450 = vmatpush1.bf16.msra.mxu0 %v6230_v20  ;;  %4696 = vmatpush1.bf16.msra.mxu1 %v6232_v21  ;;  %v6297_v20 = vcombine.high %v211_v15, %v215_v16  ;;  %v218_v21 = vld [vmem:[#allocation2 + $0x440] sm:$0xff]  ;;  %v239_v41 = vld [vmem:[#allocation2 + $0x4e8] sm:$0xff] }
  0x72   :  { %4451 = vmatprep.subr.bf16.mxu0 %v6239_v22  ;;  %4697 = vmatprep.subr.bf16.mxu1 %v6241_v23  ;;  %v222_v22 = vld [vmem:[#allocation2 + $0x460] sm:$0xff]  ;;  %v7466_v23 = vrot.slane %v7455_v63, %v7446_v53  ;;  %v247_v50 = vld [vmem:[#allocation2 + $0x528] sm:$0xff] }
  0x73   :  { %v6302_v63 = vcombine.low %v218_v21, %v222_v22  ;;  %v255_v60 = vld [vmem:[#allocation2 + $0x568] sm:$0xff] }
  0x74   :  { %v263_v5 = vld [vmem:[#allocation2 + $0x5a8] sm:$0xff] }
  0x75   :  { %4452 = vmatpush1.bf16.msra.mxu0 %v6238_v28  ;;  %4698 = vmatpush1.bf16.msra.mxu1 %v6240_v29  ;;  %v6303_v28 = vcombine.high %v218_v21, %v222_v22  ;;  %v226_v29 = vld [vmem:[#allocation2 + $0x480] sm:$0xff]  ;;  %v271_v14 = vld [vmem:[#allocation2 + $0x5e8] sm:$0xff] }
  0x76   :  { %4453 = vmatprep.subr.bf16.mxu0 %v6247_v30  ;;  %4699 = vmatprep.subr.bf16.mxu1 %v6249_v31  ;;  %v230_v30 = vld [vmem:[#allocation2 + $0x4a0] sm:$0xff]  ;;  %v227_v31 = vld [vmem:[#allocation2 + $0x488] sm:$0xff] }
  0x77   :  { %v6313_v40 = vcombine.high %v227_v31, %v231_v33  ;;  %v6310_v42 = vcombine.low %v226_v29, %v230_v30  ;;  %v6312_v44 = vcombine.low %v227_v31, %v231_v33  ;;  %v279_v22 = vld [vmem:[#allocation2 + $0x628] sm:$0xff] }
  0x78   :  { %v287_v31 = vld [vmem:[#allocation2 + $0x668] sm:$0xff] }
  0x79   :  { %4454 = vmatpush1.bf16.msra.mxu0 %v6246_v36  ;;  %4700 = vmatpush1.bf16.msra.mxu1 %v6248_v37  ;;  %v6311_v36 = vcombine.high %v226_v29, %v230_v30  ;;  %v234_v37 = vld [vmem:[#allocation2 + $0x4c0] sm:$0xff]  ;;  %v283_v29 = vld [vmem:[#allocation2 + $0x648] sm:$0xff] }
  0x7a   :  { %4455 = vmatprep.subr.bf16.mxu0 %v6255_v38  ;;  %4701 = vmatprep.subr.bf16.mxu1 %v6257_v39  ;;  %v238_v38 = vld [vmem:[#allocation2 + $0x4e0] sm:$0xff]  ;;  %v235_v39 = vld [vmem:[#allocation2 + $0x4c8] sm:$0xff] }
  0x7b   :  { %v6321_v49 = vcombine.high %v235_v39, %v239_v41  ;;  %v6318_v51 = vcombine.low %v234_v37, %v238_v38  ;;  %v6320_v52 = vcombine.low %v235_v39, %v239_v41  ;;  %v295_v39 = vld [vmem:[#allocation2 + $0x6a8] sm:$0xff]  ;;  %v6368_v41 = vcombine.low %v283_v29, %v287_v31 }
  0x7d   :  { %4456 = vmatpush1.bf16.msra.mxu0 %v6254_v45  ;;  %4702 = vmatpush1.bf16.msra.mxu1 %v6256_v46  ;;  %v6319_v45 = vcombine.high %v234_v37, %v238_v38  ;;  %v242_v46 = vld [vmem:[#allocation2 + $0x500] sm:$0xff]  ;;  %v291_v37 = vld [vmem:[#allocation2 + $0x688] sm:$0xff]  ;;  %v6369_v38 = vcombine.high %v283_v29, %v287_v31 }
  0x7e   :  { %4457 = vmatprep.subr.bf16.mxu0 %v6263_v47  ;;  %4703 = vmatprep.subr.bf16.mxu1 %v6265_v48  ;;  %v246_v47 = vld [vmem:[#allocation2 + $0x520] sm:$0xff]  ;;  %v243_v48 = vld [vmem:[#allocation2 + $0x508] sm:$0xff] }
  0x7f   :  { %v6329_v58 = vcombine.high %v243_v48, %v247_v50  ;;  %v6326_v61 = vcombine.low %v242_v46, %v246_v47  ;;  %v6328_v62 = vcombine.low %v243_v48, %v247_v50  ;;  %v303_v48 = vld [vmem:[#allocation2 + $0x6e8] sm:$0xff]  ;;  %v6376_v50 = vcombine.low %v291_v37, %v295_v39 }
  0x81   :  { %4458 = vmatpush1.bf16.msra.mxu0 %v6262_v54  ;;  %4704 = vmatpush1.bf16.msra.mxu1 %v6264_v55  ;;  %v6327_v54 = vcombine.high %v242_v46, %v246_v47  ;;  %v250_v55 = vld [vmem:[#allocation2 + $0x540] sm:$0xff]  ;;  %v299_v46 = vld [vmem:[#allocation2 + $0x6c8] sm:$0xff]  ;;  %v6377_v47 = vcombine.high %v291_v37, %v295_v39 }
  0x82   :  { %4459 = vmatprep.subr.bf16.mxu0 %v6271_v56  ;;  %4705 = vmatprep.subr.bf16.mxu1 %v6273_v57  ;;  %v254_v56 = vld [vmem:[#allocation2 + $0x560] sm:$0xff]  ;;  %v251_v57 = vld [vmem:[#allocation2 + $0x548] sm:$0xff] }
  0x83   :  { %v6337_v4 = vcombine.high %v251_v57, %v255_v60  ;;  %v6334_v6 = vcombine.low %v250_v55, %v254_v56  ;;  %v6336_v7 = vcombine.low %v251_v57, %v255_v60  ;;  %v311_v57 = vld [vmem:[#allocation2 + $0x728] sm:$0xff]  ;;  %v6384_v60 = vcombine.low %v299_v46, %v303_v48 }
  0x85   :  { %4460 = vmatpush1.bf16.msra.mxu0 %v6270_v0  ;;  %4706 = vmatpush1.bf16.msra.mxu1 %v6272_v1  ;;  %v6335_v0 = vcombine.high %v250_v55, %v254_v56  ;;  %v258_v1 = vld [vmem:[#allocation2 + $0x580] sm:$0xff]  ;;  %v307_v55 = vld [vmem:[#allocation2 + $0x708] sm:$0xff]  ;;  %v6385_v56 = vcombine.high %v299_v46, %v303_v48 }
  0x86   :  { %4461 = vmatprep.subr.bf16.mxu0 %v6279_v2  ;;  %4707 = vmatprep.subr.bf16.mxu1 %v6281_v3  ;;  %v262_v2 = vld [vmem:[#allocation2 + $0x5a0] sm:$0xff]  ;;  %v259_v3 = vld [vmem:[#allocation2 + $0x588] sm:$0xff] }
  0x87   :  { %v6345_v13 = vcombine.high %v259_v3, %v263_v5  ;;  %v6342_v15 = vcombine.low %v258_v1, %v262_v2  ;;  %v6344_v16 = vcombine.low %v259_v3, %v263_v5  ;;  %v319_v3 = vld [vmem:[#allocation2 + $0x768] sm:$0xff]  ;;  %v6392_v5 = vcombine.low %v307_v55, %v311_v57  ;;  %v354_v46 = vld [vmem:[#allocation2 + $0x880] sm:$0xff] }
  0x89   :  { %4462 = vmatpush1.bf16.msra.mxu0 %v6278_v8  ;;  %4708 = vmatpush1.bf16.msra.mxu1 %v6280_v10  ;;  %v6343_v8 = vcombine.high %v258_v1, %v262_v2  ;;  %v266_v10 = vld [vmem:[#allocation2 + $0x5c0] sm:$0xff]  ;;  %v315_v1 = vld [vmem:[#allocation2 + $0x748] sm:$0xff]  ;;  %v6393_v2 = vcombine.high %v307_v55, %v311_v57 }
  0x8a   :  { %4463 = vmatprep.subr.bf16.mxu0 %v6287_v11  ;;  %4709 = vmatprep.subr.bf16.mxu1 %v6289_v12  ;;  %v270_v11 = vld [vmem:[#allocation2 + $0x5e0] sm:$0xff]  ;;  %v267_v12 = vld [vmem:[#allocation2 + $0x5c8] sm:$0xff] }
  0x8b   :  { %v6353_v21 = vcombine.high %v267_v12, %v271_v14  ;;  %v6350_v24 = vcombine.low %v266_v10, %v270_v11  ;;  %v6352_v25 = vcombine.low %v267_v12, %v271_v14  ;;  %v327_v12 = vld [vmem:[#allocation2 + $0x7a8] sm:$0xff]  ;;  %v6400_v14 = vcombine.low %v315_v1, %v319_v3  ;;  %v366_v57 = vld [vmem:[#allocation2 + $0x8e0] sm:$0xff] }
  0x8d   :  { %4464 = vmatpush1.bf16.msra.mxu0 %v6286_v17  ;;  %4710 = vmatpush1.bf16.msra.mxu1 %v6288_v18  ;;  %v6351_v17 = vcombine.high %v266_v10, %v270_v11  ;;  %v274_v18 = vld [vmem:[#allocation2 + $0x600] sm:$0xff]  ;;  %v323_v10 = vld [vmem:[#allocation2 + $0x788] sm:$0xff]  ;;  %v6401_v11 = vcombine.high %v315_v1, %v319_v3 }
  0x8e   :  { %4474 = vmatprep.subr.bf16.mxu0 %v6295_v19  ;;  %4720 = vmatprep.subr.bf16.mxu1 %v6297_v20  ;;  %v278_v19 = vld [vmem:[#allocation2 + $0x620] sm:$0xff]  ;;  %v275_v20 = vld [vmem:[#allocation2 + $0x608] sm:$0xff] }
  0x8f   :  { %v6361_v30 = vcombine.high %v275_v20, %v279_v22  ;;  %v6360_v33 = vcombine.low %v275_v20, %v279_v22  ;;  %v335_v20 = vld [vmem:[#allocation2 + $0x7e8] sm:$0xff]  ;;  %v374_v3 = vld [vmem:[#allocation2 + $0x920] sm:$0xff] }
  0x90   :  { %4466 = vmatmul.mubr.bf16.vlgmr.msra.gmra.mrb[0].mxu0 %v7466_v23  ;;  %4712 = vmatmul.mubr.bf16.vlgmr.msra.gmra.mrb[0].mxu1 %v7466_v23 }
  0x91   :  { %4475 = vmatpush1.bf16.msra.mxu0 %v6294_v26  ;;  %4721 = vmatpush1.bf16.msra.mxu1 %v6296_v27  ;;  %v6359_v26 = vcombine.high %v274_v18, %v278_v19  ;;  %v282_v27 = vld [vmem:[#allocation2 + $0x640] sm:$0xff] }
  0x92   :  { %4476 = vmatprep.subr.bf16.mxu0 %v6303_v28  ;;  %4722 = vmatprep.subr.bf16.mxu1 %v6305_v32  ;;  %v286_v28 = vld [vmem:[#allocation2 + $0x660] sm:$0xff]  ;;  %v6358_v32 = vcombine.low %v274_v18, %v278_v19  ;;  %v331_v18 = vld [vmem:[#allocation2 + $0x7c8] sm:$0xff]  ;;  %v6409_v19 = vcombine.high %v323_v10, %v327_v12 }
  0x93   :  { %4506 = vmatprep.mubr.bf16.mxu0 %v7470_v34  ;;  %4752 = vmatprep.mubr.bf16.mxu1 %v7470_v34  ;;  %v6417_v29 = vcombine.high %v331_v18, %v335_v20 }
  0x95   :  { %4477 = vmatpush1.bf16.msra.mxu0 %v6302_v63  ;;  %4723 = vmatpush1.bf16.msra.mxu1 %v6304_v35  ;;  %v6367_v63 = vcombine.high %v282_v27, %v286_v28  ;;  %v290_v35 = vld [vmem:[#allocation2 + $0x680] sm:$0xff] }
  0x96   :  { %4478 = vmatprep.subr.bf16.mxu0 %v6311_v36  ;;  %4724 = vmatprep.subr.bf16.mxu1 %v6313_v40  ;;  %v294_v36 = vld [vmem:[#allocation2 + $0x6a0] sm:$0xff]  ;;  %v6366_v40 = vcombine.low %v282_v27, %v286_v28  ;;  %v339_v28 = vld [vmem:[#allocation2 + $0x808] sm:$0xff] }
  0x97   :  { %v342_v27 = vld [vmem:[#allocation2 + $0x820] sm:$0xff] }
  0x99   :  { %4479 = vmatpush1.bf16.msra.mxu0 %v6310_v42  ;;  %4725 = vmatpush1.bf16.msra.mxu1 %v6312_v44  ;;  %v6375_v42 = vcombine.high %v290_v35, %v294_v36  ;;  %v298_v44 = vld [vmem:[#allocation2 + $0x6c0] sm:$0xff] }
  0x9a   :  { %4480 = vmatprep.subr.bf16.mxu0 %v6319_v45  ;;  %4726 = vmatprep.subr.bf16.mxu1 %v6321_v49  ;;  %v302_v45 = vld [vmem:[#allocation2 + $0x6e0] sm:$0xff]  ;;  %v6374_v49 = vcombine.low %v290_v35, %v294_v36  ;;  %v347_v36 = vld [vmem:[#allocation2 + $0x848] sm:$0xff] }
  0x9b   :  { %v350_v35 = vld [vmem:[#allocation2 + $0x860] sm:$0xff] }
  0x9d   :  { %4481 = vmatpush1.bf16.msra.mxu0 %v6318_v51  ;;  %4727 = vmatpush1.bf16.msra.mxu1 %v6320_v52  ;;  %v6383_v51 = vcombine.high %v298_v44, %v302_v45  ;;  %v306_v52 = vld [vmem:[#allocation2 + $0x700] sm:$0xff] }
  0x9e   :  { %4482 = vmatprep.subr.bf16.mxu0 %v6327_v54  ;;  %4728 = vmatprep.subr.bf16.mxu1 %v6329_v58  ;;  %v310_v54 = vld [vmem:[#allocation2 + $0x720] sm:$0xff]  ;;  %v6382_v58 = vcombine.low %v298_v44, %v302_v45 }
  0xa1   :  { %4483 = vmatpush1.bf16.msra.mxu0 %v6326_v61  ;;  %4729 = vmatpush1.bf16.msra.mxu1 %v6328_v62  ;;  %v6391_v61 = vcombine.high %v306_v52, %v310_v54  ;;  %v314_v62 = vld [vmem:[#allocation2 + $0x740] sm:$0xff] }
  0xa2   :  { %4484 = vmatprep.subr.bf16.mxu0 %v6335_v0  ;;  %4730 = vmatprep.subr.bf16.mxu1 %v6337_v4  ;;  %v318_v0 = vld [vmem:[#allocation2 + $0x760] sm:$0xff]  ;;  %v6390_v4 = vcombine.low %v306_v52, %v310_v54 }
  0xa5   :  { %4485 = vmatpush1.bf16.msra.mxu0 %v6334_v6  ;;  %4731 = vmatpush1.bf16.msra.mxu1 %v6336_v7  ;;  %v6399_v6 = vcombine.high %v314_v62, %v318_v0  ;;  %v322_v7 = vld [vmem:[#allocation2 + $0x780] sm:$0xff] }
  0xa6   :  { %4486 = vmatprep.subr.bf16.mxu0 %v6343_v8  ;;  %4732 = vmatprep.subr.bf16.mxu1 %v6345_v13  ;;  %v326_v8 = vld [vmem:[#allocation2 + $0x7a0] sm:$0xff]  ;;  %v6398_v13 = vcombine.low %v314_v62, %v318_v0 }
  0xa7   :  { %v6406_v22 = vcombine.low %v322_v7, %v326_v8 }
  0xa9   :  { %4487 = vmatpush1.bf16.msra.mxu0 %v6342_v15  ;;  %4733 = vmatpush1.bf16.msra.mxu1 %v6344_v16  ;;  %v6407_v15 = vcombine.high %v322_v7, %v326_v8  ;;  %v330_v16 = vld [vmem:[#allocation2 + $0x7c0] sm:$0xff] }
  0xaa   :  { %4488 = vmatprep.subr.bf16.mxu0 %v6351_v17  ;;  %4734 = vmatprep.subr.bf16.mxu1 %v6353_v21  ;;  %v334_v17 = vld [vmem:[#allocation2 + $0x7e0] sm:$0xff]  ;;  %v830_v21 = vcombine.high %v7451_v59, %v7451_v59  ;;  %v6416_v59 = vcombine.low %v331_v18, %v335_v20 }
  0xab   :  { %v390_v20 = vld [vmem:[#allocation2 + $0x9a0] sm:$0xff] }
  0xac   :  { %v7479_v31 = vrot.slane %v830_v21, %v7446_v53  ;;  %v387_v21 = vld [vmem:[#allocation2 + $0x988] sm:$0xff] }
  0xad   :  { %4489 = vmatpush1.bf16.msra.mxu0 %v6350_v24  ;;  %4735 = vmatpush1.bf16.msra.mxu1 %v6352_v25  ;;  %v6408_v24 = vcombine.low %v323_v10, %v327_v12  ;;  %v6415_v25 = vcombine.high %v330_v16, %v334_v17  ;;  %v382_v12 = vld [vmem:[#allocation2 + $0x960] sm:$0xff] }
  0xae   :  { %4490 = vmatprep.subr.bf16.mxu0 %v6359_v26  ;;  %4736 = vmatprep.subr.bf16.mxu1 %v6361_v30  ;;  %v338_v26 = vld [vmem:[#allocation2 + $0x800] sm:$0xff]  ;;  %v343_v30 = vld [vmem:[#allocation2 + $0x828] sm:$0xff]  ;;  %v846_v39 = vcombine.high %v7479_v31, %v7479_v31 }
  0xaf   :  { %v6425_v37 = vcombine.high %v339_v28, %v343_v30 }
  0xb0   :  { %v7488_v48 = vrot.slane %v846_v39, %v7446_v53  ;;  %v407_v39 = vld [vmem:[#allocation2 + $0xa28] sm:$0xff] }
  0xb1   :  { %4491 = vmatpush1.bf16.msra.mxu0 %v6358_v32  ;;  %4737 = vmatpush1.bf16.msra.mxu1 %v6360_v33  ;;  %v6414_v32 = vcombine.low %v330_v16, %v334_v17  ;;  %v6423_v33 = vcombine.high %v338_v26, %v342_v27 }
  0xb2   :  { %4492 = vmatprep.subr.bf16.mxu0 %v6367_v63  ;;  %4738 = vmatprep.subr.bf16.mxu1 %v6369_v38  ;;  %v346_v63 = vld [vmem:[#allocation2 + $0x840] sm:$0xff]  ;;  %v351_v38 = vld [vmem:[#allocation2 + $0x868] sm:$0xff] }
  0xb3   :  { %v6431_v44 = vcombine.high %v346_v63, %v350_v35  ;;  %v6433_v45 = vcombine.high %v347_v36, %v351_v38  ;;  %v6432_v52 = vcombine.low %v347_v36, %v351_v38  ;;  %v402_v36 = vld [vmem:[#allocation2 + $0xa00] sm:$0xff]  ;;  %v403_v38 = vld [vmem:[#allocation2 + $0xa08] sm:$0xff] }
  0xb5   :  { %4493 = vmatpush1.bf16.msra.mxu0 %v6366_v40  ;;  %4739 = vmatpush1.bf16.msra.mxu1 %v6368_v41  ;;  %v7485_v40 = vcombine.high %v7466_v23, %v7466_v23  ;;  %v6422_v41 = vcombine.low %v338_v26, %v342_v27 }
  0xb6   :  { %4494 = vmatprep.subr.bf16.mxu0 %v6375_v42  ;;  %4740 = vmatprep.subr.bf16.mxu1 %v6377_v47  ;;  %v6424_v42 = vcombine.low %v339_v28, %v343_v30  ;;  %v358_v47 = vld [vmem:[#allocation2 + $0x8a0] sm:$0xff]  ;;  %v395_v30 = vld [vmem:[#allocation2 + $0x9c8] sm:$0xff] }
  0xb7   :  { %v6439_v54 = vcombine.high %v354_v46, %v358_v47  ;;  %v394_v28 = vld [vmem:[#allocation2 + $0x9c0] sm:$0xff] }
  0xb9   :  { %4495 = vmatpush1.bf16.msra.mxu0 %v6374_v49  ;;  %4741 = vmatpush1.bf16.msra.mxu1 %v6376_v50  ;;  %v355_v49 = vld [vmem:[#allocation2 + $0x888] sm:$0xff] }
  0xba   :  { %4496 = vmatprep.subr.bf16.mxu0 %v6383_v51  ;;  %4742 = vmatprep.subr.bf16.mxu1 %v6385_v56  ;;  %v359_v50 = vld [vmem:[#allocation2 + $0x8a8] sm:$0xff]  ;;  %v6430_v51 = vcombine.low %v346_v63, %v350_v35  ;;  %v362_v56 = vld [vmem:[#allocation2 + $0x8c0] sm:$0xff] }
  0xbb   :  { %v6441_v55 = vcombine.high %v355_v49, %v359_v50  ;;  %v6440_v62 = vcombine.low %v355_v49, %v359_v50  ;;  %v6447_v0 = vcombine.high %v362_v56, %v366_v57  ;;  %v411_v49 = vld [vmem:[#allocation2 + $0xa48] sm:$0xff] }
  0xbc   :  { %v415_v50 = vld [vmem:[#allocation2 + $0xa68] sm:$0xff] }
  0xbd   :  { %4497 = vmatpush1.bf16.msra.mxu0 %v6382_v58  ;;  %4743 = vmatpush1.bf16.msra.mxu1 %v6384_v60  ;;  %v363_v58 = vld [vmem:[#allocation2 + $0x8c8] sm:$0xff] }
  0xbe   :  { %4498 = vmatprep.subr.bf16.mxu0 %v6391_v61  ;;  %4744 = vmatprep.subr.bf16.mxu1 %v6393_v2  ;;  %v367_v60 = vld [vmem:[#allocation2 + $0x8e8] sm:$0xff]  ;;  %v6438_v61 = vcombine.low %v354_v46, %v358_v47  ;;  %v370_v2 = vld [vmem:[#allocation2 + $0x900] sm:$0xff] }
  0xbf   :  { %v6449_v1 = vcombine.high %v363_v58, %v367_v60  ;;  %v6448_v7 = vcombine.low %v363_v58, %v367_v60  ;;  %v6455_v8 = vcombine.high %v370_v2, %v374_v3  ;;  %v410_v46 = vld [vmem:[#allocation2 + $0xa40] sm:$0xff]  ;;  %v419_v58 = vld [vmem:[#allocation2 + $0xa88] sm:$0xff] }
  0xc0   :  { %v414_v47 = vld [vmem:[#allocation2 + $0xa60] sm:$0xff]  ;;  %v423_v60 = vld [vmem:[#allocation2 + $0xaa8] sm:$0xff] }
  0xc1   :  { %4499 = vmatpush1.bf16.msra.mxu0 %v6390_v4  ;;  %4745 = vmatpush1.bf16.msra.mxu1 %v6392_v5  ;;  %v371_v4 = vld [vmem:[#allocation2 + $0x908] sm:$0xff] }
  0xc2   :  { %4500 = vmatprep.subr.bf16.mxu0 %v6399_v6  ;;  %4746 = vmatprep.subr.bf16.mxu1 %v6401_v11  ;;  %v375_v5 = vld [vmem:[#allocation2 + $0x928] sm:$0xff]  ;;  %v6446_v6 = vcombine.low %v362_v56, %v366_v57  ;;  %v378_v11 = vld [vmem:[#allocation2 + $0x940] sm:$0xff] }
  0xc3   :  { %v6457_v10 = vcombine.high %v371_v4, %v375_v5  ;;  %v6456_v16 = vcombine.low %v371_v4, %v375_v5  ;;  %v6463_v17 = vcombine.high %v378_v11, %v382_v12  ;;  %v418_v56 = vld [vmem:[#allocation2 + $0xa80] sm:$0xff]  ;;  %v427_v4 = vld [vmem:[#allocation2 + $0xac8] sm:$0xff] }
  0xc4   :  { %v422_v57 = vld [vmem:[#allocation2 + $0xaa0] sm:$0xff]  ;;  %v431_v5 = vld [vmem:[#allocation2 + $0xae8] sm:$0xff] }
  0xc5   :  { %4501 = vmatpush1.bf16.msra.mxu0 %v6398_v13  ;;  %4747 = vmatpush1.bf16.msra.mxu1 %v6400_v14  ;;  %v379_v13 = vld [vmem:[#allocation2 + $0x948] sm:$0xff] }
  0xc6   :  { %4502 = vmatprep.subr.bf16.mxu0 %v6407_v15  ;;  %4748 = vmatprep.subr.bf16.mxu1 %v6409_v19  ;;  %v383_v14 = vld [vmem:[#allocation2 + $0x968] sm:$0xff]  ;;  %v6454_v15 = vcombine.low %v370_v2, %v374_v3  ;;  %v386_v19 = vld [vmem:[#allocation2 + $0x980] sm:$0xff] }
  0xc7   :  { %v6465_v18 = vcombine.high %v379_v13, %v383_v14  ;;  %v6471_v26 = vcombine.high %v386_v19, %v390_v20  ;;  %v426_v2 = vld [vmem:[#allocation2 + $0xac0] sm:$0xff] }
  0xc8   :  { %v430_v3 = vld [vmem:[#allocation2 + $0xae0] sm:$0xff] }
  0xc9   :  { %4503 = vmatpush1.bf16.msra.mxu0 %v6406_v22  ;;  %4749 = vmatpush1.bf16.msra.mxu1 %v6408_v24  ;;  %v391_v22 = vld [vmem:[#allocation2 + $0x9a8] sm:$0xff]  ;;  %v6462_v24 = vcombine.low %v378_v11, %v382_v12  ;;  %v434_v11 = vld [vmem:[#allocation2 + $0xb00] sm:$0xff] }
  0xca   :  { %4504 = vmatprep.subr.bf16.mxu0 %v6415_v25  ;;  %4750 = vmatprep.subr.bf16.mxu1 %v6417_v29  ;;  %v6464_v25 = vcombine.low %v379_v13, %v383_v14  ;;  %v6473_v27 = vcombine.high %v387_v21, %v391_v22  ;;  %v398_v29 = vld [vmem:[#allocation2 + $0x9e0] sm:$0xff]  ;;  %v435_v13 = vld [vmem:[#allocation2 + $0xb08] sm:$0xff] }
  0xcb   :  { %v6479_v63 = vcombine.high %v394_v28, %v398_v29  ;;  %v438_v12 = vld [vmem:[#allocation2 + $0xb20] sm:$0xff]  ;;  %v439_v14 = vld [vmem:[#allocation2 + $0xb28] sm:$0xff] }
  0xcd   :  { %4505 = vmatpush1.bf16.msra.mxu0 %v6414_v32  ;;  %4751 = vmatpush1.bf16.msra.mxu1 %v6416_v59  ;;  %v399_v32 = vld [vmem:[#allocation2 + $0x9e8] sm:$0xff]  ;;  %v6470_v59 = vcombine.low %v386_v19, %v390_v20  ;;  %v442_v19 = vld [vmem:[#allocation2 + $0xb40] sm:$0xff] }
  0xce   :  { %4515 = vmatprep.subr.bf16.mxu0 %v6423_v33  ;;  %4761 = vmatprep.subr.bf16.mxu1 %v6425_v37  ;;  %v6472_v33 = vcombine.low %v387_v21, %v391_v22  ;;  %v6481_v35 = vcombine.high %v395_v30, %v399_v32  ;;  %v406_v37 = vld [vmem:[#allocation2 + $0xa20] sm:$0xff]  ;;  %v443_v21 = vld [vmem:[#allocation2 + $0xb48] sm:$0xff] }
  0xcf   :  { %v446_v20 = vld [vmem:[#allocation2 + $0xb60] sm:$0xff]  ;;  %v447_v22 = vld [vmem:[#allocation2 + $0xb68] sm:$0xff] }
  0xd0   :  { %4507 = vmatmul.mubr.bf16.vlgmr.msra.gmra.mrb[0].mxu0 %v7485_v40  ;;  %4753 = vmatmul.mubr.bf16.vlgmr.msra.gmra.mrb[0].mxu1 %v7485_v40 }
  0xd1   :  { %4516 = vmatpush1.bf16.msra.mxu0 %v6422_v41  ;;  %4762 = vmatpush1.bf16.msra.mxu1 %v6424_v42  ;;  %v6478_v41 = vcombine.low %v394_v28, %v398_v29  ;;  %v6480_v42 = vcombine.low %v395_v30, %v399_v32  ;;  %v450_v28 = vld [vmem:[#allocation2 + $0xb80] sm:$0xff]  ;;  %v451_v30 = vld [vmem:[#allocation2 + $0xb88] sm:$0xff] }
  0xd2   :  { %4517 = vmatprep.subr.bf16.mxu0 %v6431_v44  ;;  %4763 = vmatprep.subr.bf16.mxu1 %v6433_v45  ;;  %v6487_v44 = vcombine.high %v402_v36, %v406_v37  ;;  %v6489_v45 = vcombine.high %v403_v38, %v407_v39  ;;  %v454_v29 = vld [vmem:[#allocation2 + $0xba0] sm:$0xff]  ;;  %v455_v32 = vld [vmem:[#allocation2 + $0xba8] sm:$0xff] }
  0xd3   :  { %4547 = vmatprep.mubr.bf16.mxu0 %v7488_v48  ;;  %4793 = vmatprep.mubr.bf16.mxu1 %v7488_v48 }
  0xd5   :  { %4518 = vmatpush1.bf16.msra.mxu0 %v6430_v51  ;;  %4764 = vmatpush1.bf16.msra.mxu1 %v6432_v52  ;;  %v6486_v51 = vcombine.low %v402_v36, %v406_v37  ;;  %v6488_v52 = vcombine.low %v403_v38, %v407_v39  ;;  %v458_v36 = vld [vmem:[#allocation2 + $0xbc0] sm:$0xff]  ;;  %v459_v38 = vld [vmem:[#allocation2 + $0xbc8] sm:$0xff] }
  0xd6   :  { %4519 = vmatprep.subr.bf16.mxu0 %v6439_v54  ;;  %4765 = vmatprep.subr.bf16.mxu1 %v6441_v55  ;;  %v6495_v54 = vcombine.high %v410_v46, %v414_v47  ;;  %v6497_v55 = vcombine.high %v411_v49, %v415_v50  ;;  %v462_v37 = vld [vmem:[#allocation2 + $0xbe0] sm:$0xff]  ;;  %v463_v39 = vld [vmem:[#allocation2 + $0xbe8] sm:$0xff] }
  0xd9   :  { %4520 = vmatpush1.bf16.msra.mxu0 %v6438_v61  ;;  %4766 = vmatpush1.bf16.msra.mxu1 %v6440_v62  ;;  %v6494_v61 = vcombine.low %v410_v46, %v414_v47  ;;  %v6496_v62 = vcombine.low %v411_v49, %v415_v50  ;;  %v466_v46 = vld [vmem:[#allocation2 + $0xc00] sm:$0xff]  ;;  %v467_v49 = vld [vmem:[#allocation2 + $0xc08] sm:$0xff] }
  0xda   :  { %4521 = vmatprep.subr.bf16.mxu0 %v6447_v0  ;;  %4767 = vmatprep.subr.bf16.mxu1 %v6449_v1  ;;  %v6503_v0 = vcombine.high %v418_v56, %v422_v57  ;;  %v6505_v1 = vcombine.high %v419_v58, %v423_v60  ;;  %v470_v47 = vld [vmem:[#allocation2 + $0xc20] sm:$0xff]  ;;  %v471_v50 = vld [vmem:[#allocation2 + $0xc28] sm:$0xff] }
  0xdd   :  { %4522 = vmatpush1.bf16.msra.mxu0 %v6446_v6  ;;  %4768 = vmatpush1.bf16.msra.mxu1 %v6448_v7  ;;  %v6502_v6 = vcombine.low %v418_v56, %v422_v57  ;;  %v6504_v7 = vcombine.low %v419_v58, %v423_v60  ;;  %v474_v56 = vld [vmem:[#allocation2 + $0xc40] sm:$0xff]  ;;  %v7496_v58 = vrot.slane %v7479_v31, %v7446_v53  ;;  %v475_v60 = vld [vmem:[#allocation2 + $0xc48] sm:$0xff] }
  0xde   :  { %4523 = vmatprep.subr.bf16.mxu0 %v6455_v8  ;;  %4769 = vmatprep.subr.bf16.mxu1 %v6457_v10  ;;  %v6511_v8 = vcombine.high %v426_v2, %v430_v3  ;;  %v6513_v10 = vcombine.high %v427_v4, %v431_v5  ;;  %v478_v57 = vld [vmem:[#allocation2 + $0xc60] sm:$0xff]  ;;  %v483_v31 = vld [vmem:[#allocation2 + $0xc88] sm:$0xff] }
  0xe1   :  { %4524 = vmatpush1.bf16.msra.mxu0 %v6454_v15  ;;  %4770 = vmatpush1.bf16.msra.mxu1 %v6456_v16  ;;  %v6510_v15 = vcombine.low %v426_v2, %v430_v3  ;;  %v6512_v16 = vcombine.low %v427_v4, %v431_v5  ;;  %v482_v3 = vld [vmem:[#allocation2 + $0xc80] sm:$0xff]  ;;  %v7500_v5 = vcombine.high %v7488_v48, %v7488_v48 }
  0xe2   :  { %4525 = vmatprep.subr.bf16.mxu0 %v6463_v17  ;;  %4771 = vmatprep.subr.bf16.mxu1 %v6465_v18  ;;  %v6519_v17 = vcombine.high %v434_v11, %v438_v12  ;;  %v6521_v18 = vcombine.high %v435_v13, %v439_v14  ;;  %v486_v4 = vld [vmem:[#allocation2 + $0xca0] sm:$0xff] }
  0xe5   :  { %4526 = vmatpush1.bf16.msra.mxu0 %v6462_v24  ;;  %4772 = vmatpush1.bf16.msra.mxu1 %v6464_v25  ;;  %v6518_v24 = vcombine.low %v434_v11, %v438_v12  ;;  %v6520_v25 = vcombine.low %v435_v13, %v439_v14  ;;  %v490_v12 = vld [vmem:[#allocation2 + $0xcc0] sm:$0xff]  ;;  %v491_v14 = vld [vmem:[#allocation2 + $0xcc8] sm:$0xff] }
  0xe6   :  { %4527 = vmatprep.subr.bf16.mxu0 %v6471_v26  ;;  %4773 = vmatprep.subr.bf16.mxu1 %v6473_v27  ;;  %v6527_v26 = vcombine.high %v442_v19, %v446_v20  ;;  %v6529_v27 = vcombine.high %v443_v21, %v447_v22  ;;  %v494_v13 = vld [vmem:[#allocation2 + $0xce0] sm:$0xff] }
  0xe9   :  { %4528 = vmatpush1.bf16.msra.mxu0 %v6470_v59  ;;  %4774 = vmatpush1.bf16.msra.mxu1 %v6472_v33  ;;  %v6526_v59 = vcombine.low %v442_v19, %v446_v20  ;;  %v6528_v33 = vcombine.low %v443_v21, %v447_v22  ;;  %v498_v20 = vld [vmem:[#allocation2 + $0xd00] sm:$0xff]  ;;  %v499_v22 = vld [vmem:[#allocation2 + $0xd08] sm:$0xff] }
  0xea   :  { %4529 = vmatprep.subr.bf16.mxu0 %v6479_v63  ;;  %4775 = vmatprep.subr.bf16.mxu1 %v6481_v35  ;;  %v6535_v63 = vcombine.high %v450_v28, %v454_v29  ;;  %v6537_v35 = vcombine.high %v451_v30, %v455_v32  ;;  %v502_v21 = vld [vmem:[#allocation2 + $0xd20] sm:$0xff] }
  0xed   :  { %4530 = vmatpush1.bf16.msra.mxu0 %v6478_v41  ;;  %4776 = vmatpush1.bf16.msra.mxu1 %v6480_v42  ;;  %v6534_v41 = vcombine.low %v450_v28, %v454_v29  ;;  %v6536_v42 = vcombine.low %v451_v30, %v455_v32  ;;  %v506_v29 = vld [vmem:[#allocation2 + $0xd40] sm:$0xff]  ;;  %v507_v32 = vld [vmem:[#allocation2 + $0xd48] sm:$0xff] }
  0xee   :  { %4531 = vmatprep.subr.bf16.mxu0 %v6487_v44  ;;  %4777 = vmatprep.subr.bf16.mxu1 %v6489_v45  ;;  %v6543_v44 = vcombine.high %v458_v36, %v462_v37  ;;  %v6545_v45 = vcombine.high %v459_v38, %v463_v39  ;;  %v510_v30 = vld [vmem:[#allocation2 + $0xd60] sm:$0xff] }
  0xf1   :  { %4532 = vmatpush1.bf16.msra.mxu0 %v6486_v51  ;;  %4778 = vmatpush1.bf16.msra.mxu1 %v6488_v52  ;;  %v6542_v51 = vcombine.low %v458_v36, %v462_v37  ;;  %v6544_v52 = vcombine.low %v459_v38, %v463_v39  ;;  %v514_v37 = vld [vmem:[#allocation2 + $0xd80] sm:$0xff]  ;;  %v515_v39 = vld [vmem:[#allocation2 + $0xd88] sm:$0xff] }
  0xf2   :  { %4533 = vmatprep.subr.bf16.mxu0 %v6495_v54  ;;  %4779 = vmatprep.subr.bf16.mxu1 %v6497_v55  ;;  %v6551_v54 = vcombine.high %v466_v46, %v470_v47  ;;  %v6553_v55 = vcombine.high %v467_v49, %v471_v50  ;;  %v518_v38 = vld [vmem:[#allocation2 + $0xda0] sm:$0xff] }
  0xf5   :  { %4534 = vmatpush1.bf16.msra.mxu0 %v6494_v61  ;;  %4780 = vmatpush1.bf16.msra.mxu1 %v6496_v62  ;;  %v479_v61 = vld [vmem:[#allocation2 + $0xc68] sm:$0xff]  ;;  %v6550_v62 = vcombine.low %v466_v46, %v470_v47  ;;  %v522_v47 = vld [vmem:[#allocation2 + $0xdc0] sm:$0xff] }
  0xf6   :  { %4535 = vmatprep.subr.bf16.mxu0 %v6503_v0  ;;  %4781 = vmatprep.subr.bf16.mxu1 %v6505_v1  ;;  %v6552_v0 = vcombine.low %v467_v49, %v471_v50  ;;  %v6559_v1 = vcombine.high %v474_v56, %v478_v57  ;;  %v6561_v2 = vcombine.high %v475_v60, %v479_v61  ;;  %v526_v49 = vld [vmem:[#allocation2 + $0xde0] sm:$0xff]  ;;  %v523_v50 = vld [vmem:[#allocation2 + $0xdc8] sm:$0xff] }
  0xf9   :  { %4536 = vmatpush1.bf16.msra.mxu0 %v6502_v6  ;;  %4782 = vmatpush1.bf16.msra.mxu1 %v6504_v7  ;;  %v487_v6 = vld [vmem:[#allocation2 + $0xca8] sm:$0xff]  ;;  %v6558_v7 = vcombine.low %v474_v56, %v478_v57  ;;  %v530_v57 = vld [vmem:[#allocation2 + $0xe00] sm:$0xff] }
  0xfa   :  { %4537 = vmatprep.subr.bf16.mxu0 %v6511_v8  ;;  %4783 = vmatprep.subr.bf16.mxu1 %v6513_v10  ;;  %v6560_v8 = vcombine.low %v475_v60, %v479_v61  ;;  %v6567_v10 = vcombine.high %v482_v3, %v486_v4  ;;  %v6569_v11 = vcombine.high %v483_v31, %v487_v6  ;;  %v534_v60 = vld [vmem:[#allocation2 + $0xe20] sm:$0xff]  ;;  %v531_v61 = vld [vmem:[#allocation2 + $0xe08] sm:$0xff] }
  0xfd   :  { %4538 = vmatpush1.bf16.msra.mxu0 %v6510_v15  ;;  %4784 = vmatpush1.bf16.msra.mxu1 %v6512_v16  ;;  %v495_v15 = vld [vmem:[#allocation2 + $0xce8] sm:$0xff]  ;;  %v6566_v16 = vcombine.low %v482_v3, %v486_v4  ;;  %v538_v4 = vld [vmem:[#allocation2 + $0xe40] sm:$0xff] }
  0xfe   :  { %4539 = vmatprep.subr.bf16.mxu0 %v6519_v17  ;;  %4785 = vmatprep.subr.bf16.mxu1 %v6521_v18  ;;  %v6568_v17 = vcombine.low %v483_v31, %v487_v6  ;;  %v6575_v18 = vcombine.high %v490_v12, %v494_v13  ;;  %v6577_v19 = vcombine.high %v491_v14, %v495_v15  ;;  %v542_v31 = vld [vmem:[#allocation2 + $0xe60] sm:$0xff]  ;;  %v539_v6 = vld [vmem:[#allocation2 + $0xe48] sm:$0xff] }
 0x101   :  { %4540 = vmatpush1.bf16.msra.mxu0 %v6518_v24  ;;  %4786 = vmatpush1.bf16.msra.mxu1 %v6520_v25  ;;  %v503_v24 = vld [vmem:[#allocation2 + $0xd28] sm:$0xff]  ;;  %v6574_v25 = vcombine.low %v490_v12, %v494_v13  ;;  %v546_v13 = vld [vmem:[#allocation2 + $0xe80] sm:$0xff] }
 0x102   :  { %4541 = vmatprep.subr.bf16.mxu0 %v6527_v26  ;;  %4787 = vmatprep.subr.bf16.mxu1 %v6529_v27  ;;  %v6576_v26 = vcombine.low %v491_v14, %v495_v15  ;;  %v6583_v27 = vcombine.high %v498_v20, %v502_v21  ;;  %v6585_v28 = vcombine.high %v499_v22, %v503_v24  ;;  %v550_v14 = vld [vmem:[#allocation2 + $0xea0] sm:$0xff]  ;;  %v547_v15 = vld [vmem:[#allocation2 + $0xe88] sm:$0xff] }
 0x105   :  { %4542 = vmatpush1.bf16.msra.mxu0 %v6526_v59  ;;  %4788 = vmatpush1.bf16.msra.mxu1 %v6528_v33  ;;  %v511_v59 = vld [vmem:[#allocation2 + $0xd68] sm:$0xff]  ;;  %v6582_v33 = vcombine.low %v498_v20, %v502_v21  ;;  %v554_v21 = vld [vmem:[#allocation2 + $0xec0] sm:$0xff] }
 0x106   :  { %4543 = vmatprep.subr.bf16.mxu0 %v6535_v63  ;;  %4789 = vmatprep.subr.bf16.mxu1 %v6537_v35  ;;  %v6584_v63 = vcombine.low %v499_v22, %v503_v24  ;;  %v6591_v35 = vcombine.high %v506_v29, %v510_v30  ;;  %v6593_v36 = vcombine.high %v507_v32, %v511_v59  ;;  %v558_v22 = vld [vmem:[#allocation2 + $0xee0] sm:$0xff]  ;;  %v555_v24 = vld [vmem:[#allocation2 + $0xec8] sm:$0xff] }
 0x109   :  { %4544 = vmatpush1.bf16.msra.mxu0 %v6534_v41  ;;  %4790 = vmatpush1.bf16.msra.mxu1 %v6536_v42  ;;  %v519_v41 = vld [vmem:[#allocation2 + $0xda8] sm:$0xff]  ;;  %v6590_v42 = vcombine.low %v506_v29, %v510_v30  ;;  %v562_v30 = vld [vmem:[#allocation2 + $0xf00] sm:$0xff] }
 0x10a   :  { %4545 = vmatprep.subr.bf16.mxu0 %v6543_v44  ;;  %4791 = vmatprep.subr.bf16.mxu1 %v6545_v45  ;;  %v6592_v44 = vcombine.low %v507_v32, %v511_v59  ;;  %v6599_v45 = vcombine.high %v514_v37, %v518_v38  ;;  %v6601_v46 = vcombine.high %v515_v39, %v519_v41  ;;  %v566_v32 = vld [vmem:[#allocation2 + $0xf20] sm:$0xff]  ;;  %v563_v59 = vld [vmem:[#allocation2 + $0xf08] sm:$0xff] }
 0x10d   :  { %4546 = vmatpush1.bf16.msra.mxu0 %v6542_v51  ;;  %4792 = vmatpush1.bf16.msra.mxu1 %v6544_v52  ;;  %v527_v51 = vld [vmem:[#allocation2 + $0xde8] sm:$0xff]  ;;  %v6598_v52 = vcombine.low %v514_v37, %v518_v38  ;;  %v570_v38 = vld [vmem:[#allocation2 + $0xf40] sm:$0xff] }
 0x10e   :  { %4556 = vmatprep.subr.bf16.mxu0 %v6551_v54  ;;  %4802 = vmatprep.subr.bf16.mxu1 %v6553_v55  ;;  %v6600_v54 = vcombine.low %v515_v39, %v519_v41  ;;  %v6607_v55 = vcombine.high %v522_v47, %v526_v49  ;;  %v6609_v56 = vcombine.high %v523_v50, %v527_v51  ;;  %v574_v39 = vld [vmem:[#allocation2 + $0xf60] sm:$0xff]  ;;  %v571_v41 = vld [vmem:[#allocation2 + $0xf48] sm:$0xff] }
 0x110   :  { %4548 = vmatmul.mubr.bf16.vlgmr.msra.gmra.mrb[0].mxu0 %v7496_v58  ;;  %4794 = vmatmul.mubr.bf16.vlgmr.msra.gmra.mrb[0].mxu1 %v7496_v58 }
 0x111   :  { %4557 = vmatpush1.bf16.msra.mxu0 %v6550_v62  ;;  %4803 = vmatpush1.bf16.msra.mxu1 %v6552_v0  ;;  %v535_v62 = vld [vmem:[#allocation2 + $0xe28] sm:$0xff]  ;;  %v6606_v0 = vcombine.low %v522_v47, %v526_v49  ;;  %v578_v49 = vld [vmem:[#allocation2 + $0xf80] sm:$0xff] }
 0x112   :  { %4558 = vmatprep.subr.bf16.mxu0 %v6559_v1  ;;  %4804 = vmatprep.subr.bf16.mxu1 %v6561_v2  ;;  %v6608_v1 = vcombine.low %v523_v50, %v527_v51  ;;  %v6615_v2 = vcombine.high %v530_v57, %v534_v60  ;;  %v6617_v3 = vcombine.high %v531_v61, %v535_v62  ;;  %v582_v50 = vld [vmem:[#allocation2 + $0xfa0] sm:$0xff]  ;;  %v579_v51 = vld [vmem:[#allocation2 + $0xf88] sm:$0xff] }
 0x113   :  { %4588 = vmatprep.mubr.bf16.mxu0 %v7500_v5  ;;  %4834 = vmatprep.mubr.bf16.mxu1 %v7500_v5 }
 0x115   :  { %4559 = vmatpush1.bf16.msra.mxu0 %v6558_v7  ;;  %4805 = vmatpush1.bf16.msra.mxu1 %v6560_v8  ;;  %v543_v7 = vld [vmem:[#allocation2 + $0xe68] sm:$0xff]  ;;  %v6614_v8 = vcombine.low %v530_v57, %v534_v60  ;;  %v586_v60 = vld [vmem:[#allocation2 + $0xfc0] sm:$0xff] }
 0x116   :  { %4560 = vmatprep.subr.bf16.mxu0 %v6567_v10  ;;  %4806 = vmatprep.subr.bf16.mxu1 %v6569_v11  ;;  %v6616_v10 = vcombine.low %v531_v61, %v535_v62  ;;  %v6623_v11 = vcombine.high %v538_v4, %v542_v31  ;;  %v6625_v12 = vcombine.high %v539_v6, %v543_v7  ;;  %v590_v61 = vld [vmem:[#allocation2 + $0xfe0] sm:$0xff]  ;;  %v587_v62 = vld [vmem:[#allocation2 + $0xfc8] sm:$0xff] }
 0x119   :  { %4561 = vmatpush1.bf16.msra.mxu0 %v6566_v16  ;;  %4807 = vmatpush1.bf16.msra.mxu1 %v6568_v17  ;;  %v551_v16 = vld [vmem:[#allocation2 + $0xea8] sm:$0xff]  ;;  %v6622_v17 = vcombine.low %v538_v4, %v542_v31  ;;  %v594_v31 = vld [vmem:[#allocation2 + $0x1000] sm:$0xff] }
 0x11a   :  { %4562 = vmatprep.subr.bf16.mxu0 %v6575_v18  ;;  %4808 = vmatprep.subr.bf16.mxu1 %v6577_v19  ;;  %v6624_v18 = vcombine.low %v539_v6, %v543_v7  ;;  %v6631_v19 = vcombine.high %v546_v13, %v550_v14  ;;  %v6633_v20 = vcombine.high %v547_v15, %v551_v16  ;;  %v598_v6 = vld [vmem:[#allocation2 + $0x1020] sm:$0xff]  ;;  %v595_v7 = vld [vmem:[#allocation2 + $0x1008] sm:$0xff] }
 0x11d   :  { %4563 = vmatpush1.bf16.msra.mxu0 %v6574_v25  ;;  %4809 = vmatpush1.bf16.msra.mxu1 %v6576_v26  ;;  %v559_v25 = vld [vmem:[#allocation2 + $0xee8] sm:$0xff]  ;;  %v6630_v26 = vcombine.low %v546_v13, %v550_v14  ;;  %v6679_v13 = vcombine.high %v594_v31, %v598_v6 }
 0x11e   :  { %4564 = vmatprep.subr.bf16.mxu0 %v6583_v27  ;;  %4810 = vmatprep.subr.bf16.mxu1 %v6585_v28  ;;  %v6632_v27 = vcombine.low %v547_v15, %v551_v16  ;;  %v6639_v28 = vcombine.high %v554_v21, %v558_v22  ;;  %v6641_v29 = vcombine.high %v555_v24, %v559_v25  ;;  %v602_v15 = vld [vmem:[#allocation2 + $0x1040] sm:$0xff] }
 0x11f   :  { %v606_v16 = vld [vmem:[#allocation2 + $0x1060] sm:$0xff] }
 0x121   :  { %4565 = vmatpush1.bf16.msra.mxu0 %v6582_v33  ;;  %4811 = vmatpush1.bf16.msra.mxu1 %v6584_v63  ;;  %v567_v33 = vld [vmem:[#allocation2 + $0xf28] sm:$0xff]  ;;  %v6638_v63 = vcombine.low %v554_v21, %v558_v22  ;;  %v6678_v21 = vcombine.low %v594_v31, %v598_v6 }
 0x122   :  { %4566 = vmatprep.subr.bf16.mxu0 %v6591_v35  ;;  %4812 = vmatprep.subr.bf16.mxu1 %v6593_v36  ;;  %v6640_v35 = vcombine.low %v555_v24, %v559_v25  ;;  %v6647_v36 = vcombine.high %v562_v30, %v566_v32  ;;  %v6649_v37 = vcombine.high %v563_v59, %v567_v33  ;;  %v647_v31 = vld [vmem:[#allocation2 + $0x11a8] sm:$0xff] }
 0x123   :  { %v6687_v24 = vcombine.high %v602_v15, %v606_v16 }
 0x125   :  { %4567 = vmatpush1.bf16.msra.mxu0 %v6590_v42  ;;  %4813 = vmatpush1.bf16.msra.mxu1 %v6592_v44  ;;  %v575_v42 = vld [vmem:[#allocation2 + $0xf68] sm:$0xff]  ;;  %v6646_v44 = vcombine.low %v562_v30, %v566_v32  ;;  %v6686_v32 = vcombine.low %v602_v15, %v606_v16 }
 0x126   :  { %4568 = vmatprep.subr.bf16.mxu0 %v6599_v45  ;;  %4814 = vmatprep.subr.bf16.mxu1 %v6601_v46  ;;  %v6648_v45 = vcombine.low %v563_v59, %v567_v33  ;;  %v6655_v46 = vcombine.high %v570_v38, %v574_v39  ;;  %v6657_v47 = vcombine.high %v571_v41, %v575_v42  ;;  %v615_v30 = vld [vmem:[#allocation2 + $0x10a8] sm:$0xff] }
 0x127   :  { %v655_v15 = vld [vmem:[#allocation2 + $0x11e8] sm:$0xff] }
 0x129   :  { %4569 = vmatpush1.bf16.msra.mxu0 %v6598_v52  ;;  %4815 = vmatpush1.bf16.msra.mxu1 %v6600_v54  ;;  %v583_v52 = vld [vmem:[#allocation2 + $0xfa8] sm:$0xff]  ;;  %v6654_v54 = vcombine.low %v570_v38, %v574_v39 }
 0x12a   :  { %4570 = vmatprep.subr.bf16.mxu0 %v6607_v55  ;;  %4816 = vmatprep.subr.bf16.mxu1 %v6609_v56  ;;  %v6656_v55 = vcombine.low %v571_v41, %v575_v42  ;;  %v6663_v56 = vcombine.high %v578_v49, %v582_v50  ;;  %v6665_v57 = vcombine.high %v579_v51, %v583_v52  ;;  %v623_v38 = vld [vmem:[#allocation2 + $0x10e8] sm:$0xff] }
 0x12d   :  { %4571 = vmatpush1.bf16.msra.mxu0 %v6606_v0  ;;  %4817 = vmatpush1.bf16.msra.mxu1 %v6608_v1  ;;  %v591_v0 = vld [vmem:[#allocation2 + $0xfe8] sm:$0xff]  ;;  %v6662_v1 = vcombine.low %v578_v49, %v582_v50 }
 0x12e   :  { %4572 = vmatprep.subr.bf16.mxu0 %v6615_v2  ;;  %4818 = vmatprep.subr.bf16.mxu1 %v6617_v3  ;;  %v6664_v2 = vcombine.low %v579_v51, %v583_v52  ;;  %v6671_v3 = vcombine.high %v586_v60, %v590_v61  ;;  %v6673_v4 = vcombine.high %v587_v62, %v591_v0  ;;  %v631_v49 = vld [vmem:[#allocation2 + $0x1128] sm:$0xff] }
 0x131   :  { %4573 = vmatpush1.bf16.msra.mxu0 %v6614_v8  ;;  %4819 = vmatpush1.bf16.msra.mxu1 %v6616_v10  ;;  %v599_v8 = vld [vmem:[#allocation2 + $0x1028] sm:$0xff] }
 0x132   :  { %4574 = vmatprep.subr.bf16.mxu0 %v6623_v11  ;;  %4820 = vmatprep.subr.bf16.mxu1 %v6625_v12  ;;  %v7509_v10 = vld.sshfl [vmem:[%s7811_s0 + $0x8] sm:$0x13 pattern:$0x75316420]  ;;  %v6670_v11 = vcombine.low %v586_v60, %v590_v61  ;;  %v6672_v12 = vcombine.low %v587_v62, %v591_v0  ;;  %v6681_v14 = vcombine.high %v595_v7, %v599_v8 }
 0x133   :  { %v6680_v22 = vcombine.low %v595_v7, %v599_v8  ;;  %v639_v60 = vld [vmem:[#allocation2 + $0x1168] sm:$0xff] }
 0x135   :  { %4575 = vmatpush1.bf16.msra.mxu0 %v6622_v17  ;;  %4821 = vmatpush1.bf16.msra.mxu1 %v6624_v18  ;;  %v886_v17 = vcombine.high %v7509_v10, %v7509_v10  ;;  %v7515_v18 = vcombine.high %v7496_v58, %v7496_v58 }
 0x136   :  { %4576 = vmatprep.subr.bf16.mxu0 %v6631_v19  ;;  %4822 = vmatprep.subr.bf16.mxu1 %v6633_v20  ;;  %v603_v19 = vld [vmem:[#allocation2 + $0x1048] sm:$0xff] }
 0x137   :  { %v607_v20 = vld [vmem:[#allocation2 + $0x1068] sm:$0xff] }
 0x138   :  { %v6689_v25 = vcombine.high %v603_v19, %v607_v20  ;;  %v6688_v59 = vcombine.low %v603_v19, %v607_v20 }
 0x139   :  { %4577 = vmatpush1.bf16.msra.mxu0 %v6630_v26  ;;  %4823 = vmatpush1.bf16.msra.mxu1 %v6632_v27  ;;  %v610_v26 = vld [vmem:[#allocation2 + $0x1080] sm:$0xff] }
 0x13a   :  { %4578 = vmatprep.subr.bf16.mxu0 %v6639_v28  ;;  %4824 = vmatprep.subr.bf16.mxu1 %v6641_v29  ;;  %v614_v27 = vld [vmem:[#allocation2 + $0x10a0] sm:$0xff]  ;;  %v7518_v28 = vrot.slane %v886_v17, %v7446_v53  ;;  %v611_v29 = vld [vmem:[#allocation2 + $0x1088] sm:$0xff] }
 0x13b   :  { %v6695_v33 = vcombine.high %v610_v26, %v614_v27  ;;  %v6694_v39 = vcombine.low %v610_v26, %v614_v27  ;;  %v6696_v41 = vcombine.low %v611_v29, %v615_v30 }
 0x13d   :  { %4579 = vmatpush1.bf16.msra.mxu0 %v6638_v63  ;;  %4825 = vmatpush1.bf16.msra.mxu1 %v6640_v35  ;;  %v6697_v63 = vcombine.high %v611_v29, %v615_v30  ;;  %v618_v35 = vld [vmem:[#allocation2 + $0x10c0] sm:$0xff] }
 0x13e   :  { %4580 = vmatprep.subr.bf16.mxu0 %v6647_v36  ;;  %4826 = vmatprep.subr.bf16.mxu1 %v6649_v37  ;;  %v622_v36 = vld [vmem:[#allocation2 + $0x10e0] sm:$0xff]  ;;  %v619_v37 = vld [vmem:[#allocation2 + $0x10c8] sm:$0xff] }
 0x13f   :  { %v6703_v42 = vcombine.high %v618_v35, %v622_v36  ;;  %v6702_v50 = vcombine.low %v618_v35, %v622_v36  ;;  %v6704_v51 = vcombine.low %v619_v37, %v623_v38 }
 0x141   :  { %4581 = vmatpush1.bf16.msra.mxu0 %v6646_v44  ;;  %4827 = vmatpush1.bf16.msra.mxu1 %v6648_v45  ;;  %v6705_v44 = vcombine.high %v619_v37, %v623_v38  ;;  %v626_v45 = vld [vmem:[#allocation2 + $0x1100] sm:$0xff] }
 0x142   :  { %4582 = vmatprep.subr.bf16.mxu0 %v6655_v46  ;;  %4828 = vmatprep.subr.bf16.mxu1 %v6657_v47  ;;  %v630_v46 = vld [vmem:[#allocation2 + $0x1120] sm:$0xff]  ;;  %v627_v47 = vld [vmem:[#allocation2 + $0x1108] sm:$0xff] }
 0x143   :  { %v6711_v52 = vcombine.high %v626_v45, %v630_v46  ;;  %v6710_v61 = vcombine.low %v626_v45, %v630_v46  ;;  %v6712_v62 = vcombine.low %v627_v47, %v631_v49 }
 0x145   :  { %4583 = vmatpush1.bf16.msra.mxu0 %v6654_v54  ;;  %4829 = vmatpush1.bf16.msra.mxu1 %v6656_v55  ;;  %v6713_v54 = vcombine.high %v627_v47, %v631_v49  ;;  %v634_v55 = vld [vmem:[#allocation2 + $0x1140] sm:$0xff] }
 0x146   :  { %4584 = vmatprep.subr.bf16.mxu0 %v6663_v56  ;;  %4830 = vmatprep.subr.bf16.mxu1 %v6665_v57  ;;  %v638_v56 = vld [vmem:[#allocation2 + $0x1160] sm:$0xff]  ;;  %v635_v57 = vld [vmem:[#allocation2 + $0x1148] sm:$0xff] }
 0x147   :  { %v6719_v0 = vcombine.high %v634_v55, %v638_v56  ;;  %v6718_v6 = vcombine.low %v634_v55, %v638_v56  ;;  %v6720_v7 = vcombine.low %v635_v57, %v639_v60 }
 0x149   :  { %4585 = vmatpush1.bf16.msra.mxu0 %v6662_v1  ;;  %4831 = vmatpush1.bf16.msra.mxu1 %v6664_v2  ;;  %v6721_v1 = vcombine.high %v635_v57, %v639_v60  ;;  %v642_v2 = vld [vmem:[#allocation2 + $0x1180] sm:$0xff] }
 0x14a   :  { %4586 = vmatprep.subr.bf16.mxu0 %v6671_v3  ;;  %4832 = vmatprep.subr.bf16.mxu1 %v6673_v4  ;;  %v646_v3 = vld [vmem:[#allocation2 + $0x11a0] sm:$0xff]  ;;  %v643_v4 = vld [vmem:[#allocation2 + $0x1188] sm:$0xff] }
 0x14b   :  { %v6727_v8 = vcombine.high %v642_v2, %v646_v3  ;;  %v6726_v16 = vcombine.low %v642_v2, %v646_v3  ;;  %v6728_v17 = vcombine.low %v643_v4, %v647_v31 }
 0x14d   :  { %4587 = vmatpush1.bf16.msra.mxu0 %v6670_v11  ;;  %4833 = vmatpush1.bf16.msra.mxu1 %v6672_v12  ;;  %v6729_v11 = vcombine.high %v643_v4, %v647_v31  ;;  %v650_v12 = vld [vmem:[#allocation2 + $0x11c0] sm:$0xff] }
 0x14e   :  { %4597 = vmatprep.subr.bf16.mxu0 %v6679_v13  ;;  %4843 = vmatprep.subr.bf16.mxu1 %v6681_v14  ;;  %v654_v13 = vld [vmem:[#allocation2 + $0x11e0] sm:$0xff]  ;;  %v651_v14 = vld [vmem:[#allocation2 + $0x11c8] sm:$0xff] }
 0x14f   :  { %v6735_v19 = vcombine.high %v650_v12, %v654_v13  ;;  %v6737_v20 = vcombine.high %v651_v14, %v655_v15  ;;  %v6734_v26 = vcombine.low %v650_v12, %v654_v13  ;;  %v6736_v27 = vcombine.low %v651_v14, %v655_v15 }
 0x150   :  { %4589 = vmatmul.mubr.bf16.vlgmr.msra.gmra.mrb[0].mxu0 %v7515_v18  ;;  %4835 = vmatmul.mubr.bf16.vlgmr.msra.gmra.mrb[0].mxu1 %v7515_v18 }
 0x151   :  { %4598 = vmatpush1.bf16.msra.mxu0 %v6678_v21  ;;  %4844 = vmatpush1.bf16.msra.mxu1 %v6680_v22  ;;  %v658_v21 = vld [vmem:[#allocation2 + $0x1200] sm:$0xff] }
 0x152   :  { %4599 = vmatprep.subr.bf16.mxu0 %v6687_v24  ;;  %4845 = vmatprep.subr.bf16.mxu1 %v6689_v25  ;;  %v662_v22 = vld [vmem:[#allocation2 + $0x1220] sm:$0xff]  ;;  %v659_v24 = vld [vmem:[#allocation2 + $0x1208] sm:$0xff] }
 0x153   :  { %4629 = vmatprep.mubr.bf16.mxu0 %v7518_v28  ;;  %4875 = vmatprep.mubr.bf16.mxu1 %v7518_v28  ;;  %v663_v25 = vld [vmem:[#allocation2 + $0x1228] sm:$0xff]  ;;  %v6743_v29 = vcombine.high %v658_v21, %v662_v22  ;;  %v6742_v35 = vcombine.low %v658_v21, %v662_v22 }
 0x154   :  { %v6745_v30 = vcombine.high %v659_v24, %v663_v25  ;;  %v6744_v36 = vcombine.low %v659_v24, %v663_v25 }
 0x155   :  { %4600 = vmatpush1.bf16.msra.mxu0 %v6686_v32  ;;  %4846 = vmatpush1.bf16.msra.mxu1 %v6688_v59  ;;  %v666_v32 = vld [vmem:[#allocation2 + $0x1240] sm:$0xff] }
 0x156   :  { %4601 = vmatprep.subr.bf16.mxu0 %v6695_v33  ;;  %4847 = vmatprep.subr.bf16.mxu1 %v6697_v63  ;;  %v670_v59 = vld [vmem:[#allocation2 + $0x1260] sm:$0xff]  ;;  %v667_v33 = vld [vmem:[#allocation2 + $0x1248] sm:$0xff] }
 0x157   :  { %v671_v63 = vld [vmem:[#allocation2 + $0x1268] sm:$0xff]  ;;  %v6751_v37 = vcombine.high %v666_v32, %v670_v59  ;;  %v6750_v45 = vcombine.low %v666_v32, %v670_v59 }
 0x158   :  { %v6753_v38 = vcombine.high %v667_v33, %v671_v63  ;;  %v6752_v46 = vcombine.low %v667_v33, %v671_v63 }
 0x159   :  { %4602 = vmatpush1.bf16.msra.mxu0 %v6694_v39  ;;  %4848 = vmatpush1.bf16.msra.mxu1 %v6696_v41  ;;  %v674_v39 = vld [vmem:[#allocation2 + $0x1280] sm:$0xff] }
 0x15a   :  { %4603 = vmatprep.subr.bf16.mxu0 %v6703_v42  ;;  %4849 = vmatprep.subr.bf16.mxu1 %v6705_v44  ;;  %v678_v41 = vld [vmem:[#allocation2 + $0x12a0] sm:$0xff]  ;;  %v675_v42 = vld [vmem:[#allocation2 + $0x1288] sm:$0xff] }
 0x15b   :  { %v679_v44 = vld [vmem:[#allocation2 + $0x12a8] sm:$0xff]  ;;  %v6759_v47 = vcombine.high %v674_v39, %v678_v41  ;;  %v6758_v55 = vcombine.low %v674_v39, %v678_v41 }
 0x15c   :  { %v6761_v49 = vcombine.high %v675_v42, %v679_v44  ;;  %v6760_v56 = vcombine.low %v675_v42, %v679_v44 }
 0x15d   :  { %4604 = vmatpush1.bf16.msra.mxu0 %v6702_v50  ;;  %4850 = vmatpush1.bf16.msra.mxu1 %v6704_v51  ;;  %v682_v50 = vld [vmem:[#allocation2 + $0x12c0] sm:$0xff] }
 0x15e   :  { %4605 = vmatprep.subr.bf16.mxu0 %v6711_v52  ;;  %4851 = vmatprep.subr.bf16.mxu1 %v6713_v54  ;;  %v686_v51 = vld [vmem:[#allocation2 + $0x12e0] sm:$0xff]  ;;  %v683_v52 = vld [vmem:[#allocation2 + $0x12c8] sm:$0xff] }
 0x15f   :  { %v687_v54 = vld [vmem:[#allocation2 + $0x12e8] sm:$0xff]  ;;  %v6767_v57 = vcombine.high %v682_v50, %v686_v51  ;;  %v6766_v2 = vcombine.low %v682_v50, %v686_v51 }
 0x160   :  { %v6769_v60 = vcombine.high %v683_v52, %v687_v54  ;;  %v6768_v3 = vcombine.low %v683_v52, %v687_v54  ;;  %v735_v50 = vld [vmem:[#allocation2 + $0x1468] sm:$0xff] }
 0x161   :  { %4606 = vmatpush1.bf16.msra.mxu0 %v6710_v61  ;;  %4852 = vmatpush1.bf16.msra.mxu1 %v6712_v62  ;;  %v690_v61 = vld [vmem:[#allocation2 + $0x1300] sm:$0xff] }
 0x162   :  { %4607 = vmatprep.subr.bf16.mxu0 %v6719_v0  ;;  %4853 = vmatprep.subr.bf16.mxu1 %v6721_v1  ;;  %v694_v62 = vld [vmem:[#allocation2 + $0x1320] sm:$0xff]  ;;  %v691_v0 = vld [vmem:[#allocation2 + $0x1308] sm:$0xff] }
 0x163   :  { %v695_v1 = vld [vmem:[#allocation2 + $0x1328] sm:$0xff]  ;;  %v6775_v4 = vcombine.high %v690_v61, %v694_v62  ;;  %v6774_v12 = vcombine.low %v690_v61, %v694_v62 }
 0x164   :  { %v6777_v31 = vcombine.high %v691_v0, %v695_v1  ;;  %v6776_v13 = vcombine.low %v691_v0, %v695_v1  ;;  %v743_v61 = vld [vmem:[#allocation2 + $0x14a8] sm:$0xff]  ;;  %v746_v1 = vld [vmem:[#allocation2 + $0x14c0] sm:$0xff] }
 0x165   :  { %4608 = vmatpush1.bf16.msra.mxu0 %v6718_v6  ;;  %4854 = vmatpush1.bf16.msra.mxu1 %v6720_v7  ;;  %v698_v6 = vld [vmem:[#allocation2 + $0x1340] sm:$0xff] }
 0x166   :  { %4609 = vmatprep.subr.bf16.mxu0 %v6727_v8  ;;  %4855 = vmatprep.subr.bf16.mxu1 %v6729_v11  ;;  %v702_v7 = vld [vmem:[#allocation2 + $0x1360] sm:$0xff]  ;;  %v699_v8 = vld [vmem:[#allocation2 + $0x1348] sm:$0xff] }
 0x167   :  { %v703_v11 = vld [vmem:[#allocation2 + $0x1368] sm:$0xff]  ;;  %v6783_v14 = vcombine.high %v698_v6, %v702_v7  ;;  %v6782_v21 = vcombine.low %v698_v6, %v702_v7 }
 0x168   :  { %v6785_v15 = vcombine.high %v699_v8, %v703_v11  ;;  %v6784_v22 = vcombine.low %v699_v8, %v703_v11 }
 0x169   :  { %4610 = vmatpush1.bf16.msra.mxu0 %v6726_v16  ;;  %4856 = vmatpush1.bf16.msra.mxu1 %v6728_v17  ;;  %v706_v16 = vld [vmem:[#allocation2 + $0x1380] sm:$0xff] }
 0x16a   :  { %4611 = vmatprep.subr.bf16.mxu0 %v6735_v19  ;;  %4857 = vmatprep.subr.bf16.mxu1 %v6737_v20  ;;  %v710_v17 = vld [vmem:[#allocation2 + $0x13a0] sm:$0xff]  ;;  %v707_v19 = vld [vmem:[#allocation2 + $0x1388] sm:$0xff] }
 0x16b   :  { %v711_v20 = vld [vmem:[#allocation2 + $0x13a8] sm:$0xff]  ;;  %v6791_v24 = vcombine.high %v706_v16, %v710_v17  ;;  %v6790_v32 = vcombine.low %v706_v16, %v710_v17 }
 0x16c   :  { %v6793_v25 = vcombine.high %v707_v19, %v711_v20  ;;  %v6792_v59 = vcombine.low %v707_v19, %v711_v20 }
 0x16d   :  { %4612 = vmatpush1.bf16.msra.mxu0 %v6734_v26  ;;  %4858 = vmatpush1.bf16.msra.mxu1 %v6736_v27  ;;  %v714_v26 = vld [vmem:[#allocation2 + $0x13c0] sm:$0xff] }
 0x16e   :  { %4613 = vmatprep.subr.bf16.mxu0 %v6743_v29  ;;  %4859 = vmatprep.subr.bf16.mxu1 %v6745_v30  ;;  %v718_v27 = vld [vmem:[#allocation2 + $0x13e0] sm:$0xff]  ;;  %v715_v29 = vld [vmem:[#allocation2 + $0x13c8] sm:$0xff] }
 0x16f   :  { %v719_v30 = vld [vmem:[#allocation2 + $0x13e8] sm:$0xff]  ;;  %v6799_v33 = vcombine.high %v714_v26, %v718_v27  ;;  %v6798_v39 = vcombine.low %v714_v26, %v718_v27 }
 0x170   :  { %v6801_v63 = vcombine.high %v715_v29, %v719_v30  ;;  %v6800_v41 = vcombine.low %v715_v29, %v719_v30 }
 0x171   :  { %4614 = vmatpush1.bf16.msra.mxu0 %v6742_v35  ;;  %4860 = vmatpush1.bf16.msra.mxu1 %v6744_v36  ;;  %v722_v35 = vld [vmem:[#allocation2 + $0x1400] sm:$0xff] }
 0x172   :  { %4615 = vmatprep.subr.bf16.mxu0 %v6751_v37  ;;  %4861 = vmatprep.subr.bf16.mxu1 %v6753_v38  ;;  %v726_v36 = vld [vmem:[#allocation2 + $0x1420] sm:$0xff]  ;;  %v723_v37 = vld [vmem:[#allocation2 + $0x1408] sm:$0xff] }
 0x173   :  { %v727_v38 = vld [vmem:[#allocation2 + $0x1428] sm:$0xff]  ;;  %v6807_v42 = vcombine.high %v722_v35, %v726_v36  ;;  %v6806_v51 = vcombine.low %v722_v35, %v726_v36 }
 0x174   :  { %v6809_v44 = vcombine.high %v723_v37, %v727_v38  ;;  %v6808_v52 = vcombine.low %v723_v37, %v727_v38 }
 0x175   :  { %4616 = vmatpush1.bf16.msra.mxu0 %v6750_v45  ;;  %4862 = vmatpush1.bf16.msra.mxu1 %v6752_v46  ;;  %v730_v45 = vld [vmem:[#allocation2 + $0x1440] sm:$0xff] }
 0x176   :  { %4617 = vmatprep.subr.bf16.mxu0 %v6759_v47  ;;  %4863 = vmatprep.subr.bf16.mxu1 %v6761_v49  ;;  %v734_v46 = vld [vmem:[#allocation2 + $0x1460] sm:$0xff]  ;;  %v7526_v47 = vrot.slane %v7509_v10, %v7446_v53  ;;  %v731_v49 = vld [vmem:[#allocation2 + $0x1448] sm:$0xff] }
 0x177   :  { %v6815_v54 = vcombine.high %v730_v45, %v734_v46  ;;  %v6814_v53 = vcombine.low %v730_v45, %v734_v46  ;;  %v6816_v10 = vcombine.low %v731_v49, %v735_v50 }
 0x179   :  { %4618 = vmatpush1.bf16.msra.mxu0 %v6758_v55  ;;  %4864 = vmatpush1.bf16.msra.mxu1 %v6760_v56  ;;  %v6817_v55 = vcombine.high %v731_v49, %v735_v50  ;;  %v738_v56 = vld [vmem:[#allocation2 + $0x1480] sm:$0xff] }
 0x17a   :  { %4619 = vmatprep.subr.bf16.mxu0 %v6767_v57  ;;  %4865 = vmatprep.subr.bf16.mxu1 %v6769_v60  ;;  %v742_v57 = vld [vmem:[#allocation2 + $0x14a0] sm:$0xff]  ;;  %v739_v60 = vld [vmem:[#allocation2 + $0x1488] sm:$0xff] }
 0x17b   :  { %v6823_v62 = vcombine.high %v738_v56, %v742_v57  ;;  %v6825_v0 = vcombine.high %v739_v60, %v743_v61  ;;  %v6822_v6 = vcombine.low %v738_v56, %v742_v57  ;;  %v6824_v7 = vcombine.low %v739_v60, %v743_v61 }
 0x17d   :  { %4620 = vmatpush1.bf16.msra.mxu0 %v6766_v2  ;;  %4866 = vmatpush1.bf16.msra.mxu1 %v6768_v3  ;;  %v750_v2 = vld [vmem:[#allocation2 + $0x14e0] sm:$0xff]  ;;  %v7340_v3 = vmov 0  }
 0x17e   :  { %4621 = vmatprep.subr.bf16.mxu0 %v6775_v4  ;;  %4867 = vmatprep.subr.bf16.mxu1 %v6777_v31  ;;  %v747_v4 = vld [vmem:[#allocation2 + $0x14c8] sm:$0xff]  ;;  %v6831_v8 = vcombine.high %v746_v1, %v750_v2  ;;  %v6830_v16 = vcombine.low %v746_v1, %v750_v2  ;;  %v97_v1 = vld [vmem:[#allocation2 + $0x78] sm:$0xff] }
 0x17f   :  { %v751_v31 = vld [vmem:[#allocation2 + $0x14e8] sm:$0xff] }
 0x180   :  { %v6833_v11 = vcombine.high %v747_v4, %v751_v31  ;;  %v6832_v17 = vcombine.low %v747_v4, %v751_v31 }
 0x181   :  { %4622 = vmatpush1.bf16.msra.mxu0 %v6774_v12  ;;  %4868 = vmatpush1.bf16.msra.mxu1 %v6776_v13  ;;  %v754_v12 = vld [vmem:[#allocation2 + $0x1500] sm:$0xff] }
 0x182   :  { %4623 = vmatprep.subr.bf16.mxu0 %v6783_v14  ;;  %4869 = vmatprep.subr.bf16.mxu1 %v6785_v15  ;;  %v758_v13 = vld [vmem:[#allocation2 + $0x1520] sm:$0xff]  ;;  %v755_v14 = vld [vmem:[#allocation2 + $0x1508] sm:$0xff] }
 0x183   :  { %v759_v15 = vld [vmem:[#allocation2 + $0x1528] sm:$0xff]  ;;  %v6839_v19 = vcombine.high %v754_v12, %v758_v13  ;;  %v6838_v26 = vcombine.low %v754_v12, %v758_v13  ;;  %v105_v12 = vld [vmem:[#allocation2 + $0xb8] sm:$0xff] }
 0x184   :  { %v6841_v20 = vcombine.high %v755_v14, %v759_v15  ;;  %v6840_v27 = vcombine.low %v755_v14, %v759_v15 }
 0x185   :  { %4624 = vmatpush1.bf16.msra.mxu0 %v6782_v21  ;;  %4870 = vmatpush1.bf16.msra.mxu1 %v6784_v22  ;;  %v762_v21 = vld [vmem:[#allocation2 + $0x1540] sm:$0xff] }
 0x186   :  { %4625 = vmatprep.subr.bf16.mxu0 %v6791_v24  ;;  %4871 = vmatprep.subr.bf16.mxu1 %v6793_v25  ;;  %v766_v22 = vld [vmem:[#allocation2 + $0x1560] sm:$0xff]  ;;  %v763_v24 = vld [vmem:[#allocation2 + $0x1548] sm:$0xff] }
 0x187   :  { %v767_v25 = vld [vmem:[#allocation2 + $0x1568] sm:$0xff]  ;;  %v6847_v29 = vcombine.high %v762_v21, %v766_v22  ;;  %v6846_v35 = vcombine.low %v762_v21, %v766_v22  ;;  %v113_v21 = vld [vmem:[#allocation2 + $0xf8] sm:$0xff] }
 0x188   :  { %v6849_v30 = vcombine.high %v763_v24, %v767_v25  ;;  %v6848_v36 = vcombine.low %v763_v24, %v767_v25 }
 0x189   :  { %4626 = vmatpush1.bf16.msra.mxu0 %v6790_v32  ;;  %4872 = vmatpush1.bf16.msra.mxu1 %v6792_v59  ;;  %v770_v32 = vld [vmem:[#allocation2 + $0x1580] sm:$0xff] }
 0x18a   :  { %4627 = vmatprep.subr.bf16.mxu0 %v6799_v33  ;;  %4873 = vmatprep.subr.bf16.mxu1 %v6801_v63  ;;  %v774_v59 = vld [vmem:[#allocation2 + $0x15a0] sm:$0xff]  ;;  %v771_v33 = vld [vmem:[#allocation2 + $0x1588] sm:$0xff] }
 0x18b   :  { %v775_v63 = vld [vmem:[#allocation2 + $0x15a8] sm:$0xff]  ;;  %v6855_v37 = vcombine.high %v770_v32, %v774_v59  ;;  %v6854_v45 = vcombine.low %v770_v32, %v774_v59  ;;  %v121_v32 = vld [vmem:[#allocation2 + $0x138] sm:$0xff] }
 0x18c   :  { %v6857_v38 = vcombine.high %v771_v33, %v775_v63  ;;  %v6856_v46 = vcombine.low %v771_v33, %v775_v63 }
 0x18d   :  { %4628 = vmatpush1.bf16.msra.mxu0 %v6798_v39  ;;  %4874 = vmatpush1.bf16.msra.mxu1 %v6800_v41  ;;  %v778_v39 = vld [vmem:[#allocation2 + $0x15c0] sm:$0xff] }
 0x18e   :  { %4638 = vmatprep.subr.bf16.mxu0 %v6807_v42  ;;  %4884 = vmatprep.subr.bf16.mxu1 %v6809_v44  ;;  %v782_v41 = vld [vmem:[#allocation2 + $0x15e0] sm:$0xff]  ;;  %v779_v42 = vld [vmem:[#allocation2 + $0x15c8] sm:$0xff] }
 0x18f   :  { %v783_v44 = vld [vmem:[#allocation2 + $0x15e8] sm:$0xff]  ;;  %v6863_v49 = vcombine.high %v778_v39, %v782_v41  ;;  %v6862_v56 = vcombine.low %v778_v39, %v782_v41 }
 0x190   :  { %4630 = vmatmul.mubr.bf16.vlgmr.msra.gmra.mrb[0].mxu0 %v7526_v47  ;;  %4876 = vmatmul.mubr.bf16.vlgmr.msra.gmra.mrb[0].mxu1 %v7526_v47  ;;  %v6865_v50 = vcombine.high %v779_v42, %v783_v44  ;;  %v6864_v57 = vcombine.low %v779_v42, %v783_v44 }
 0x191   :  { %4639 = vmatpush1.bf16.msra.mxu0 %v6806_v51  ;;  %4885 = vmatpush1.bf16.msra.mxu1 %v6808_v52  ;;  %v84_v51 = vld [vmem:[#allocation2 + $0x10] sm:$0xff] }
 0x192   :  { %4640 = vmatprep.subr.bf16.mxu0 %v6815_v54  ;;  %4886 = vmatprep.subr.bf16.mxu1 %v6817_v55  ;;  %v88_v52 = vld [vmem:[#allocation2 + $0x30] sm:$0xff]  ;;  %v85_v54 = vld [vmem:[#allocation2 + $0x18] sm:$0xff] }
 0x193   :  { %4670 = vmatprep.mubr.bf16.mxu0 %v7340_v3  ;;  %4916 = vmatprep.mubr.bf16.mxu1 %v7340_v3  ;;  %v89_v55 = vld [vmem:[#allocation2 + $0x38] sm:$0xff]  ;;  %v6171_v60 = vcombine.high %v84_v51, %v88_v52  ;;  %v6170_v2 = vcombine.low %v84_v51, %v88_v52 }
 0x194   :  { %v6173_v61 = vcombine.high %v85_v54, %v89_v55  ;;  %v6172_v4 = vcombine.low %v85_v54, %v89_v55 }
 0x195   :  { %4641 = vmatpush1.bf16.msra.mxu0 %v6814_v53  ;;  %4887 = vmatpush1.bf16.msra.mxu1 %v6816_v10  ;;  %v92_v53 = vld [vmem:[#allocation2 + $0x50] sm:$0xff] }
 0x196   :  { %4642 = vmatprep.subr.bf16.mxu0 %v6823_v62  ;;  %4888 = vmatprep.subr.bf16.mxu1 %v6825_v0  ;;  %v96_v10 = vld [vmem:[#allocation2 + $0x70] sm:$0xff]  ;;  %v7534_v62 = vcombine.high %v7526_v47, %v7526_v47  ;;  %v93_v0 = vld [vmem:[#allocation2 + $0x58] sm:$0xff] }
 0x197   :  { %v6179_v31 = vcombine.high %v92_v53, %v96_v10  ;;  %v6178_v13 = vcombine.low %v92_v53, %v96_v10  ;;  %v6180_v14 = vcombine.low %v93_v0, %v97_v1 }
 0x199   :  { %4643 = vmatpush1.bf16.msra.mxu0 %v6822_v6  ;;  %4889 = vmatpush1.bf16.msra.mxu1 %v6824_v7  ;;  %v6181_v6 = vcombine.high %v93_v0, %v97_v1  ;;  %v100_v7 = vld [vmem:[#allocation2 + $0x90] sm:$0xff] }
 0x19a   :  { %4644 = vmatprep.subr.bf16.mxu0 %v6831_v8  ;;  %4890 = vmatprep.subr.bf16.mxu1 %v6833_v11  ;;  %v104_v8 = vld [vmem:[#allocation2 + $0xb0] sm:$0xff]  ;;  %v101_v11 = vld [vmem:[#allocation2 + $0x98] sm:$0xff] }
 0x19b   :  { %v6187_v15 = vcombine.high %v100_v7, %v104_v8  ;;  %v6186_v22 = vcombine.low %v100_v7, %v104_v8  ;;  %v6188_v24 = vcombine.low %v101_v11, %v105_v12 }
 0x19d   :  { %4645 = vmatpush1.bf16.msra.mxu0 %v6830_v16  ;;  %4891 = vmatpush1.bf16.msra.mxu1 %v6832_v17  ;;  %v6189_v16 = vcombine.high %v101_v11, %v105_v12  ;;  %v108_v17 = vld [vmem:[#allocation2 + $0xd0] sm:$0xff] }
 0x19e   :  { %4646 = vmatprep.subr.bf16.mxu0 %v6839_v19  ;;  %4892 = vmatprep.subr.bf16.mxu1 %v6841_v20  ;;  %v112_v19 = vld [vmem:[#allocation2 + $0xf0] sm:$0xff]  ;;  %v109_v20 = vld [vmem:[#allocation2 + $0xd8] sm:$0xff] }
 0x19f   :  { %v6195_v25 = vcombine.high %v108_v17, %v112_v19  ;;  %v6194_v59 = vcombine.low %v108_v17, %v112_v19  ;;  %v6196_v33 = vcombine.low %v109_v20, %v113_v21 }
 0x1a1   :  { %4647 = vmatpush1.bf16.msra.mxu0 %v6838_v26  ;;  %4893 = vmatpush1.bf16.msra.mxu1 %v6840_v27  ;;  %v6197_v26 = vcombine.high %v109_v20, %v113_v21  ;;  %v116_v27 = vld [vmem:[#allocation2 + $0x110] sm:$0xff] }
 0x1a2   :  { %4648 = vmatprep.subr.bf16.mxu0 %v6847_v29  ;;  %4894 = vmatprep.subr.bf16.mxu1 %v6849_v30  ;;  %v120_v29 = vld [vmem:[#allocation2 + $0x130] sm:$0xff]  ;;  %v117_v30 = vld [vmem:[#allocation2 + $0x118] sm:$0xff] }
 0x1a3   :  { %v6203_v63 = vcombine.high %v116_v27, %v120_v29  ;;  %v6202_v39 = vcombine.low %v116_v27, %v120_v29  ;;  %v6204_v41 = vcombine.low %v117_v30, %v121_v32 }
 0x1a5   :  { %4649 = vmatpush1.bf16.msra.mxu0 %v6846_v35  ;;  %4895 = vmatpush1.bf16.msra.mxu1 %v6848_v36  ;;  %v124_v35 = vld [vmem:[#allocation2 + $0x150] sm:$0xff] }
 0x1a6   :  { %4650 = vmatprep.subr.bf16.mxu0 %v6855_v37  ;;  %4896 = vmatprep.subr.bf16.mxu1 %v6857_v38  ;;  %v128_v36 = vld [vmem:[#allocation2 + $0x170] sm:$0xff]  ;;  %v125_v37 = vld [vmem:[#allocation2 + $0x158] sm:$0xff] }
 0x1a7   :  { %v129_v38 = vld [vmem:[#allocation2 + $0x178] sm:$0xff]  ;;  %v6211_v42 = vcombine.high %v124_v35, %v128_v36  ;;  %v6210_v51 = vcombine.low %v124_v35, %v128_v36 }
 0x1a8   :  { %v6213_v44 = vcombine.high %v125_v37, %v129_v38  ;;  %v6212_v52 = vcombine.low %v125_v37, %v129_v38 }
 0x1a9   :  { %4651 = vmatpush1.bf16.msra.mxu0 %v6854_v45  ;;  %4897 = vmatpush1.bf16.msra.mxu1 %v6856_v46  ;;  %v132_v45 = vld [vmem:[#allocation2 + $0x190] sm:$0xff] }
 0x1aa   :  { %4652 = vmatprep.subr.bf16.mxu0 %v6863_v49  ;;  %4898 = vmatprep.subr.bf16.mxu1 %v6865_v50  ;;  %v136_v46 = vld [vmem:[#allocation2 + $0x1b0] sm:$0xff]  ;;  %v133_v49 = vld [vmem:[#allocation2 + $0x198] sm:$0xff] }
 0x1ab   :  { %v137_v50 = vld [vmem:[#allocation2 + $0x1b8] sm:$0xff]  ;;  %v6219_v54 = vcombine.high %v132_v45, %v136_v46  ;;  %v6218_v53 = vcombine.low %v132_v45, %v136_v46 }
 0x1ac   :  { %v6221_v55 = vcombine.high %v133_v49, %v137_v50  ;;  %v6220_v10 = vcombine.low %v133_v49, %v137_v50 }
 0x1ad   :  { %4653 = vmatpush1.bf16.msra.mxu0 %v6862_v56  ;;  %4899 = vmatpush1.bf16.msra.mxu1 %v6864_v57  ;;  %v140_v56 = vld [vmem:[#allocation2 + $0x1d0] sm:$0xff] }
 0x1ae   :  { %4925 = vmatprep.subr.bf16.mxu0 %v6171_v60  ;;  %5171 = vmatprep.subr.bf16.mxu1 %v6173_v61  ;;  %v144_v57 = vld [vmem:[#allocation2 + $0x1f0] sm:$0xff]  ;;  %v141_v60 = vld [vmem:[#allocation2 + $0x1d8] sm:$0xff] }
 0x1af   :  { %v145_v61 = vld [vmem:[#allocation2 + $0x1f8] sm:$0xff]  ;;  %v6227_v0 = vcombine.high %v140_v56, %v144_v57  ;;  %v6226_v7 = vcombine.low %v140_v56, %v144_v57 }
 0x1b0   :  { %4671 = vmatmul.mubr.bf16.vlgmr.msra.gmra.mrb[0].mxu0 %v7534_v62  ;;  %4917 = vmatmul.mubr.bf16.vlgmr.msra.gmra.mrb[0].mxu1 %v7534_v62  ;;  %v6229_v1 = vcombine.high %v141_v60, %v145_v61  ;;  %v6228_v8 = vcombine.low %v141_v60, %v145_v61 }
 0x1b1   :  { %4926 = vmatpush1.bf16.msra.mxu0 %v6170_v2  ;;  %5172 = vmatpush1.bf16.msra.mxu1 %v6172_v4  ;;  %v148_v2 = vld [vmem:[#allocation2 + $0x210] sm:$0xff] }
 0x1b2   :  { %4927 = vmatprep.subr.bf16.mxu0 %v6179_v31  ;;  %5173 = vmatprep.subr.bf16.mxu1 %v6181_v6  ;;  %v152_v4 = vld [vmem:[#allocation2 + $0x230] sm:$0xff]  ;;  %v149_v31 = vld [vmem:[#allocation2 + $0x218] sm:$0xff] }
 0x1b3   :  { %4957 = vmatprep.mubr.bf16.mxu0 %v7460_v9  ;;  %5203 = vmatprep.mubr.bf16.mxu1 %v7460_v9  ;;  %v6205_v9 = vcombine.high %v117_v30, %v121_v32  ;;  %v153_v6 = vld [vmem:[#allocation2 + $0x238] sm:$0xff]  ;;  %v6235_v11 = vcombine.high %v148_v2, %v152_v4  ;;  %v6234_v17 = vcombine.low %v148_v2, %v152_v4 }
 0x1b4   :  { %v6237_v12 = vcombine.high %v149_v31, %v153_v6  ;;  %v6236_v19 = vcombine.low %v149_v31, %v153_v6 }
 0x1b5   :  { %4928 = vmatpush1.bf16.msra.mxu0 %v6178_v13  ;;  %5174 = vmatpush1.bf16.msra.mxu1 %v6180_v14  ;;  %v156_v13 = vld [vmem:[#allocation2 + $0x250] sm:$0xff] }
 0x1b6   :  { %4929 = vmatprep.subr.bf16.mxu0 %v6187_v15  ;;  %5175 = vmatprep.subr.bf16.mxu1 %v6189_v16  ;;  %v160_v14 = vld [vmem:[#allocation2 + $0x270] sm:$0xff]  ;;  %v157_v15 = vld [vmem:[#allocation2 + $0x258] sm:$0xff] }
 0x1b7   :  { %v161_v16 = vld [vmem:[#allocation2 + $0x278] sm:$0xff]  ;;  %v6243_v20 = vcombine.high %v156_v13, %v160_v14  ;;  %v6242_v27 = vcombine.low %v156_v13, %v160_v14 }
 0x1b8   :  { %v6245_v21 = vcombine.high %v157_v15, %v161_v16  ;;  %v6244_v29 = vcombine.low %v157_v15, %v161_v16 }
 0x1b9   :  { %4930 = vmatpush1.bf16.msra.mxu0 %v6186_v22  ;;  %5176 = vmatpush1.bf16.msra.mxu1 %v6188_v24  ;;  %v164_v22 = vld [vmem:[#allocation2 + $0x290] sm:$0xff] }
 0x1ba   :  { %4931 = vmatprep.subr.bf16.mxu0 %v6195_v25  ;;  %5177 = vmatprep.subr.bf16.mxu1 %v6197_v26  ;;  %v168_v24 = vld [vmem:[#allocation2 + $0x2b0] sm:$0xff]  ;;  %v165_v25 = vld [vmem:[#allocation2 + $0x298] sm:$0xff] }
 0x1bb   :  { %v169_v26 = vld [vmem:[#allocation2 + $0x2b8] sm:$0xff]  ;;  %v6251_v30 = vcombine.high %v164_v22, %v168_v24  ;;  %v6250_v35 = vcombine.low %v164_v22, %v168_v24 }
 0x1bc   :  { %v6253_v32 = vcombine.high %v165_v25, %v169_v26  ;;  %v6252_v36 = vcombine.low %v165_v25, %v169_v26 }
 0x1bd   :  { %4932 = vmatpush1.bf16.msra.mxu0 %v6194_v59  ;;  %5178 = vmatpush1.bf16.msra.mxu1 %v6196_v33  ;;  %v172_v59 = vld [vmem:[#allocation2 + $0x2d0] sm:$0xff] }
 0x1be   :  { %4933 = vmatprep.subr.bf16.mxu0 %v6203_v63  ;;  %5179 = vmatprep.subr.bf16.mxu1 %v6205_v9  ;;  %v176_v33 = vld [vmem:[#allocation2 + $0x2f0] sm:$0xff]  ;;  %v173_v63 = vld [vmem:[#allocation2 + $0x2d8] sm:$0xff] }
 0x1bf   :  { %v177_v9 = vld [vmem:[#allocation2 + $0x2f8] sm:$0xff]  ;;  %v6259_v37 = vcombine.high %v172_v59, %v176_v33  ;;  %v6258_v45 = vcombine.low %v172_v59, %v176_v33 }
 0x1c0   :  { %v6261_v38 = vcombine.high %v173_v63, %v177_v9  ;;  %v6260_v46 = vcombine.low %v173_v63, %v177_v9 }
 0x1c1   :  { %4934 = vmatpush1.bf16.msra.mxu0 %v6202_v39  ;;  %5180 = vmatpush1.bf16.msra.mxu1 %v6204_v41  ;;  %v180_v39 = vld [vmem:[#allocation2 + $0x310] sm:$0xff] }
 0x1c2   :  { %4935 = vmatprep.subr.bf16.mxu0 %v6211_v42  ;;  %5181 = vmatprep.subr.bf16.mxu1 %v6213_v44  ;;  %v184_v41 = vld [vmem:[#allocation2 + $0x330] sm:$0xff]  ;;  %v181_v42 = vld [vmem:[#allocation2 + $0x318] sm:$0xff] }
 0x1c3   :  { %v185_v44 = vld [vmem:[#allocation2 + $0x338] sm:$0xff]  ;;  %v6267_v49 = vcombine.high %v180_v39, %v184_v41  ;;  %v6266_v56 = vcombine.low %v180_v39, %v184_v41 }
 0x1c4   :  { %v6269_v50 = vcombine.high %v181_v42, %v185_v44  ;;  %v6268_v57 = vcombine.low %v181_v42, %v185_v44 }
 0x1c5   :  { %4936 = vmatpush1.bf16.msra.mxu0 %v6210_v51  ;;  %5182 = vmatpush1.bf16.msra.mxu1 %v6212_v52  ;;  %v188_v51 = vld [vmem:[#allocation2 + $0x350] sm:$0xff] }
 0x1c6   :  { %4937 = vmatprep.subr.bf16.mxu0 %v6219_v54  ;;  %5183 = vmatprep.subr.bf16.mxu1 %v6221_v55  ;;  %v192_v52 = vld [vmem:[#allocation2 + $0x370] sm:$0xff]  ;;  %v189_v54 = vld [vmem:[#allocation2 + $0x358] sm:$0xff] }
 0x1c7   :  { %v193_v55 = vld [vmem:[#allocation2 + $0x378] sm:$0xff]  ;;  %v6275_v60 = vcombine.high %v188_v51, %v192_v52  ;;  %v6274_v2 = vcombine.low %v188_v51, %v192_v52 }
 0x1c8   :  { %v6277_v61 = vcombine.high %v189_v54, %v193_v55  ;;  %v6276_v4 = vcombine.low %v189_v54, %v193_v55  ;;  %v244_v55 = vld [vmem:[#allocation2 + $0x510] sm:$0xff] }
 0x1c9   :  { %4938 = vmatpush1.bf16.msra.mxu0 %v6218_v53  ;;  %5184 = vmatpush1.bf16.msra.mxu1 %v6220_v10  ;;  %v196_v53 = vld [vmem:[#allocation2 + $0x390] sm:$0xff] }
 0x1ca   :  { %4939 = vmatprep.subr.bf16.mxu0 %v6227_v0  ;;  %5185 = vmatprep.subr.bf16.mxu1 %v6229_v1  ;;  %v200_v10 = vld [vmem:[#allocation2 + $0x3b0] sm:$0xff]  ;;  %v197_v0 = vld [vmem:[#allocation2 + $0x398] sm:$0xff] }
 0x1cb   :  { %v201_v1 = vld [vmem:[#allocation2 + $0x3b8] sm:$0xff]  ;;  %v6283_v31 = vcombine.high %v196_v53, %v200_v10  ;;  %v6282_v13 = vcombine.low %v196_v53, %v200_v10 }
 0x1cc   :  { %v6285_v6 = vcombine.high %v197_v0, %v201_v1  ;;  %v6284_v14 = vcombine.low %v197_v0, %v201_v1  ;;  %v252_v0 = vld [vmem:[#allocation2 + $0x550] sm:$0xff] }
 0x1cd   :  { %4940 = vmatpush1.bf16.msra.mxu0 %v6226_v7  ;;  %5186 = vmatpush1.bf16.msra.mxu1 %v6228_v8  ;;  %v204_v7 = vld [vmem:[#allocation2 + $0x3d0] sm:$0xff] }
 0x1ce   :  { %4941 = vmatprep.subr.bf16.mxu0 %v6235_v11  ;;  %5187 = vmatprep.subr.bf16.mxu1 %v6237_v12  ;;  %v208_v8 = vld [vmem:[#allocation2 + $0x3f0] sm:$0xff]  ;;  %v205_v11 = vld [vmem:[#allocation2 + $0x3d8] sm:$0xff] }
 0x1cf   :  { %v209_v12 = vld [vmem:[#allocation2 + $0x3f8] sm:$0xff]  ;;  %v6291_v15 = vcombine.high %v204_v7, %v208_v8  ;;  %v6290_v22 = vcombine.low %v204_v7, %v208_v8  ;;  %v256_v1 = vld [vmem:[#allocation2 + $0x570] sm:$0xff] }
 0x1d0   :  { %v6293_v16 = vcombine.high %v205_v11, %v209_v12  ;;  %v6292_v24 = vcombine.low %v205_v11, %v209_v12  ;;  %v6339_v7 = vcombine.high %v252_v0, %v256_v1  ;;  %v260_v11 = vld [vmem:[#allocation2 + $0x590] sm:$0xff] }
 0x1d1   :  { %4942 = vmatpush1.bf16.msra.mxu0 %v6234_v17  ;;  %5188 = vmatpush1.bf16.msra.mxu1 %v6236_v19  ;;  %v212_v17 = vld [vmem:[#allocation2 + $0x410] sm:$0xff] }
 0x1d2   :  { %4943 = vmatprep.subr.bf16.mxu0 %v6243_v20  ;;  %5189 = vmatprep.subr.bf16.mxu1 %v6245_v21  ;;  %v216_v19 = vld [vmem:[#allocation2 + $0x430] sm:$0xff]  ;;  %v213_v20 = vld [vmem:[#allocation2 + $0x418] sm:$0xff] }
 0x1d3   :  { %v217_v21 = vld [vmem:[#allocation2 + $0x438] sm:$0xff]  ;;  %v6299_v25 = vcombine.high %v212_v17, %v216_v19  ;;  %v6298_v59 = vcombine.low %v212_v17, %v216_v19  ;;  %v264_v12 = vld [vmem:[#allocation2 + $0x5b0] sm:$0xff] }
 0x1d4   :  { %v6301_v26 = vcombine.high %v213_v20, %v217_v21  ;;  %v6300_v33 = vcombine.low %v213_v20, %v217_v21  ;;  %v6347_v17 = vcombine.high %v260_v11, %v264_v12  ;;  %v268_v20 = vld [vmem:[#allocation2 + $0x5d0] sm:$0xff] }
 0x1d5   :  { %4944 = vmatpush1.bf16.msra.mxu0 %v6242_v27  ;;  %5190 = vmatpush1.bf16.msra.mxu1 %v6244_v29  ;;  %v220_v27 = vld [vmem:[#allocation2 + $0x450] sm:$0xff] }
 0x1d6   :  { %4945 = vmatprep.subr.bf16.mxu0 %v6251_v30  ;;  %5191 = vmatprep.subr.bf16.mxu1 %v6253_v32  ;;  %v224_v29 = vld [vmem:[#allocation2 + $0x470] sm:$0xff]  ;;  %v221_v30 = vld [vmem:[#allocation2 + $0x458] sm:$0xff] }
 0x1d7   :  { %v225_v32 = vld [vmem:[#allocation2 + $0x478] sm:$0xff]  ;;  %v6307_v63 = vcombine.high %v220_v27, %v224_v29  ;;  %v6306_v39 = vcombine.low %v220_v27, %v224_v29  ;;  %v272_v21 = vld [vmem:[#allocation2 + $0x5f0] sm:$0xff] }
 0x1d8   :  { %v6309_v9 = vcombine.high %v221_v30, %v225_v32  ;;  %v6308_v41 = vcombine.low %v221_v30, %v225_v32  ;;  %v6355_v27 = vcombine.high %v268_v20, %v272_v21  ;;  %v276_v30 = vld [vmem:[#allocation2 + $0x610] sm:$0xff] }
 0x1d9   :  { %4946 = vmatpush1.bf16.msra.mxu0 %v6250_v35  ;;  %5192 = vmatpush1.bf16.msra.mxu1 %v6252_v36  ;;  %v228_v35 = vld [vmem:[#allocation2 + $0x490] sm:$0xff] }
 0x1da   :  { %4947 = vmatprep.subr.bf16.mxu0 %v6259_v37  ;;  %5193 = vmatprep.subr.bf16.mxu1 %v6261_v38  ;;  %v232_v36 = vld [vmem:[#allocation2 + $0x4b0] sm:$0xff]  ;;  %v229_v37 = vld [vmem:[#allocation2 + $0x498] sm:$0xff] }
 0x1db   :  { %v233_v38 = vld [vmem:[#allocation2 + $0x4b8] sm:$0xff]  ;;  %v6315_v42 = vcombine.high %v228_v35, %v232_v36  ;;  %v6314_v51 = vcombine.low %v228_v35, %v232_v36  ;;  %v280_v32 = vld [vmem:[#allocation2 + $0x630] sm:$0xff] }
 0x1dc   :  { %v6317_v44 = vcombine.high %v229_v37, %v233_v38  ;;  %v6363_v35 = vcombine.high %v276_v30, %v280_v32 }
 0x1dd   :  { %4948 = vmatpush1.bf16.msra.mxu0 %v6258_v45  ;;  %5194 = vmatpush1.bf16.msra.mxu1 %v6260_v46  ;;  %v236_v45 = vld [vmem:[#allocation2 + $0x4d0] sm:$0xff] }
 0x1de   :  { %4949 = vmatprep.subr.bf16.mxu0 %v6267_v49  ;;  %5195 = vmatprep.subr.bf16.mxu1 %v6269_v50  ;;  %v240_v46 = vld [vmem:[#allocation2 + $0x4f0] sm:$0xff]  ;;  %v237_v49 = vld [vmem:[#allocation2 + $0x4d8] sm:$0xff] }
 0x1df   :  { %v241_v50 = vld [vmem:[#allocation2 + $0x4f8] sm:$0xff]  ;;  %v6323_v52 = vcombine.high %v236_v45, %v240_v46 }
 0x1e0   :  { %v6325_v54 = vcombine.high %v237_v49, %v241_v50  ;;  %v6324_v53 = vcombine.low %v237_v49, %v241_v50  ;;  %v292_v49 = vld [vmem:[#allocation2 + $0x690] sm:$0xff] }
 0x1e1   :  { %4950 = vmatpush1.bf16.msra.mxu0 %v6266_v56  ;;  %5196 = vmatpush1.bf16.msra.mxu1 %v6268_v57  ;;  %v248_v56 = vld [vmem:[#allocation2 + $0x530] sm:$0xff]  ;;  %v245_v57 = vld [vmem:[#allocation2 + $0x518] sm:$0xff] }
 0x1e2   :  { %4951 = vmatprep.subr.bf16.mxu0 %v6275_v60  ;;  %5197 = vmatprep.subr.bf16.mxu1 %v6277_v61  ;;  %v249_v60 = vld [vmem:[#allocation2 + $0x538] sm:$0xff]  ;;  %v6322_v61 = vcombine.low %v236_v45, %v240_v46  ;;  %v6331_v10 = vcombine.high %v244_v55, %v248_v56  ;;  %v296_v50 = vld [vmem:[#allocation2 + $0x6b0] sm:$0xff] }
 0x1e5   :  { %4952 = vmatpush1.bf16.msra.mxu0 %v6274_v2  ;;  %5198 = vmatpush1.bf16.msra.mxu1 %v6276_v4  ;;  %v253_v2 = vld [vmem:[#allocation2 + $0x558] sm:$0xff] }
 0x1e6   :  { %4953 = vmatprep.subr.bf16.mxu0 %v6283_v31  ;;  %5199 = vmatprep.subr.bf16.mxu1 %v6285_v6  ;;  %v257_v4 = vld [vmem:[#allocation2 + $0x578] sm:$0xff]  ;;  %v6330_v31 = vcombine.low %v244_v55, %v248_v56  ;;  %v6332_v6 = vcombine.low %v245_v57, %v249_v60  ;;  %v6379_v55 = vcombine.high %v292_v49, %v296_v50 }
 0x1e7   :  { %v6341_v8 = vcombine.high %v253_v2, %v257_v4 }
 0x1e9   :  { %4954 = vmatpush1.bf16.msra.mxu0 %v6282_v13  ;;  %5200 = vmatpush1.bf16.msra.mxu1 %v6284_v14  ;;  %v261_v13 = vld [vmem:[#allocation2 + $0x598] sm:$0xff] }
 0x1ea   :  { %4955 = vmatprep.subr.bf16.mxu0 %v6291_v15  ;;  %5201 = vmatprep.subr.bf16.mxu1 %v6293_v16  ;;  %v265_v14 = vld [vmem:[#allocation2 + $0x5b8] sm:$0xff]  ;;  %v6338_v15 = vcombine.low %v252_v0, %v256_v1  ;;  %v6340_v16 = vcombine.low %v253_v2, %v257_v4  ;;  %v308_v2 = vld [vmem:[#allocation2 + $0x710] sm:$0xff] }
 0x1eb   :  { %v6349_v19 = vcombine.high %v261_v13, %v265_v14  ;;  %v312_v4 = vld [vmem:[#allocation2 + $0x730] sm:$0xff] }
 0x1ed   :  { %4956 = vmatpush1.bf16.msra.mxu0 %v6290_v22  ;;  %5202 = vmatpush1.bf16.msra.mxu1 %v6292_v24  ;;  %v269_v22 = vld [vmem:[#allocation2 + $0x5d8] sm:$0xff] }
 0x1ee   :  { %4966 = vmatprep.subr.bf16.mxu0 %v6299_v25  ;;  %5212 = vmatprep.subr.bf16.mxu1 %v6301_v26  ;;  %v273_v24 = vld [vmem:[#allocation2 + $0x5f8] sm:$0xff]  ;;  %v6346_v25 = vcombine.low %v260_v11, %v264_v12  ;;  %v6348_v26 = vcombine.low %v261_v13, %v265_v14  ;;  %v6395_v11 = vcombine.high %v308_v2, %v312_v4  ;;  %v316_v13 = vld [vmem:[#allocation2 + $0x750] sm:$0xff] }
 0x1ef   :  { %v6357_v29 = vcombine.high %v269_v22, %v273_v24  ;;  %v320_v14 = vld [vmem:[#allocation2 + $0x770] sm:$0xff] }
 0x1f0   :  { %4958 = vmatmul.mubr.bf16.vlgmr.msra.gmra.mrb[4].mxu0 %v7466_v23  ;;  %5204 = vmatmul.mubr.bf16.vlgmr.msra.gmra.mrb[4].mxu1 %v7466_v23  ;;  %v6316_v23 = vcombine.low %v229_v37, %v233_v38  ;;  %v284_v37 = vld [vmem:[#allocation2 + $0x650] sm:$0xff] }
 0x1f1   :  { %4967 = vmatpush1.bf16.msra.mxu0 %v6298_v59  ;;  %5213 = vmatpush1.bf16.msra.mxu1 %v6300_v33  ;;  %v277_v59 = vld [vmem:[#allocation2 + $0x618] sm:$0xff]  ;;  %v288_v38 = vld [vmem:[#allocation2 + $0x670] sm:$0xff] }
 0x1f2   :  { %4968 = vmatprep.subr.bf16.mxu0 %v6307_v63  ;;  %5214 = vmatprep.subr.bf16.mxu1 %v6309_v9  ;;  %v281_v33 = vld [vmem:[#allocation2 + $0x638] sm:$0xff]  ;;  %v6354_v63 = vcombine.low %v268_v20, %v272_v21  ;;  %v6356_v9 = vcombine.low %v269_v22, %v273_v24  ;;  %v6371_v45 = vcombine.high %v284_v37, %v288_v38  ;;  %v324_v22 = vld [vmem:[#allocation2 + $0x790] sm:$0xff] }
 0x1f3   :  { %4998 = vmatprep.mubr.bf16.mxu0 %v7470_v34  ;;  %5244 = vmatprep.mubr.bf16.mxu1 %v7470_v34  ;;  %v6333_v34 = vcombine.high %v245_v57, %v249_v60  ;;  %v6365_v36 = vcombine.high %v277_v59, %v281_v33  ;;  %v300_v57 = vld [vmem:[#allocation2 + $0x6d0] sm:$0xff]  ;;  %v6403_v20 = vcombine.high %v316_v13, %v320_v14 }
 0x1f4   :  { %v304_v60 = vld [vmem:[#allocation2 + $0x6f0] sm:$0xff] }
 0x1f5   :  { %4969 = vmatpush1.bf16.msra.mxu0 %v6306_v39  ;;  %5215 = vmatpush1.bf16.msra.mxu1 %v6308_v41  ;;  %v285_v39 = vld [vmem:[#allocation2 + $0x658] sm:$0xff]  ;;  %v6387_v0 = vcombine.high %v300_v57, %v304_v60  ;;  %v328_v24 = vld [vmem:[#allocation2 + $0x7b0] sm:$0xff] }
 0x1f6   :  { %4970 = vmatprep.subr.bf16.mxu0 %v6315_v42  ;;  %5216 = vmatprep.subr.bf16.mxu1 %v6317_v44  ;;  %v289_v41 = vld [vmem:[#allocation2 + $0x678] sm:$0xff]  ;;  %v6362_v42 = vcombine.low %v276_v30, %v280_v32  ;;  %v6364_v44 = vcombine.low %v277_v59, %v281_v33  ;;  %v6411_v30 = vcombine.high %v324_v22, %v328_v24  ;;  %v332_v59 = vld [vmem:[#allocation2 + $0x7d0] sm:$0xff] }
 0x1f7   :  { %v6373_v46 = vcombine.high %v285_v39, %v289_v41  ;;  %v336_v33 = vld [vmem:[#allocation2 + $0x7f0] sm:$0xff] }
 0x1f9   :  { %4971 = vmatpush1.bf16.msra.mxu0 %v6314_v51  ;;  %5217 = vmatpush1.bf16.msra.mxu1 %v6316_v23  ;;  %v293_v51 = vld [vmem:[#allocation2 + $0x698] sm:$0xff] }
 0x1fa   :  { %4972 = vmatprep.subr.bf16.mxu0 %v6323_v52  ;;  %5218 = vmatprep.subr.bf16.mxu1 %v6325_v54  ;;  %v297_v23 = vld [vmem:[#allocation2 + $0x6b8] sm:$0xff]  ;;  %v6370_v52 = vcombine.low %v284_v37, %v288_v38  ;;  %v6372_v54 = vcombine.low %v285_v39, %v289_v41  ;;  %v6419_v37 = vcombine.high %v332_v59, %v336_v33  ;;  %v340_v39 = vld [vmem:[#allocation2 + $0x810] sm:$0xff] }
 0x1fb   :  { %v6381_v56 = vcombine.high %v293_v51, %v297_v23  ;;  %v344_v41 = vld [vmem:[#allocation2 + $0x830] sm:$0xff] }
 0x1fd   :  { %4973 = vmatpush1.bf16.msra.mxu0 %v6322_v61  ;;  %5219 = vmatpush1.bf16.msra.mxu1 %v6324_v53  ;;  %v301_v61 = vld [vmem:[#allocation2 + $0x6d8] sm:$0xff] }
 0x1fe   :  { %4974 = vmatprep.subr.bf16.mxu0 %v6331_v10  ;;  %5220 = vmatprep.subr.bf16.mxu1 %v6333_v34  ;;  %v305_v53 = vld [vmem:[#allocation2 + $0x6f8] sm:$0xff]  ;;  %v6378_v10 = vcombine.low %v292_v49, %v296_v50  ;;  %v6380_v34 = vcombine.low %v293_v51, %v297_v23  ;;  %v6427_v49 = vcombine.high %v340_v39, %v344_v41  ;;  %v348_v51 = vld [vmem:[#allocation2 + $0x850] sm:$0xff] }
 0x1ff   :  { %v6389_v1 = vcombine.high %v301_v61, %v305_v53  ;;  %v352_v23 = vld [vmem:[#allocation2 + $0x870] sm:$0xff] }
 0x201   :  { %4975 = vmatpush1.bf16.msra.mxu0 %v6330_v31  ;;  %5221 = vmatpush1.bf16.msra.mxu1 %v6332_v6  ;;  %v309_v31 = vld [vmem:[#allocation2 + $0x718] sm:$0xff] }
 0x202   :  { %4976 = vmatprep.subr.bf16.mxu0 %v6339_v7  ;;  %5222 = vmatprep.subr.bf16.mxu1 %v6341_v8  ;;  %v313_v6 = vld [vmem:[#allocation2 + $0x738] sm:$0xff]  ;;  %v6386_v7 = vcombine.low %v300_v57, %v304_v60  ;;  %v6388_v8 = vcombine.low %v301_v61, %v305_v53  ;;  %v6435_v57 = vcombine.high %v348_v51, %v352_v23  ;;  %v356_v61 = vld [vmem:[#allocation2 + $0x890] sm:$0xff] }
 0x203   :  { %v6397_v12 = vcombine.high %v309_v31, %v313_v6  ;;  %v360_v53 = vld [vmem:[#allocation2 + $0x8b0] sm:$0xff] }
 0x205   :  { %4977 = vmatpush1.bf16.msra.mxu0 %v6338_v15  ;;  %5223 = vmatpush1.bf16.msra.mxu1 %v6340_v16  ;;  %v317_v15 = vld [vmem:[#allocation2 + $0x758] sm:$0xff] }
 0x206   :  { %4978 = vmatprep.subr.bf16.mxu0 %v6347_v17  ;;  %5224 = vmatprep.subr.bf16.mxu1 %v6349_v19  ;;  %v321_v16 = vld [vmem:[#allocation2 + $0x778] sm:$0xff]  ;;  %v6394_v17 = vcombine.low %v308_v2, %v312_v4  ;;  %v6396_v19 = vcombine.low %v309_v31, %v313_v6  ;;  %v6443_v2 = vcombine.high %v356_v61, %v360_v53  ;;  %v364_v31 = vld [vmem:[#allocation2 + $0x8d0] sm:$0xff] }
 0x207   :  { %v6405_v21 = vcombine.high %v317_v15, %v321_v16  ;;  %v368_v6 = vld [vmem:[#allocation2 + $0x8f0] sm:$0xff] }
 0x209   :  { %4979 = vmatpush1.bf16.msra.mxu0 %v6346_v25  ;;  %5225 = vmatpush1.bf16.msra.mxu1 %v6348_v26  ;;  %v325_v25 = vld [vmem:[#allocation2 + $0x798] sm:$0xff] }
 0x20a   :  { %4980 = vmatprep.subr.bf16.mxu0 %v6355_v27  ;;  %5226 = vmatprep.subr.bf16.mxu1 %v6357_v29  ;;  %v329_v26 = vld [vmem:[#allocation2 + $0x7b8] sm:$0xff]  ;;  %v6402_v27 = vcombine.low %v316_v13, %v320_v14  ;;  %v6404_v29 = vcombine.low %v317_v15, %v321_v16  ;;  %v372_v14 = vld [vmem:[#allocation2 + $0x910] sm:$0xff] }
 0x20b   :  { %v6413_v32 = vcombine.high %v325_v25, %v329_v26  ;;  %v376_v15 = vld [vmem:[#allocation2 + $0x930] sm:$0xff]  ;;  %v373_v16 = vld [vmem:[#allocation2 + $0x918] sm:$0xff] }
 0x20d   :  { %4981 = vmatpush1.bf16.msra.mxu0 %v6354_v63  ;;  %5227 = vmatpush1.bf16.msra.mxu1 %v6356_v9  ;;  %v333_v63 = vld [vmem:[#allocation2 + $0x7d8] sm:$0xff] }
 0x20e   :  { %4982 = vmatprep.subr.bf16.mxu0 %v6363_v35  ;;  %5228 = vmatprep.subr.bf16.mxu1 %v6365_v36  ;;  %v337_v9 = vld [vmem:[#allocation2 + $0x7f8] sm:$0xff]  ;;  %v6410_v35 = vcombine.low %v324_v22, %v328_v24  ;;  %v6412_v36 = vcombine.low %v325_v25, %v329_v26  ;;  %v380_v22 = vld [vmem:[#allocation2 + $0x950] sm:$0xff] }
 0x20f   :  { %v6421_v38 = vcombine.high %v333_v63, %v337_v9  ;;  %v384_v24 = vld [vmem:[#allocation2 + $0x970] sm:$0xff]  ;;  %v381_v25 = vld [vmem:[#allocation2 + $0x958] sm:$0xff] }
 0x210   :  { %v385_v26 = vld [vmem:[#allocation2 + $0x978] sm:$0xff] }
 0x211   :  { %4983 = vmatpush1.bf16.msra.mxu0 %v6362_v42  ;;  %5229 = vmatpush1.bf16.msra.mxu1 %v6364_v44  ;;  %v341_v42 = vld [vmem:[#allocation2 + $0x818] sm:$0xff] }
 0x212   :  { %4984 = vmatprep.subr.bf16.mxu0 %v6371_v45  ;;  %5230 = vmatprep.subr.bf16.mxu1 %v6373_v46  ;;  %v345_v44 = vld [vmem:[#allocation2 + $0x838] sm:$0xff]  ;;  %v6418_v45 = vcombine.low %v332_v59, %v336_v33  ;;  %v6420_v46 = vcombine.low %v333_v63, %v337_v9  ;;  %v388_v59 = vld [vmem:[#allocation2 + $0x990] sm:$0xff] }
 0x213   :  { %v6429_v50 = vcombine.high %v341_v42, %v345_v44  ;;  %v392_v33 = vld [vmem:[#allocation2 + $0x9b0] sm:$0xff]  ;;  %v389_v63 = vld [vmem:[#allocation2 + $0x998] sm:$0xff] }
 0x214   :  { %v393_v9 = vld [vmem:[#allocation2 + $0x9b8] sm:$0xff] }
 0x215   :  { %4985 = vmatpush1.bf16.msra.mxu0 %v6370_v52  ;;  %5231 = vmatpush1.bf16.msra.mxu1 %v6372_v54  ;;  %v349_v52 = vld [vmem:[#allocation2 + $0x858] sm:$0xff] }
 0x216   :  { %4986 = vmatprep.subr.bf16.mxu0 %v6379_v55  ;;  %5232 = vmatprep.subr.bf16.mxu1 %v6381_v56  ;;  %v353_v54 = vld [vmem:[#allocation2 + $0x878] sm:$0xff]  ;;  %v6426_v55 = vcombine.low %v340_v39, %v344_v41  ;;  %v6428_v56 = vcombine.low %v341_v42, %v345_v44  ;;  %v396_v39 = vld [vmem:[#allocation2 + $0x9d0] sm:$0xff] }
 0x217   :  { %v6437_v60 = vcombine.high %v349_v52, %v353_v54  ;;  %v400_v41 = vld [vmem:[#allocation2 + $0x9f0] sm:$0xff]  ;;  %v397_v42 = vld [vmem:[#allocation2 + $0x9d8] sm:$0xff] }
 0x218   :  { %v401_v44 = vld [vmem:[#allocation2 + $0x9f8] sm:$0xff] }
 0x219   :  { %4987 = vmatpush1.bf16.msra.mxu0 %v6378_v10  ;;  %5233 = vmatpush1.bf16.msra.mxu1 %v6380_v34  ;;  %v357_v10 = vld [vmem:[#allocation2 + $0x898] sm:$0xff] }
 0x21a   :  { %4988 = vmatprep.subr.bf16.mxu0 %v6387_v0  ;;  %5234 = vmatprep.subr.bf16.mxu1 %v6389_v1  ;;  %v361_v34 = vld [vmem:[#allocation2 + $0x8b8] sm:$0xff]  ;;  %v6434_v0 = vcombine.low %v348_v51, %v352_v23  ;;  %v6436_v1 = vcombine.low %v349_v52, %v353_v54  ;;  %v404_v51 = vld [vmem:[#allocation2 + $0xa10] sm:$0xff] }
 0x21b   :  { %v6445_v4 = vcombine.high %v357_v10, %v361_v34  ;;  %v408_v23 = vld [vmem:[#allocation2 + $0xa30] sm:$0xff]  ;;  %v405_v52 = vld [vmem:[#allocation2 + $0xa18] sm:$0xff] }
 0x21c   :  { %v409_v54 = vld [vmem:[#allocation2 + $0xa38] sm:$0xff] }
 0x21d   :  { %4989 = vmatpush1.bf16.msra.mxu0 %v6386_v7  ;;  %5235 = vmatpush1.bf16.msra.mxu1 %v6388_v8  ;;  %v365_v7 = vld [vmem:[#allocation2 + $0x8d8] sm:$0xff] }
 0x21e   :  { %4990 = vmatprep.subr.bf16.mxu0 %v6395_v11  ;;  %5236 = vmatprep.subr.bf16.mxu1 %v6397_v12  ;;  %v369_v8 = vld [vmem:[#allocation2 + $0x8f8] sm:$0xff]  ;;  %v6442_v11 = vcombine.low %v356_v61, %v360_v53  ;;  %v6451_v12 = vcombine.high %v364_v31, %v368_v6  ;;  %v412_v61 = vld [vmem:[#allocation2 + $0xa50] sm:$0xff] }
 0x21f   :  { %v6453_v13 = vcombine.high %v365_v7, %v369_v8  ;;  %v416_v53 = vld [vmem:[#allocation2 + $0xa70] sm:$0xff] }
 0x221   :  { %4991 = vmatpush1.bf16.msra.mxu0 %v6394_v17  ;;  %5237 = vmatpush1.bf16.msra.mxu1 %v6396_v19  ;;  %v377_v17 = vld [vmem:[#allocation2 + $0x938] sm:$0xff]  ;;  %v6450_v19 = vcombine.low %v364_v31, %v368_v6  ;;  %v420_v31 = vld [vmem:[#allocation2 + $0xa90] sm:$0xff] }
 0x222   :  { %4992 = vmatprep.subr.bf16.mxu0 %v6403_v20  ;;  %5238 = vmatprep.subr.bf16.mxu1 %v6405_v21  ;;  %v6452_v20 = vcombine.low %v365_v7, %v369_v8  ;;  %v6459_v21 = vcombine.high %v372_v14, %v376_v15  ;;  %v424_v6 = vld [vmem:[#allocation2 + $0xab0] sm:$0xff]  ;;  %v421_v7 = vld [vmem:[#allocation2 + $0xa98] sm:$0xff] }
 0x223   :  { %v425_v8 = vld [vmem:[#allocation2 + $0xab8] sm:$0xff] }
 0x225   :  { %4993 = vmatpush1.bf16.msra.mxu0 %v6402_v27  ;;  %5239 = vmatpush1.bf16.msra.mxu1 %v6404_v29  ;;  %v6458_v27 = vcombine.low %v372_v14, %v376_v15  ;;  %v6460_v29 = vcombine.low %v373_v16, %v377_v17  ;;  %v428_v14 = vld [vmem:[#allocation2 + $0xad0] sm:$0xff] }
 0x226   :  { %4994 = vmatprep.subr.bf16.mxu0 %v6411_v30  ;;  %5240 = vmatprep.subr.bf16.mxu1 %v6413_v32  ;;  %v6467_v30 = vcombine.high %v380_v22, %v384_v24  ;;  %v6469_v32 = vcombine.high %v381_v25, %v385_v26  ;;  %v432_v15 = vld [vmem:[#allocation2 + $0xaf0] sm:$0xff] }
 0x229   :  { %4995 = vmatpush1.bf16.msra.mxu0 %v6410_v35  ;;  %5241 = vmatpush1.bf16.msra.mxu1 %v6412_v36  ;;  %v6466_v35 = vcombine.low %v380_v22, %v384_v24  ;;  %v6468_v36 = vcombine.low %v381_v25, %v385_v26  ;;  %v436_v22 = vld [vmem:[#allocation2 + $0xb10] sm:$0xff]  ;;  %v437_v25 = vld [vmem:[#allocation2 + $0xb18] sm:$0xff] }
 0x22a   :  { %4996 = vmatprep.subr.bf16.mxu0 %v6419_v37  ;;  %5242 = vmatprep.subr.bf16.mxu1 %v6421_v38  ;;  %v6475_v37 = vcombine.high %v388_v59, %v392_v33  ;;  %v6477_v38 = vcombine.high %v389_v63, %v393_v9  ;;  %v440_v24 = vld [vmem:[#allocation2 + $0xb30] sm:$0xff]  ;;  %v441_v26 = vld [vmem:[#allocation2 + $0xb38] sm:$0xff] }
 0x22d   :  { %4997 = vmatpush1.bf16.msra.mxu0 %v6418_v45  ;;  %5243 = vmatpush1.bf16.msra.mxu1 %v6420_v46  ;;  %v6474_v45 = vcombine.low %v388_v59, %v392_v33  ;;  %v6476_v46 = vcombine.low %v389_v63, %v393_v9  ;;  %v444_v59 = vld [vmem:[#allocation2 + $0xb50] sm:$0xff]  ;;  %v445_v63 = vld [vmem:[#allocation2 + $0xb58] sm:$0xff] }
 0x22e   :  { %5007 = vmatprep.subr.bf16.mxu0 %v6427_v49  ;;  %5253 = vmatprep.subr.bf16.mxu1 %v6429_v50  ;;  %v6483_v49 = vcombine.high %v396_v39, %v400_v41  ;;  %v6485_v50 = vcombine.high %v397_v42, %v401_v44  ;;  %v448_v33 = vld [vmem:[#allocation2 + $0xb70] sm:$0xff]  ;;  %v449_v9 = vld [vmem:[#allocation2 + $0xb78] sm:$0xff] }
 0x230   :  { %4999 = vmatmul.mubr.bf16.vlgmr.msra.gmra.mrb[4].mxu0 %v7485_v40  ;;  %5245 = vmatmul.mubr.bf16.vlgmr.msra.gmra.mrb[4].mxu1 %v7485_v40  ;;  %v6444_v40 = vcombine.low %v357_v10, %v361_v34  ;;  %v413_v10 = vld [vmem:[#allocation2 + $0xa58] sm:$0xff] }
 0x231   :  { %5008 = vmatpush1.bf16.msra.mxu0 %v6426_v55  ;;  %5254 = vmatpush1.bf16.msra.mxu1 %v6428_v56  ;;  %v6482_v55 = vcombine.low %v396_v39, %v400_v41  ;;  %v6484_v56 = vcombine.low %v397_v42, %v401_v44  ;;  %v417_v34 = vld [vmem:[#allocation2 + $0xa78] sm:$0xff]  ;;  %v452_v39 = vld [vmem:[#allocation2 + $0xb90] sm:$0xff] }
 0x232   :  { %5009 = vmatprep.subr.bf16.mxu0 %v6435_v57  ;;  %5255 = vmatprep.subr.bf16.mxu1 %v6437_v60  ;;  %v6491_v57 = vcombine.high %v404_v51, %v408_v23  ;;  %v6493_v60 = vcombine.high %v405_v52, %v409_v54  ;;  %v456_v41 = vld [vmem:[#allocation2 + $0xbb0] sm:$0xff]  ;;  %v453_v42 = vld [vmem:[#allocation2 + $0xb98] sm:$0xff] }
 0x233   :  { %5039 = vmatprep.mubr.bf16.mxu0 %v7488_v48  ;;  %5285 = vmatprep.mubr.bf16.mxu1 %v7488_v48  ;;  %v6461_v48 = vcombine.high %v373_v16, %v377_v17  ;;  %v429_v16 = vld [vmem:[#allocation2 + $0xad8] sm:$0xff] }
 0x234   :  { %v433_v17 = vld [vmem:[#allocation2 + $0xaf8] sm:$0xff] }
 0x235   :  { %5010 = vmatpush1.bf16.msra.mxu0 %v6434_v0  ;;  %5256 = vmatpush1.bf16.msra.mxu1 %v6436_v1  ;;  %v6490_v0 = vcombine.low %v404_v51, %v408_v23  ;;  %v6492_v1 = vcombine.low %v405_v52, %v409_v54  ;;  %v457_v44 = vld [vmem:[#allocation2 + $0xbb8] sm:$0xff]  ;;  %v460_v51 = vld [vmem:[#allocation2 + $0xbd0] sm:$0xff] }
 0x236   :  { %5011 = vmatprep.subr.bf16.mxu0 %v6443_v2  ;;  %5257 = vmatprep.subr.bf16.mxu1 %v6445_v4  ;;  %v6499_v2 = vcombine.high %v412_v61, %v416_v53  ;;  %v6501_v4 = vcombine.high %v413_v10, %v417_v34  ;;  %v464_v23 = vld [vmem:[#allocation2 + $0xbf0] sm:$0xff]  ;;  %v461_v52 = vld [vmem:[#allocation2 + $0xbd8] sm:$0xff] }
 0x237   :  { %v465_v54 = vld [vmem:[#allocation2 + $0xbf8] sm:$0xff] }
 0x239   :  { %5012 = vmatpush1.bf16.msra.mxu0 %v6442_v11  ;;  %5258 = vmatpush1.bf16.msra.mxu1 %v6444_v40  ;;  %v6498_v11 = vcombine.low %v412_v61, %v416_v53  ;;  %v6500_v40 = vcombine.low %v413_v10, %v417_v34  ;;  %v468_v61 = vld [vmem:[#allocation2 + $0xc10] sm:$0xff]  ;;  %v469_v10 = vld [vmem:[#allocation2 + $0xc18] sm:$0xff] }
 0x23a   :  { %5013 = vmatprep.subr.bf16.mxu0 %v6451_v12  ;;  %5259 = vmatprep.subr.bf16.mxu1 %v6453_v13  ;;  %v6507_v12 = vcombine.high %v420_v31, %v424_v6  ;;  %v6509_v13 = vcombine.high %v421_v7, %v425_v8  ;;  %v472_v53 = vld [vmem:[#allocation2 + $0xc30] sm:$0xff]  ;;  %v473_v34 = vld [vmem:[#allocation2 + $0xc38] sm:$0xff] }
 0x23d   :  { %5014 = vmatpush1.bf16.msra.mxu0 %v6450_v19  ;;  %5260 = vmatpush1.bf16.msra.mxu1 %v6452_v20  ;;  %v6506_v19 = vcombine.low %v420_v31, %v424_v6  ;;  %v6508_v20 = vcombine.low %v421_v7, %v425_v8  ;;  %v476_v31 = vld [vmem:[#allocation2 + $0xc50] sm:$0xff]  ;;  %v477_v7 = vld [vmem:[#allocation2 + $0xc58] sm:$0xff] }
 0x23e   :  { %5015 = vmatprep.subr.bf16.mxu0 %v6459_v21  ;;  %5261 = vmatprep.subr.bf16.mxu1 %v6461_v48  ;;  %v6515_v21 = vcombine.high %v428_v14, %v432_v15  ;;  %v6517_v48 = vcombine.high %v429_v16, %v433_v17  ;;  %v480_v6 = vld [vmem:[#allocation2 + $0xc70] sm:$0xff]  ;;  %v481_v8 = vld [vmem:[#allocation2 + $0xc78] sm:$0xff] }
 0x241   :  { %5016 = vmatpush1.bf16.msra.mxu0 %v6458_v27  ;;  %5262 = vmatpush1.bf16.msra.mxu1 %v6460_v29  ;;  %v6514_v27 = vcombine.low %v428_v14, %v432_v15  ;;  %v6516_v29 = vcombine.low %v429_v16, %v433_v17  ;;  %v484_v14 = vld [vmem:[#allocation2 + $0xc90] sm:$0xff]  ;;  %v485_v16 = vld [vmem:[#allocation2 + $0xc98] sm:$0xff] }
 0x242   :  { %5017 = vmatprep.subr.bf16.mxu0 %v6467_v30  ;;  %5263 = vmatprep.subr.bf16.mxu1 %v6469_v32  ;;  %v6523_v30 = vcombine.high %v436_v22, %v440_v24  ;;  %v6525_v32 = vcombine.high %v437_v25, %v441_v26  ;;  %v488_v15 = vld [vmem:[#allocation2 + $0xcb0] sm:$0xff]  ;;  %v489_v17 = vld [vmem:[#allocation2 + $0xcb8] sm:$0xff] }
 0x245   :  { %5018 = vmatpush1.bf16.msra.mxu0 %v6466_v35  ;;  %5264 = vmatpush1.bf16.msra.mxu1 %v6468_v36  ;;  %v6522_v35 = vcombine.low %v436_v22, %v440_v24  ;;  %v6524_v36 = vcombine.low %v437_v25, %v441_v26  ;;  %v492_v22 = vld [vmem:[#allocation2 + $0xcd0] sm:$0xff]  ;;  %v493_v25 = vld [vmem:[#allocation2 + $0xcd8] sm:$0xff] }
 0x246   :  { %5019 = vmatprep.subr.bf16.mxu0 %v6475_v37  ;;  %5265 = vmatprep.subr.bf16.mxu1 %v6477_v38  ;;  %v6531_v37 = vcombine.high %v444_v59, %v448_v33  ;;  %v6533_v38 = vcombine.high %v445_v63, %v449_v9  ;;  %v496_v24 = vld [vmem:[#allocation2 + $0xcf0] sm:$0xff]  ;;  %v497_v26 = vld [vmem:[#allocation2 + $0xcf8] sm:$0xff] }
 0x249   :  { %5020 = vmatpush1.bf16.msra.mxu0 %v6474_v45  ;;  %5266 = vmatpush1.bf16.msra.mxu1 %v6476_v46  ;;  %v6530_v45 = vcombine.low %v444_v59, %v448_v33  ;;  %v6532_v46 = vcombine.low %v445_v63, %v449_v9  ;;  %v504_v59 = vld [vmem:[#allocation2 + $0xd30] sm:$0xff]  ;;  %v501_v33 = vld [vmem:[#allocation2 + $0xd18] sm:$0xff]  ;;  %v6578_v9 = vcombine.low %v492_v22, %v496_v24 }
 0x24a   :  { %5021 = vmatprep.subr.bf16.mxu0 %v6483_v49  ;;  %5267 = vmatprep.subr.bf16.mxu1 %v6485_v50  ;;  %v6539_v49 = vcombine.high %v452_v39, %v456_v41  ;;  %v6541_v50 = vcombine.high %v453_v42, %v457_v44  ;;  %v505_v63 = vld [vmem:[#allocation2 + $0xd38] sm:$0xff] }
 0x24d   :  { %5022 = vmatpush1.bf16.msra.mxu0 %v6482_v55  ;;  %5268 = vmatpush1.bf16.msra.mxu1 %v6484_v56  ;;  %v6538_v55 = vcombine.low %v452_v39, %v456_v41  ;;  %v6540_v56 = vcombine.low %v453_v42, %v457_v44  ;;  %v509_v39 = vld [vmem:[#allocation2 + $0xd58] sm:$0xff]  ;;  %v6588_v44 = vcombine.low %v501_v33, %v505_v63 }
 0x24e   :  { %5023 = vmatprep.subr.bf16.mxu0 %v6491_v57  ;;  %5269 = vmatprep.subr.bf16.mxu1 %v6493_v60  ;;  %v6547_v57 = vcombine.high %v460_v51, %v464_v23  ;;  %v6549_v60 = vcombine.high %v461_v52, %v465_v54  ;;  %v513_v41 = vld [vmem:[#allocation2 + $0xd78] sm:$0xff] }
 0x251   :  { %5024 = vmatpush1.bf16.msra.mxu0 %v6490_v0  ;;  %5270 = vmatpush1.bf16.msra.mxu1 %v6492_v1  ;;  %v6546_v0 = vcombine.low %v460_v51, %v464_v23  ;;  %v6548_v1 = vcombine.low %v461_v52, %v465_v54  ;;  %v517_v51 = vld [vmem:[#allocation2 + $0xd98] sm:$0xff]  ;;  %v6596_v54 = vcombine.low %v509_v39, %v513_v41 }
 0x252   :  { %5025 = vmatprep.subr.bf16.mxu0 %v6499_v2  ;;  %5271 = vmatprep.subr.bf16.mxu1 %v6501_v4  ;;  %v6555_v2 = vcombine.high %v468_v61, %v472_v53  ;;  %v6557_v4 = vcombine.high %v469_v10, %v473_v34  ;;  %v521_v23 = vld [vmem:[#allocation2 + $0xdb8] sm:$0xff] }
 0x255   :  { %5026 = vmatpush1.bf16.msra.mxu0 %v6498_v11  ;;  %5272 = vmatpush1.bf16.msra.mxu1 %v6500_v40  ;;  %v6554_v11 = vcombine.low %v468_v61, %v472_v53  ;;  %v6556_v40 = vcombine.low %v469_v10, %v473_v34  ;;  %v528_v61 = vld [vmem:[#allocation2 + $0xdf0] sm:$0xff]  ;;  %v525_v34 = vld [vmem:[#allocation2 + $0xdd8] sm:$0xff] }
 0x256   :  { %5027 = vmatprep.subr.bf16.mxu0 %v6507_v12  ;;  %5273 = vmatprep.subr.bf16.mxu1 %v6509_v13  ;;  %v6563_v12 = vcombine.high %v476_v31, %v480_v6  ;;  %v6565_v13 = vcombine.high %v477_v7, %v481_v8 }
 0x259   :  { %5028 = vmatpush1.bf16.msra.mxu0 %v6506_v19  ;;  %5274 = vmatpush1.bf16.msra.mxu1 %v6508_v20  ;;  %v6562_v19 = vcombine.low %v476_v31, %v480_v6  ;;  %v6564_v20 = vcombine.low %v477_v7, %v481_v8  ;;  %v6604_v7 = vcombine.low %v517_v51, %v521_v23 }
 0x25a   :  { %5029 = vmatprep.subr.bf16.mxu0 %v6515_v21  ;;  %5275 = vmatprep.subr.bf16.mxu1 %v6517_v48  ;;  %v6571_v21 = vcombine.high %v484_v14, %v488_v15  ;;  %v6573_v48 = vcombine.high %v485_v16, %v489_v17 }
 0x25d   :  { %5030 = vmatpush1.bf16.msra.mxu0 %v6514_v27  ;;  %5276 = vmatpush1.bf16.msra.mxu1 %v6516_v29  ;;  %v6570_v27 = vcombine.low %v484_v14, %v488_v15  ;;  %v6579_v29 = vcombine.high %v492_v22, %v496_v24  ;;  %v533_v14 = vld [vmem:[#allocation2 + $0xe18] sm:$0xff] }
 0x25e   :  { %5031 = vmatprep.subr.bf16.mxu0 %v6523_v30  ;;  %5277 = vmatprep.subr.bf16.mxu1 %v6525_v32  ;;  %v6581_v30 = vcombine.high %v493_v25, %v497_v26  ;;  %v500_v32 = vld [vmem:[#allocation2 + $0xd10] sm:$0xff]  ;;  %v537_v15 = vld [vmem:[#allocation2 + $0xe38] sm:$0xff] }
 0x25f   :  { %v6586_v42 = vcombine.low %v500_v32, %v504_v59  ;;  %v541_v22 = vld [vmem:[#allocation2 + $0xe58] sm:$0xff] }
 0x260   :  { %v545_v24 = vld [vmem:[#allocation2 + $0xe78] sm:$0xff] }
 0x261   :  { %5032 = vmatpush1.bf16.msra.mxu0 %v6522_v35  ;;  %5278 = vmatpush1.bf16.msra.mxu1 %v6524_v36  ;;  %v6580_v35 = vcombine.low %v493_v25, %v497_v26  ;;  %v6587_v36 = vcombine.high %v500_v32, %v504_v59  ;;  %v6620_v26 = vcombine.low %v533_v14, %v537_v15  ;;  %v549_v32 = vld [vmem:[#allocation2 + $0xe98] sm:$0xff] }
 0x262   :  { %5033 = vmatprep.subr.bf16.mxu0 %v6531_v37  ;;  %5279 = vmatprep.subr.bf16.mxu1 %v6533_v38  ;;  %v508_v37 = vld [vmem:[#allocation2 + $0xd50] sm:$0xff]  ;;  %v553_v59 = vld [vmem:[#allocation2 + $0xeb8] sm:$0xff] }
 0x263   :  { %v512_v38 = vld [vmem:[#allocation2 + $0xd70] sm:$0xff] }
 0x264   :  { %v6594_v52 = vcombine.low %v508_v37, %v512_v38 }
 0x265   :  { %5034 = vmatpush1.bf16.msra.mxu0 %v6530_v45  ;;  %5280 = vmatpush1.bf16.msra.mxu1 %v6532_v46  ;;  %v6595_v45 = vcombine.high %v508_v37, %v512_v38  ;;  %v6597_v46 = vcombine.high %v509_v39, %v513_v41  ;;  %v557_v37 = vld [vmem:[#allocation2 + $0xed8] sm:$0xff]  ;;  %v6636_v41 = vcombine.low %v549_v32, %v553_v59 }
 0x266   :  { %5035 = vmatprep.subr.bf16.mxu0 %v6539_v49  ;;  %5281 = vmatprep.subr.bf16.mxu1 %v6541_v50  ;;  %v516_v49 = vld [vmem:[#allocation2 + $0xd90] sm:$0xff]  ;;  %v561_v38 = vld [vmem:[#allocation2 + $0xef8] sm:$0xff] }
 0x267   :  { %v520_v50 = vld [vmem:[#allocation2 + $0xdb0] sm:$0xff] }
 0x269   :  { %5036 = vmatpush1.bf16.msra.mxu0 %v6538_v55  ;;  %5282 = vmatpush1.bf16.msra.mxu1 %v6540_v56  ;;  %v6603_v55 = vcombine.high %v516_v49, %v520_v50 }
 0x26a   :  { %5037 = vmatprep.subr.bf16.mxu0 %v6547_v57  ;;  %5283 = vmatprep.subr.bf16.mxu1 %v6549_v60  ;;  %v6605_v57 = vcombine.high %v517_v51, %v521_v23  ;;  %v524_v60 = vld [vmem:[#allocation2 + $0xdd0] sm:$0xff]  ;;  %v6644_v23 = vcombine.low %v557_v37, %v561_v38 }
 0x26b   :  { %v6611_v8 = vcombine.high %v524_v60, %v528_v61 }
 0x26d   :  { %5038 = vmatpush1.bf16.msra.mxu0 %v6546_v0  ;;  %5284 = vmatpush1.bf16.msra.mxu1 %v6548_v1  ;;  %v529_v0 = vld [vmem:[#allocation2 + $0xdf8] sm:$0xff] }
 0x26e   :  { %5048 = vmatprep.subr.bf16.mxu0 %v6555_v2  ;;  %5294 = vmatprep.subr.bf16.mxu1 %v6557_v4  ;;  %v6602_v4 = vcombine.low %v516_v49, %v520_v50  ;;  %v565_v49 = vld [vmem:[#allocation2 + $0xf18] sm:$0xff] }
 0x26f   :  { %v569_v50 = vld [vmem:[#allocation2 + $0xf38] sm:$0xff] }
 0x270   :  { %5040 = vmatmul.mubr.bf16.vlgmr.msra.gmra.mrb[4].mxu0 %v7496_v58  ;;  %5286 = vmatmul.mubr.bf16.vlgmr.msra.gmra.mrb[4].mxu1 %v7496_v58  ;;  %v6572_v58 = vcombine.low %v485_v16, %v489_v17  ;;  %v6610_v16 = vcombine.low %v524_v60, %v528_v61  ;;  %v6612_v17 = vcombine.low %v525_v34, %v529_v0  ;;  %v573_v60 = vld [vmem:[#allocation2 + $0xf58] sm:$0xff] }
 0x271   :  { %5049 = vmatpush1.bf16.msra.mxu0 %v6554_v11  ;;  %5295 = vmatpush1.bf16.msra.mxu1 %v6556_v40  ;;  %v6613_v40 = vcombine.high %v525_v34, %v529_v0  ;;  %v577_v61 = vld [vmem:[#allocation2 + $0xf78] sm:$0xff]  ;;  %v6652_v0 = vcombine.low %v565_v49, %v569_v50 }
 0x272   :  { %5050 = vmatprep.subr.bf16.mxu0 %v6563_v12  ;;  %5296 = vmatprep.subr.bf16.mxu1 %v6565_v13  ;;  %v532_v12 = vld [vmem:[#allocation2 + $0xe10] sm:$0xff] }
 0x273   :  { %5080 = vmatprep.mubr.bf16.mxu0 %v7500_v5  ;;  %5326 = vmatprep.mubr.bf16.mxu1 %v7500_v5  ;;  %v6589_v5 = vcombine.high %v501_v33, %v505_v63  ;;  %v536_v13 = vld [vmem:[#allocation2 + $0xe30] sm:$0xff]  ;;  %v6628_v63 = vcombine.low %v541_v22, %v545_v24 }
 0x274   :  { %v6618_v25 = vcombine.low %v532_v12, %v536_v13 }
 0x275   :  { %5051 = vmatpush1.bf16.msra.mxu0 %v6562_v19  ;;  %5297 = vmatpush1.bf16.msra.mxu1 %v6564_v20  ;;  %v6619_v19 = vcombine.high %v532_v12, %v536_v13  ;;  %v6621_v20 = vcombine.high %v533_v14, %v537_v15  ;;  %v588_v14 = vld [vmem:[#allocation2 + $0xfd0] sm:$0xff] }
 0x276   :  { %5052 = vmatprep.subr.bf16.mxu0 %v6571_v21  ;;  %5298 = vmatprep.subr.bf16.mxu1 %v6573_v48  ;;  %v540_v21 = vld [vmem:[#allocation2 + $0xe50] sm:$0xff] }
 0x277   :  { %v544_v48 = vld [vmem:[#allocation2 + $0xe70] sm:$0xff] }
 0x278   :  { %v6626_v33 = vcombine.low %v540_v21, %v544_v48  ;;  %v592_v15 = vld [vmem:[#allocation2 + $0xff0] sm:$0xff] }
 0x279   :  { %5053 = vmatpush1.bf16.msra.mxu0 %v6570_v27  ;;  %5299 = vmatpush1.bf16.msra.mxu1 %v6572_v58  ;;  %v6627_v27 = vcombine.high %v540_v21, %v544_v48  ;;  %v6629_v58 = vcombine.high %v541_v22, %v545_v24  ;;  %v6675_v21 = vcombine.high %v588_v14, %v592_v15  ;;  %v596_v22 = vld [vmem:[#allocation2 + $0x1010] sm:$0xff] }
 0x27a   :  { %5054 = vmatprep.subr.bf16.mxu0 %v6579_v29  ;;  %5300 = vmatprep.subr.bf16.mxu1 %v6581_v30  ;;  %v548_v29 = vld [vmem:[#allocation2 + $0xe90] sm:$0xff] }
 0x27b   :  { %v552_v30 = vld [vmem:[#allocation2 + $0xeb0] sm:$0xff] }
 0x27c   :  { %v6634_v39 = vcombine.low %v548_v29, %v552_v30  ;;  %v600_v24 = vld [vmem:[#allocation2 + $0x1030] sm:$0xff] }
 0x27d   :  { %5055 = vmatpush1.bf16.msra.mxu0 %v6578_v9  ;;  %5301 = vmatpush1.bf16.msra.mxu1 %v6580_v35  ;;  %v6635_v9 = vcombine.high %v548_v29, %v552_v30  ;;  %v6637_v35 = vcombine.high %v549_v32, %v553_v59  ;;  %v6683_v29 = vcombine.high %v596_v22, %v600_v24  ;;  %v604_v32 = vld [vmem:[#allocation2 + $0x1050] sm:$0xff] }
 0x27e   :  { %5056 = vmatprep.subr.bf16.mxu0 %v6587_v36  ;;  %5302 = vmatprep.subr.bf16.mxu1 %v6589_v5  ;;  %v556_v36 = vld [vmem:[#allocation2 + $0xed0] sm:$0xff] }
 0x27f   :  { %v560_v5 = vld [vmem:[#allocation2 + $0xef0] sm:$0xff] }
 0x280   :  { %v6642_v51 = vcombine.low %v556_v36, %v560_v5  ;;  %v608_v59 = vld [vmem:[#allocation2 + $0x1070] sm:$0xff] }
 0x281   :  { %5057 = vmatpush1.bf16.msra.mxu0 %v6586_v42  ;;  %5303 = vmatpush1.bf16.msra.mxu1 %v6588_v44  ;;  %v6643_v42 = vcombine.high %v556_v36, %v560_v5  ;;  %v6645_v44 = vcombine.high %v557_v37, %v561_v38  ;;  %v6691_v36 = vcombine.high %v604_v32, %v608_v59  ;;  %v612_v37 = vld [vmem:[#allocation2 + $0x1090] sm:$0xff] }
 0x282   :  { %5058 = vmatprep.subr.bf16.mxu0 %v6595_v45  ;;  %5304 = vmatprep.subr.bf16.mxu1 %v6597_v46  ;;  %v564_v45 = vld [vmem:[#allocation2 + $0xf10] sm:$0xff] }
 0x283   :  { %v7552_v56 = vpop.f32.mrb[0].mxu0  ;;  %v7554_v53 = vpop.f32.mrb[0].mxu1  ;;  %v568_v46 = vld [vmem:[#allocation2 + $0xf30] sm:$0xff] }
 0x284   :  { %v7556_v10 = vpop.f32.mrb[1].mxu0  ;;  %v7558_v1 = vpop.f32.mrb[1].mxu1  ;;  %v6650_v34 = vcombine.low %v564_v45, %v568_v46  ;;  %v616_v38 = vld [vmem:[#allocation2 + $0x10b0] sm:$0xff] }
 0x285   :  { %v4676_v2 = vpop.f32.mrb[2].mxu0  ;;  %5059 = vmatpush1.bf16.msra.mxu0 %v6594_v52  ;;  %v4922_v31 = vpop.f32.mrb[2].mxu1  ;;  %5305 = vmatpush1.bf16.msra.mxu1 %v6596_v54  ;;  %v6651_v52 = vcombine.high %v564_v45, %v568_v46  ;;  %v6653_v54 = vcombine.high %v565_v49, %v569_v50  ;;  %v6699_v45 = vcombine.high %v612_v37, %v616_v38  ;;  %v620_v49 = vld [vmem:[#allocation2 + $0x10d0] sm:$0xff] }
 0x286   :  { %v4677_v6 = vpop.f32.mrb[3].mxu0  ;;  %5060 = vmatprep.subr.bf16.mxu0 %v6603_v55  ;;  %v4923_v11 = vpop.f32.mrb[3].mxu1  ;;  %5306 = vmatprep.subr.bf16.mxu1 %v6605_v57  ;;  %v572_v55 = vld [vmem:[#allocation2 + $0xf50] sm:$0xff] }
 0x287   :  { %v576_v57 = vld [vmem:[#allocation2 + $0xf70] sm:$0xff] }
 0x288   :  { %v6659_v2 = vcombine.high %v572_v55, %v576_v57  ;;  %v580_v31 = vld [vmem:[#allocation2 + $0xf90] sm:$0xff]  ;;  %v6658_v11 = vcombine.low %v572_v55, %v576_v57 }
 0x289   :  { %5061 = vmatpush1.bf16.msra.mxu0 %v6602_v4  ;;  %5307 = vmatpush1.bf16.msra.mxu1 %v6604_v7  ;;  %v6661_v4 = vcombine.high %v573_v60, %v577_v61  ;;  %v584_v6 = vld [vmem:[#allocation2 + $0xfb0] sm:$0xff]  ;;  %v581_v7 = vld [vmem:[#allocation2 + $0xf98] sm:$0xff] }
 0x28a   :  { %5062 = vmatprep.subr.bf16.mxu0 %v6611_v8  ;;  %5308 = vmatprep.subr.bf16.mxu1 %v6613_v40  ;;  %v585_v8 = vld [vmem:[#allocation2 + $0xfb8] sm:$0xff]  ;;  %v6660_v40 = vcombine.low %v573_v60, %v577_v61  ;;  %v6667_v12 = vcombine.high %v580_v31, %v584_v6  ;;  %v624_v50 = vld [vmem:[#allocation2 + $0x10f0] sm:$0xff] }
 0x28b   :  { %v6669_v13 = vcombine.high %v581_v7, %v585_v8  ;;  %v628_v57 = vld [vmem:[#allocation2 + $0x1110] sm:$0xff]  ;;  %v629_v61 = vld [vmem:[#allocation2 + $0x1118] sm:$0xff] }
 0x28c   :  { %v632_v60 = vld [vmem:[#allocation2 + $0x1130] sm:$0xff] }
 0x28d   :  { %5063 = vmatpush1.bf16.msra.mxu0 %v6610_v16  ;;  %5309 = vmatpush1.bf16.msra.mxu1 %v6612_v17  ;;  %v589_v16 = vld [vmem:[#allocation2 + $0xfd8] sm:$0xff] }
 0x28e   :  { %5064 = vmatprep.subr.bf16.mxu0 %v6619_v19  ;;  %5310 = vmatprep.subr.bf16.mxu1 %v6621_v20  ;;  %v593_v17 = vld [vmem:[#allocation2 + $0xff8] sm:$0xff]  ;;  %v6666_v19 = vcombine.low %v580_v31, %v584_v6  ;;  %v6668_v20 = vcombine.low %v581_v7, %v585_v8  ;;  %v636_v31 = vld [vmem:[#allocation2 + $0x1150] sm:$0xff] }
 0x28f   :  { %v6677_v48 = vcombine.high %v589_v16, %v593_v17  ;;  %v640_v6 = vld [vmem:[#allocation2 + $0x1170] sm:$0xff]  ;;  %v637_v7 = vld [vmem:[#allocation2 + $0x1158] sm:$0xff] }
 0x290   :  { %v641_v8 = vld [vmem:[#allocation2 + $0x1178] sm:$0xff] }
 0x291   :  { %5065 = vmatpush1.bf16.msra.mxu0 %v6618_v25  ;;  %5311 = vmatpush1.bf16.msra.mxu1 %v6620_v26  ;;  %v597_v25 = vld [vmem:[#allocation2 + $0x1018] sm:$0xff] }
 0x292   :  { %5066 = vmatprep.subr.bf16.mxu0 %v6627_v27  ;;  %5312 = vmatprep.subr.bf16.mxu1 %v6629_v58  ;;  %v601_v26 = vld [vmem:[#allocation2 + $0x1038] sm:$0xff]  ;;  %v6674_v27 = vcombine.low %v588_v14, %v592_v15  ;;  %v6676_v58 = vcombine.low %v589_v16, %v593_v17  ;;  %v644_v14 = vld [vmem:[#allocation2 + $0x1190] sm:$0xff] }
 0x293   :  { %v6685_v30 = vcombine.high %v597_v25, %v601_v26  ;;  %v648_v15 = vld [vmem:[#allocation2 + $0x11b0] sm:$0xff]  ;;  %v645_v16 = vld [vmem:[#allocation2 + $0x1198] sm:$0xff] }
 0x294   :  { %v649_v17 = vld [vmem:[#allocation2 + $0x11b8] sm:$0xff] }
 0x295   :  { %5067 = vmatpush1.bf16.msra.mxu0 %v6626_v33  ;;  %5313 = vmatpush1.bf16.msra.mxu1 %v6628_v63  ;;  %v605_v33 = vld [vmem:[#allocation2 + $0x1058] sm:$0xff] }
 0x296   :  { %5068 = vmatprep.subr.bf16.mxu0 %v6635_v9  ;;  %5314 = vmatprep.subr.bf16.mxu1 %v6637_v35  ;;  %v609_v63 = vld [vmem:[#allocation2 + $0x1078] sm:$0xff]  ;;  %v6682_v9 = vcombine.low %v596_v22, %v600_v24  ;;  %v6684_v35 = vcombine.low %v597_v25, %v601_v26  ;;  %v652_v22 = vld [vmem:[#allocation2 + $0x11d0] sm:$0xff] }
 0x297   :  { %v6693_v5 = vcombine.high %v605_v33, %v609_v63  ;;  %v656_v24 = vld [vmem:[#allocation2 + $0x11f0] sm:$0xff]  ;;  %v653_v25 = vld [vmem:[#allocation2 + $0x11d8] sm:$0xff] }
 0x298   :  { %v657_v26 = vld [vmem:[#allocation2 + $0x11f8] sm:$0xff] }
 0x299   :  { %5069 = vmatpush1.bf16.msra.mxu0 %v6634_v39  ;;  %5315 = vmatpush1.bf16.msra.mxu1 %v6636_v41  ;;  %v613_v39 = vld [vmem:[#allocation2 + $0x1098] sm:$0xff] }
 0x29a   :  { %5070 = vmatprep.subr.bf16.mxu0 %v6643_v42  ;;  %5316 = vmatprep.subr.bf16.mxu1 %v6645_v44  ;;  %v617_v41 = vld [vmem:[#allocation2 + $0x10b8] sm:$0xff]  ;;  %v6690_v42 = vcombine.low %v604_v32, %v608_v59  ;;  %v6692_v44 = vcombine.low %v605_v33, %v609_v63  ;;  %v660_v32 = vld [vmem:[#allocation2 + $0x1210] sm:$0xff] }
 0x29b   :  { %v6701_v46 = vcombine.high %v613_v39, %v617_v41  ;;  %v664_v59 = vld [vmem:[#allocation2 + $0x1230] sm:$0xff]  ;;  %v661_v33 = vld [vmem:[#allocation2 + $0x1218] sm:$0xff] }
 0x29c   :  { %v665_v63 = vld [vmem:[#allocation2 + $0x1238] sm:$0xff] }
 0x29d   :  { %5071 = vmatpush1.bf16.msra.mxu0 %v6642_v51  ;;  %5317 = vmatpush1.bf16.msra.mxu1 %v6644_v23  ;;  %v621_v51 = vld [vmem:[#allocation2 + $0x10d8] sm:$0xff] }
 0x29e   :  { %5072 = vmatprep.subr.bf16.mxu0 %v6651_v52  ;;  %5318 = vmatprep.subr.bf16.mxu1 %v6653_v54  ;;  %v625_v23 = vld [vmem:[#allocation2 + $0x10f8] sm:$0xff]  ;;  %v6698_v52 = vcombine.low %v612_v37, %v616_v38  ;;  %v6707_v54 = vcombine.high %v620_v49, %v624_v50  ;;  %v668_v37 = vld [vmem:[#allocation2 + $0x1250] sm:$0xff] }
 0x29f   :  { %v6709_v55 = vcombine.high %v621_v51, %v625_v23  ;;  %v672_v38 = vld [vmem:[#allocation2 + $0x1270] sm:$0xff] }
 0x2a1   :  { %5073 = vmatpush1.bf16.msra.mxu0 %v6650_v34  ;;  %5319 = vmatpush1.bf16.msra.mxu1 %v6652_v0  ;;  %v633_v34 = vld [vmem:[#allocation2 + $0x1138] sm:$0xff]  ;;  %v6706_v0 = vcombine.low %v620_v49, %v624_v50  ;;  %v676_v49 = vld [vmem:[#allocation2 + $0x1290] sm:$0xff] }
 0x2a2   :  { %5074 = vmatprep.subr.bf16.mxu0 %v6659_v2  ;;  %5320 = vmatprep.subr.bf16.mxu1 %v6661_v4  ;;  %v6708_v2 = vcombine.low %v621_v51, %v625_v23  ;;  %v6715_v4 = vcombine.high %v628_v57, %v632_v60  ;;  %v680_v50 = vld [vmem:[#allocation2 + $0x12b0] sm:$0xff]  ;;  %v677_v51 = vld [vmem:[#allocation2 + $0x1298] sm:$0xff] }
 0x2a3   :  { %v681_v23 = vld [vmem:[#allocation2 + $0x12b8] sm:$0xff] }
 0x2a5   :  { %5075 = vmatpush1.bf16.msra.mxu0 %v6658_v11  ;;  %5321 = vmatpush1.bf16.msra.mxu1 %v6660_v40  ;;  %v6714_v11 = vcombine.low %v628_v57, %v632_v60  ;;  %v6716_v40 = vcombine.low %v629_v61, %v633_v34  ;;  %v684_v57 = vld [vmem:[#allocation2 + $0x12d0] sm:$0xff] }
 0x2a6   :  { %5076 = vmatprep.subr.bf16.mxu0 %v6667_v12  ;;  %5322 = vmatprep.subr.bf16.mxu1 %v6669_v13  ;;  %v6723_v12 = vcombine.high %v636_v31, %v640_v6  ;;  %v6725_v13 = vcombine.high %v637_v7, %v641_v8  ;;  %v688_v60 = vld [vmem:[#allocation2 + $0x12f0] sm:$0xff] }
 0x2a9   :  { %5077 = vmatpush1.bf16.msra.mxu0 %v6666_v19  ;;  %5323 = vmatpush1.bf16.msra.mxu1 %v6668_v20  ;;  %v6722_v19 = vcombine.low %v636_v31, %v640_v6  ;;  %v6724_v20 = vcombine.low %v637_v7, %v641_v8  ;;  %v692_v31 = vld [vmem:[#allocation2 + $0x1310] sm:$0xff]  ;;  %v693_v7 = vld [vmem:[#allocation2 + $0x1318] sm:$0xff] }
 0x2aa   :  { %5078 = vmatprep.subr.bf16.mxu0 %v6675_v21  ;;  %5324 = vmatprep.subr.bf16.mxu1 %v6677_v48  ;;  %v6731_v21 = vcombine.high %v644_v14, %v648_v15  ;;  %v6733_v48 = vcombine.high %v645_v16, %v649_v17  ;;  %v696_v6 = vld [vmem:[#allocation2 + $0x1330] sm:$0xff]  ;;  %v697_v8 = vld [vmem:[#allocation2 + $0x1338] sm:$0xff] }
 0x2ad   :  { %5079 = vmatpush1.bf16.msra.mxu0 %v6674_v27  ;;  %5325 = vmatpush1.bf16.msra.mxu1 %v6676_v58  ;;  %v6730_v27 = vcombine.low %v644_v14, %v648_v15  ;;  %v6732_v58 = vcombine.low %v645_v16, %v649_v17  ;;  %v700_v14 = vld [vmem:[#allocation2 + $0x1350] sm:$0xff]  ;;  %v701_v16 = vld [vmem:[#allocation2 + $0x1358] sm:$0xff] }
 0x2ae   :  { %5089 = vmatprep.subr.bf16.mxu0 %v6683_v29  ;;  %5335 = vmatprep.subr.bf16.mxu1 %v6685_v30  ;;  %v6739_v29 = vcombine.high %v652_v22, %v656_v24  ;;  %v6741_v30 = vcombine.high %v653_v25, %v657_v26  ;;  %v704_v15 = vld [vmem:[#allocation2 + $0x1370] sm:$0xff]  ;;  %v705_v17 = vld [vmem:[#allocation2 + $0x1378] sm:$0xff] }
 0x2b0   :  { %5081 = vmatmul.mubr.bf16.vlgmr.msra.gmra.mrb[4].mxu0 %v7515_v18  ;;  %5327 = vmatmul.mubr.bf16.vlgmr.msra.gmra.mrb[4].mxu1 %v7515_v18  ;;  %v6700_v18 = vcombine.low %v613_v39, %v617_v41  ;;  %v669_v39 = vld [vmem:[#allocation2 + $0x1258] sm:$0xff] }
 0x2b1   :  { %5090 = vmatpush1.bf16.msra.mxu0 %v6682_v9  ;;  %5336 = vmatpush1.bf16.msra.mxu1 %v6684_v35  ;;  %v6738_v9 = vcombine.low %v652_v22, %v656_v24  ;;  %v6740_v35 = vcombine.low %v653_v25, %v657_v26  ;;  %v673_v41 = vld [vmem:[#allocation2 + $0x1278] sm:$0xff]  ;;  %v708_v22 = vld [vmem:[#allocation2 + $0x1390] sm:$0xff] }
 0x2b2   :  { %5091 = vmatprep.subr.bf16.mxu0 %v6691_v36  ;;  %5337 = vmatprep.subr.bf16.mxu1 %v6693_v5  ;;  %v6747_v36 = vcombine.high %v660_v32, %v664_v59  ;;  %v6749_v5 = vcombine.high %v661_v33, %v665_v63  ;;  %v712_v24 = vld [vmem:[#allocation2 + $0x13b0] sm:$0xff]  ;;  %v709_v25 = vld [vmem:[#allocation2 + $0x1398] sm:$0xff] }
 0x2b3   :  { %5121 = vmatprep.mubr.bf16.mxu0 %v7518_v28  ;;  %5367 = vmatprep.mubr.bf16.mxu1 %v7518_v28  ;;  %v6717_v28 = vcombine.high %v629_v61, %v633_v34  ;;  %v685_v61 = vld [vmem:[#allocation2 + $0x12d8] sm:$0xff] }
 0x2b4   :  { %v689_v34 = vld [vmem:[#allocation2 + $0x12f8] sm:$0xff] }
 0x2b5   :  { %5092 = vmatpush1.bf16.msra.mxu0 %v6690_v42  ;;  %5338 = vmatpush1.bf16.msra.mxu1 %v6692_v44  ;;  %v6746_v42 = vcombine.low %v660_v32, %v664_v59  ;;  %v6748_v44 = vcombine.low %v661_v33, %v665_v63  ;;  %v713_v26 = vld [vmem:[#allocation2 + $0x13b8] sm:$0xff]  ;;  %v716_v32 = vld [vmem:[#allocation2 + $0x13d0] sm:$0xff] }
 0x2b6   :  { %5093 = vmatprep.subr.bf16.mxu0 %v6699_v45  ;;  %5339 = vmatprep.subr.bf16.mxu1 %v6701_v46  ;;  %v6755_v45 = vcombine.high %v668_v37, %v672_v38  ;;  %v6757_v46 = vcombine.high %v669_v39, %v673_v41  ;;  %v720_v59 = vld [vmem:[#allocation2 + $0x13f0] sm:$0xff]  ;;  %v717_v33 = vld [vmem:[#allocation2 + $0x13d8] sm:$0xff] }
 0x2b7   :  { %v721_v63 = vld [vmem:[#allocation2 + $0x13f8] sm:$0xff] }
 0x2b9   :  { %5094 = vmatpush1.bf16.msra.mxu0 %v6698_v52  ;;  %5340 = vmatpush1.bf16.msra.mxu1 %v6700_v18  ;;  %v6754_v52 = vcombine.low %v668_v37, %v672_v38  ;;  %v6756_v18 = vcombine.low %v669_v39, %v673_v41  ;;  %v724_v37 = vld [vmem:[#allocation2 + $0x1410] sm:$0xff]  ;;  %v725_v39 = vld [vmem:[#allocation2 + $0x1418] sm:$0xff] }
 0x2ba   :  { %5095 = vmatprep.subr.bf16.mxu0 %v6707_v54  ;;  %5341 = vmatprep.subr.bf16.mxu1 %v6709_v55  ;;  %v6763_v54 = vcombine.high %v676_v49, %v680_v50  ;;  %v6765_v55 = vcombine.high %v677_v51, %v681_v23  ;;  %v728_v38 = vld [vmem:[#allocation2 + $0x1430] sm:$0xff]  ;;  %v729_v41 = vld [vmem:[#allocation2 + $0x1438] sm:$0xff] }
 0x2bd   :  { %5096 = vmatpush1.bf16.msra.mxu0 %v6706_v0  ;;  %5342 = vmatpush1.bf16.msra.mxu1 %v6708_v2  ;;  %v6762_v0 = vcombine.low %v676_v49, %v680_v50  ;;  %v6764_v2 = vcombine.low %v677_v51, %v681_v23  ;;  %v732_v49 = vld [vmem:[#allocation2 + $0x1450] sm:$0xff]  ;;  %v733_v51 = vld [vmem:[#allocation2 + $0x1458] sm:$0xff] }
 0x2be   :  { %5097 = vmatprep.subr.bf16.mxu0 %v6715_v4  ;;  %5343 = vmatprep.subr.bf16.mxu1 %v6717_v28  ;;  %v6771_v4 = vcombine.high %v684_v57, %v688_v60  ;;  %v6773_v28 = vcombine.high %v685_v61, %v689_v34  ;;  %v736_v50 = vld [vmem:[#allocation2 + $0x1470] sm:$0xff]  ;;  %v737_v23 = vld [vmem:[#allocation2 + $0x1478] sm:$0xff] }
 0x2c1   :  { %5098 = vmatpush1.bf16.msra.mxu0 %v6714_v11  ;;  %5344 = vmatpush1.bf16.msra.mxu1 %v6716_v40  ;;  %v6770_v11 = vcombine.low %v684_v57, %v688_v60  ;;  %v6772_v40 = vcombine.low %v685_v61, %v689_v34  ;;  %v740_v57 = vld [vmem:[#allocation2 + $0x1490] sm:$0xff]  ;;  %v741_v61 = vld [vmem:[#allocation2 + $0x1498] sm:$0xff] }
 0x2c2   :  { %5099 = vmatprep.subr.bf16.mxu0 %v6723_v12  ;;  %5345 = vmatprep.subr.bf16.mxu1 %v6725_v13  ;;  %v6779_v12 = vcombine.high %v692_v31, %v696_v6  ;;  %v6781_v13 = vcombine.high %v693_v7, %v697_v8  ;;  %v744_v60 = vld [vmem:[#allocation2 + $0x14b0] sm:$0xff]  ;;  %v745_v34 = vld [vmem:[#allocation2 + $0x14b8] sm:$0xff] }
 0x2c5   :  { %5100 = vmatpush1.bf16.msra.mxu0 %v6722_v19  ;;  %5346 = vmatpush1.bf16.msra.mxu1 %v6724_v20  ;;  %v6778_v19 = vcombine.low %v692_v31, %v696_v6  ;;  %v6780_v20 = vcombine.low %v693_v7, %v697_v8  ;;  %v748_v31 = vld [vmem:[#allocation2 + $0x14d0] sm:$0xff]  ;;  %v749_v7 = vld [vmem:[#allocation2 + $0x14d8] sm:$0xff] }
 0x2c6   :  { %5101 = vmatprep.subr.bf16.mxu0 %v6731_v21  ;;  %5347 = vmatprep.subr.bf16.mxu1 %v6733_v48  ;;  %v6787_v21 = vcombine.high %v700_v14, %v704_v15  ;;  %v6789_v48 = vcombine.high %v701_v16, %v705_v17  ;;  %v752_v6 = vld [vmem:[#allocation2 + $0x14f0] sm:$0xff]  ;;  %v753_v8 = vld [vmem:[#allocation2 + $0x14f8] sm:$0xff] }
 0x2c9   :  { %5102 = vmatpush1.bf16.msra.mxu0 %v6730_v27  ;;  %5348 = vmatpush1.bf16.msra.mxu1 %v6732_v58  ;;  %v6786_v27 = vcombine.low %v700_v14, %v704_v15  ;;  %v6788_v58 = vcombine.low %v701_v16, %v705_v17  ;;  %v760_v14 = vld [vmem:[#allocation2 + $0x1530] sm:$0xff]  ;;  %v757_v15 = vld [vmem:[#allocation2 + $0x1518] sm:$0xff]  ;;  %v6834_v17 = vcombine.low %v748_v31, %v752_v6 }
 0x2ca   :  { %5103 = vmatprep.subr.bf16.mxu0 %v6739_v29  ;;  %5349 = vmatprep.subr.bf16.mxu1 %v6741_v30  ;;  %v6795_v29 = vcombine.high %v708_v22, %v712_v24  ;;  %v6797_v30 = vcombine.high %v709_v25, %v713_v26  ;;  %v761_v16 = vld [vmem:[#allocation2 + $0x1538] sm:$0xff] }
 0x2cd   :  { %5104 = vmatpush1.bf16.msra.mxu0 %v6738_v9  ;;  %5350 = vmatpush1.bf16.msra.mxu1 %v6740_v35  ;;  %v6794_v9 = vcombine.low %v708_v22, %v712_v24  ;;  %v6796_v35 = vcombine.low %v709_v25, %v713_v26  ;;  %v765_v22 = vld [vmem:[#allocation2 + $0x1558] sm:$0xff]  ;;  %v6844_v26 = vcombine.low %v757_v15, %v761_v16 }
 0x2ce   :  { %5105 = vmatprep.subr.bf16.mxu0 %v6747_v36  ;;  %5351 = vmatprep.subr.bf16.mxu1 %v6749_v5  ;;  %v6803_v36 = vcombine.high %v716_v32, %v720_v59  ;;  %v6805_v5 = vcombine.high %v717_v33, %v721_v63  ;;  %v769_v24 = vld [vmem:[#allocation2 + $0x1578] sm:$0xff] }
 0x2d1   :  { %5106 = vmatpush1.bf16.msra.mxu0 %v6746_v42  ;;  %5352 = vmatpush1.bf16.msra.mxu1 %v6748_v44  ;;  %v6802_v42 = vcombine.low %v716_v32, %v720_v59  ;;  %v6804_v44 = vcombine.low %v717_v33, %v721_v63  ;;  %v794_v32 = vsub.s32 1, %v7443_v43  ;;  %v773_v59 = vld [vmem:[#allocation2 + $0x1598] sm:$0xff]  ;;  %v7569_v63 = vld [vmem:[#allocation5] sm:$0xff] }
 0x2d2   :  { %5107 = vmatprep.subr.bf16.mxu0 %v6755_v45  ;;  %5353 = vmatprep.subr.bf16.mxu1 %v6757_v46  ;;  %v6811_v45 = vcombine.high %v724_v37, %v728_v38  ;;  %v6813_v46 = vcombine.high %v725_v39, %v729_v41  ;;  %v777_v33 = vld [vmem:[#allocation2 + $0x15b8] sm:$0xff] }
 0x2d5   :  { %5108 = vmatpush1.bf16.msra.mxu0 %v6754_v52  ;;  %5354 = vmatpush1.bf16.msra.mxu1 %v6756_v18  ;;  %v6810_v52 = vcombine.low %v724_v37, %v728_v38  ;;  %v6812_v18 = vcombine.low %v725_v39, %v729_v41  ;;  %v6861_v37 = vcombine.high %v773_v59, %v777_v33  ;;  %v780_v38 = vld [vmem:[#allocation2 + $0x15d0] sm:$0xff] }
 0x2d6   :  { %5109 = vmatprep.subr.bf16.mxu0 %v6763_v54  ;;  %5355 = vmatprep.subr.bf16.mxu1 %v6765_v55  ;;  %v6819_v54 = vcombine.high %v732_v49, %v736_v50  ;;  %v6821_v55 = vcombine.high %v733_v51, %v737_v23  ;;  %v784_v39 = vld [vmem:[#allocation2 + $0x15f0] sm:$0xff]  ;;  %v795_v41 = vrot.slane %v7569_v63, %v794_v32 }
 0x2d9   :  { %5110 = vmatpush1.bf16.msra.mxu0 %v6762_v0  ;;  %5356 = vmatpush1.bf16.msra.mxu1 %v6764_v2  ;;  %v6818_v0 = vcombine.low %v732_v49, %v736_v50  ;;  %v6820_v2 = vcombine.low %v733_v51, %v737_v23  ;;  %v6860_v49 = vcombine.low %v773_v59, %v777_v33  ;;  %v7152_v59 = vld [vmem:[%s7814_s3 + $0xf8] sm:$0xff]  }
 0x2da   :  { %5111 = vmatprep.subr.bf16.mxu0 %v6771_v4  ;;  %5357 = vmatprep.subr.bf16.mxu1 %v6773_v28  ;;  %v6827_v4 = vcombine.high %v740_v57, %v744_v60  ;;  %v6829_v28 = vcombine.high %v741_v61, %v745_v34  ;;  %v6867_v50 = vcombine.high %v780_v38, %v784_v39 }
 0x2db   :  { %v7025_v23 = vadd.f32 %v7556_v10, %v795_v41  ;;  %v7125_v10 = vld [vmem:[%s7814_s3] sm:$0xff]  }
 0x2dd   :  { %5112 = vmatpush1.bf16.msra.mxu0 %v6770_v11  ;;  %5358 = vmatpush1.bf16.msra.mxu1 %v6772_v40  ;;  %v6826_v11 = vcombine.low %v740_v57, %v744_v60  ;;  %v6835_v40 = vcombine.high %v748_v31, %v752_v6  ;;  %v7124_v57 = vld [vmem:[%s7814_s3 + $0xc0] sm:$0xff]   ;;  %v5418_v60 = vmax.f32 %v7025_v23, 0.0  ;;  %v7130_v31 = vld [vmem:[%s7814_s3 + $0x88] sm:$0xff]   ;;  %v7131_v6 = vld [vmem:[%s7814_s3 + $0x50] sm:$0xff]  }
 0x2de   :  { %5113 = vmatprep.subr.bf16.mxu0 %v6779_v12  ;;  %5359 = vmatprep.subr.bf16.mxu1 %v6781_v13  ;;  %v6837_v12 = vcombine.high %v749_v7, %v753_v8  ;;  %v756_v13 = vld [vmem:[#allocation2 + $0x1510] sm:$0xff]  ;;  %v7167_v23 = vld [vmem:[%s7816_s5 + $0x58] sm:$0xff]  }
 0x2df   :  { %v6842_v25 = vcombine.low %v756_v13, %v760_v14 }
 0x2e1   :  { %5114 = vmatpush1.bf16.msra.mxu0 %v6778_v19  ;;  %5360 = vmatpush1.bf16.msra.mxu1 %v6780_v20  ;;  %v6836_v19 = vcombine.low %v749_v7, %v753_v8  ;;  %v6843_v20 = vcombine.high %v756_v13, %v760_v14  ;;  %v7133_v7 = vld [vmem:[%s7814_s3 + $0x10] sm:$0xff]   ;;  %v7139_v13 = vld [vmem:[%s7814_s3 + $0x60] sm:$0xff]  }
 0x2e2   :  { %5115 = vmatprep.subr.bf16.mxu0 %v6787_v21  ;;  %5361 = vmatprep.subr.bf16.mxu1 %v6789_v48  ;;  %v764_v21 = vld [vmem:[#allocation2 + $0x1550] sm:$0xff]  ;;  %v7140_v14 = vld [vmem:[%s7814_s3 + $0xe0] sm:$0xff]  }
 0x2e3   :  { %v768_v48 = vld [vmem:[#allocation2 + $0x1570] sm:$0xff] }
 0x2e4   :  { %v7134_v8 = vld [vmem:[%s7814_s3 + $0x90] sm:$0xff]  }
 0x2e5   :  { %5116 = vmatpush1.bf16.msra.mxu0 %v6786_v27  ;;  %5362 = vmatpush1.bf16.msra.mxu1 %v6788_v58  ;;  %v6851_v27 = vcombine.high %v764_v21, %v768_v48  ;;  %v6853_v58 = vcombine.high %v765_v22, %v769_v24 }
 0x2e6   :  { %5117 = vmatprep.subr.bf16.mxu0 %v6795_v29  ;;  %5363 = vmatprep.subr.bf16.mxu1 %v6797_v30  ;;  %v772_v29 = vld [vmem:[#allocation2 + $0x1590] sm:$0xff] }
 0x2e7   :  { %v776_v30 = vld [vmem:[#allocation2 + $0x15b0] sm:$0xff] }
 0x2e9   :  { %5118 = vmatpush1.bf16.msra.mxu0 %v6794_v9  ;;  %5364 = vmatpush1.bf16.msra.mxu1 %v6796_v35  ;;  %v802_v9 = vsub.s32 3, %v7443_v43  ;;  %v6850_v35 = vcombine.low %v764_v21, %v768_v48  ;;  %v7145_v21 = vld [vmem:[%s7814_s3 + $0x28] sm:$0xff]  }
 0x2ea   :  { %5119 = vmatprep.subr.bf16.mxu0 %v6803_v36  ;;  %5365 = vmatprep.subr.bf16.mxu1 %v6805_v5  ;;  %v6852_v36 = vcombine.low %v765_v22, %v769_v24  ;;  %v6859_v5 = vcombine.high %v772_v29, %v776_v30  ;;  %v7146_v22 = vld [vmem:[%s7814_s3 + $0xa8] sm:$0xff]   ;;  %v7147_v24 = vld [vmem:[%s7814_s3 + $0x70] sm:$0xff]  }
 0x2ed   :  { %5120 = vmatpush1.bf16.msra.mxu0 %v6802_v42  ;;  %5366 = vmatpush1.bf16.msra.mxu1 %v6804_v44  ;;  %v781_v42 = vld [vmem:[#allocation2 + $0x15d8] sm:$0xff] }
 0x2ee   :  { %5130 = vmatprep.subr.bf16.mxu0 %v6811_v45  ;;  %5376 = vmatprep.subr.bf16.mxu1 %v6813_v46  ;;  %v785_v44 = vld [vmem:[#allocation2 + $0x15f8] sm:$0xff]  ;;  %v803_v45 = vrot.slane %v7569_v63, %v802_v9  ;;  %v6858_v46 = vcombine.low %v772_v29, %v776_v30  ;;  %v7150_v29 = vld [vmem:[%s7814_s3 + $0xb0] sm:$0xff]  }
 0x2ef   :  { %v6869_v51 = vcombine.high %v781_v42, %v785_v44  ;;  %v7151_v30 = vld [vmem:[%s7814_s3 + $0x78] sm:$0xff]  }
 0x2f0   :  { %5122 = vmatmul.mubr.bf16.vlgmr.msra.gmra.mrb[4].mxu0 %v7526_v47  ;;  %5368 = vmatmul.mubr.bf16.vlgmr.msra.gmra.mrb[4].mxu1 %v7526_v47  ;;  %v6828_v47 = vcombine.low %v741_v61, %v745_v34  ;;  %v7127_v34 = vld [vmem:[%s7814_s3 + $0x48] sm:$0xff]   ;;  %v7154_v9 = vld [vmem:[%s7814_s3 + $0xb8] sm:$0xff]  }
 0x2f1   :  { %5131 = vmatpush1.bf16.msra.mxu0 %v6810_v52  ;;  %5377 = vmatpush1.bf16.msra.mxu1 %v6812_v18  ;;  %v7027_v52 = vadd.f32 %v7558_v1, %v803_v45  ;;  %v6866_v18 = vcombine.low %v780_v38, %v784_v39  ;;  %v7126_v1 = vld [vmem:[%s7814_s3 + $0x80] sm:$0xff]   ;;  %v7159_v39 = vld [vmem:[%s7816_s5 + $0x48] sm:$0xff]  }
 0x2f2   :  { %5132 = vmatprep.subr.bf16.mxu0 %v6819_v54  ;;  %5378 = vmatprep.subr.bf16.mxu1 %v6821_v55  ;;  %v6868_v54 = vcombine.low %v781_v42, %v785_v44  ;;  %v7123_v55 = vld [vmem:[%s7814_s3 + $0x40] sm:$0xff]   ;;  %v7160_v42 = vld [vmem:[%s7816_s5 + $0xc8] sm:$0xff]  }
 0x2f3   :  { %5162 = vmatprep.mubr.bf16.mxu0 %v7340_v3  ;;  %5408 = vmatprep.mubr.bf16.mxu1 %v7340_v3  ;;  %v6845_v3 = vcombine.high %v757_v15, %v761_v16  ;;  %v5420_v61 = vmax.f32 %v7027_v52, 0.0  ;;  %v7141_v15 = vld [vmem:[%s7814_s3 + $0x20] sm:$0xff]   ;;  %v790_v16 = vsub.s32 0, %v7443_v43  ;;  %v7161_v44 = vld [vmem:[%s7816_s5 + $0x8] sm:$0xff]   ;;  %v7168_v52 = vld [vmem:[%s7816_s5 + $0xd8] sm:$0xff]  }
 0x2f4   :  { %v7158_v38 = vld [vmem:[%s7816_s5 + $0x80] sm:$0xff]   ;;  %v7162_v45 = vld [vmem:[%s7816_s5 + $0x88] sm:$0xff]  }
 0x2f5   :  { %5133 = vmatpush1.bf16.msra.mxu0 %v6818_v0  ;;  %5379 = vmatpush1.bf16.msra.mxu1 %v6820_v2  ;;  %v5426_v0 = vpack.c.bf16 %v5418_v60, %v5418_v60  ;;  %v7128_v2 = vld [vmem:[%s7814_s3 + $0xc8] sm:$0xff]   ;;  %v791_v48 = vrot.slane %v7569_v63, %v790_v16  ;;  %v7173_v60 = vld [vmem:[%s7816_s5 + $0x20] sm:$0xff]  }
 0x2f6   :  { %5134 = vmatprep.subr.bf16.mxu0 %v6827_v4  ;;  %5380 = vmatprep.subr.bf16.mxu1 %v6829_v28  ;;  %v5428_v4 = vpack.c.bf16 %v5420_v61, %v5420_v61  ;;  %v7129_v28 = vld [vmem:[%s7814_s3 + $0x8] sm:$0xff]   ;;  %v7174_v61 = vld [vmem:[%s7816_s5 + $0xa0] sm:$0xff]  }
 0x2f9   :  { %5135 = vmatpush1.bf16.msra.mxu0 %v6826_v11  ;;  %5381 = vmatpush1.bf16.msra.mxu1 %v6828_v47  ;;  %v7135_v11 = vld [vmem:[%s7814_s3 + $0x58] sm:$0xff]  }
 0x2fa   :  { %5136 = vmatprep.subr.bf16.mxu0 %v6835_v40  ;;  %5382 = vmatprep.subr.bf16.mxu1 %v6837_v12  ;;  %v7136_v47 = vld [vmem:[%s7814_s3 + $0xd8] sm:$0xff]  }
 0x2fb   :  { %v7137_v40 = vld [vmem:[%s7814_s3 + $0x18] sm:$0xff]  }
 0x2fc   :  { %v7138_v12 = vld [vmem:[%s7814_s3 + $0x98] sm:$0xff]  }
 0x2fd   :  { %5137 = vmatpush1.bf16.msra.mxu0 %v6834_v17  ;;  %5383 = vmatpush1.bf16.msra.mxu1 %v6836_v19  ;;  %v7142_v17 = vld [vmem:[%s7814_s3 + $0xa0] sm:$0xff]   ;;  %v7143_v19 = vld [vmem:[%s7814_s3 + $0x68] sm:$0xff]  }
 0x2fe   :  { %5138 = vmatprep.subr.bf16.mxu0 %v6843_v20  ;;  %5384 = vmatprep.subr.bf16.mxu1 %v6845_v3  ;;  %v798_v20 = vsub.s32 2, %v7443_v43  ;;  %v7144_v3 = vld [vmem:[%s7814_s3 + $0xe8] sm:$0xff]  }
 0x301   :  { %5139 = vmatpush1.bf16.msra.mxu0 %v6842_v25  ;;  %5385 = vmatpush1.bf16.msra.mxu1 %v6844_v26  ;;  %v799_v25 = vrot.slane %v7569_v63, %v798_v20  ;;  %v7148_v26 = vld [vmem:[%s7814_s3 + $0xf0] sm:$0xff]  }
 0x302   :  { %5140 = vmatprep.subr.bf16.mxu0 %v6851_v27  ;;  %5386 = vmatprep.subr.bf16.mxu1 %v6853_v58  ;;  %v7149_v27 = vld [vmem:[%s7814_s3 + $0x30] sm:$0xff]   ;;  %v7024_v58 = vadd.f32 %v7552_v56, %v791_v48  ;;  %v7153_v56 = vld [vmem:[%s7814_s3 + $0x38] sm:$0xff]  }
 0x303   :  { %v7026_v32 = vadd.f32 %v7554_v53, %v799_v25  ;;  %v7155_v53 = vld [vmem:[%s7816_s5 + $0x40] sm:$0xff]  }
 0x304   :  { %v5417_v33 = vmax.f32 %v7024_v58, 0.0 }
 0x305   :  { %5141 = vmatpush1.bf16.msra.mxu0 %v6850_v35  ;;  %5387 = vmatpush1.bf16.msra.mxu1 %v6852_v36  ;;  %v5419_v35 = vmax.f32 %v7026_v32, 0.0  ;;  %v7156_v36 = vld [vmem:[%s7816_s5 + $0xc0] sm:$0xff]  }
 0x306   :  { %5142 = vmatprep.subr.bf16.mxu0 %v6859_v5  ;;  %5388 = vmatprep.subr.bf16.mxu1 %v6861_v37  ;;  %v7157_v5 = vld [vmem:[%s7816_s5] sm:$0xff]   ;;  %v5425_v37 = vpack.c.bf16 %v5417_v33, %v5417_v33 }
 0x307   :  { %v5427_v41 = vpack.c.bf16 %v5419_v35, %v5419_v35  ;;  %v6870_v35 = vld [vmem:[#allocation7] ss:$0 sm:$0xff] }
 0x309   :  { %5143 = vmatpush1.bf16.msra.mxu0 %v6858_v46  ;;  %5389 = vmatpush1.bf16.msra.mxu1 %v6860_v49  ;;  %v7163_v46 = vld [vmem:[%s7816_s5 + $0x50] sm:$0xff]  }
 0x30a   :  { %5144 = vmatprep.subr.bf16.mxu0 %v6867_v50  ;;  %5390 = vmatprep.subr.bf16.mxu1 %v6869_v51  ;;  %v7164_v49 = vld [vmem:[%s7816_s5 + $0xd0] sm:$0xff]  }
 0x30b   :  { %v7165_v50 = vld [vmem:[%s7816_s5 + $0x10] sm:$0xff]  }
 0x30c   :  { %v7166_v51 = vld [vmem:[%s7816_s5 + $0x90] sm:$0xff]  }
 0x30d   :  { %5145 = vmatpush1.bf16.msra.mxu0 %v6866_v18  ;;  %5391 = vmatpush1.bf16.msra.mxu1 %v6868_v54  ;;  %v7169_v18 = vld [vmem:[%s7816_s5 + $0x18] sm:$0xff]  }
 0x30e   :  { %6936 = vmatprep.subr.bf16.mxu0 %v7123_v55  ;;  %6958 = vmatprep.subr.bf16.mxu1 %v7124_v57  ;;  %v7170_v54 = vld [vmem:[%s7816_s5 + $0x98] sm:$0xff]   ;;  %v7171_v55 = vld [vmem:[%s7816_s5 + $0x60] sm:$0xff]  }
 0x30f   :  { %v7172_v57 = vld [vmem:[%s7816_s5 + $0xe0] sm:$0xff]  }
 0x310   :  { %5163 = vmatmul.mubr.bf16.vlgmr.msra.gmra.mrb[4].mxu0 %v7534_v62  ;;  %5409 = vmatmul.mubr.bf16.vlgmr.msra.gmra.mrb[4].mxu1 %v7534_v62  ;;  %v7132_v62 = vld [vmem:[%s7814_s3 + $0xd0] sm:$0xff]  }
 0x311   :  { %6937 = vmatpush3.bf16.msra.mxu0 %v7125_v10  ;;  %5728 = vmatprep.mubr.bf16.mxu0 %v5426_v0  ;;  %v7175_v10 = vld [vmem:[%s7816_s5 + $0x68] sm:$0xff]  }
 0x312   :  { %6959 = vmatpush3.bf16.msra.mxu1 %v7126_v1  ;;  %5768 = vmatprep.mubr.bf16.mxu1 %v5428_v4  ;;  %v7176_v1 = vld [vmem:[%s7816_s5 + $0xe8] sm:$0xff]   ;;  %v7180_v4 = vld [vmem:[%s7816_s5 + $0xf0] sm:$0xff]  }
 0x313   :  { %6938 = vmatprep.subr.bf16.mxu0 %v7127_v34  ;;  %6960 = vmatprep.subr.bf16.mxu1 %v7128_v2  ;;  %v7177_v34 = vld [vmem:[%s7816_s5 + $0x28] sm:$0xff]   ;;  %v7179_v2 = vld [vmem:[%s7816_s5 + $0x70] sm:$0xff]  }
 0x314   :  { %v7178_v0 = vld [vmem:[%s7816_s5 + $0xa8] sm:$0xff]  }
 0x315   :  { %6939 = vmatpush3.bf16.msra.mxu0 %v7129_v28  ;;  %v7181_v28 = vld [vmem:[%s7816_s5 + $0x30] sm:$0xff]  }
 0x316   :  { %6961 = vmatpush3.bf16.msra.mxu1 %v7130_v31  ;;  %6940 = vmatprep.subr.bf16.mxu0 %v7131_v6  ;;  %v7182_v31 = vld [vmem:[%s7816_s5 + $0xb0] sm:$0xff]   ;;  %v7183_v6 = vld [vmem:[%s7816_s5 + $0x78] sm:$0xff]  }
 0x317   :  { %6962 = vmatprep.subr.bf16.mxu1 %v7132_v62  ;;  %v7184_v62 = vld [vmem:[%s7816_s5 + $0xf8] sm:$0xff]  }
 0x319   :  { %6941 = vmatpush3.bf16.msra.mxu0 %v7133_v7  ;;  %v7185_v7 = vld [vmem:[%s7816_s5 + $0x38] sm:$0xff]  }
 0x31a   :  { %6963 = vmatpush3.bf16.msra.mxu1 %v7134_v8  ;;  %6942 = vmatprep.subr.bf16.mxu0 %v7135_v11  ;;  %v7186_v8 = vld [vmem:[%s7816_s5 + $0xb8] sm:$0xff]   ;;  %v806_v11 = vsub.s32 4, %v7443_v43  ;;  %s7341_s5 = smov [#allocation10]  }
 0x31b   :  { %6964 = vmatprep.subr.bf16.mxu1 %v7136_v47  ;;  %v814_v47 = vsub.s32 6, %v7443_v43  ;;  %s6140_s2 = sshll.u32 %s7341_s5, 4  ;;  %s6141_s2 = int_to_ptr.vmem [resolvable:$true] %s6140_s2 }
 0x31c   :  { %s7279_s27 = scalar_lea.vmem %s6141_s2, 32  ;;  %p7284_p5 = scmp.lt.s32.totalorder %s6141_s2, %s6141_s2 }
 0x31d   :  { %6943 = vmatpush3.bf16.msra.mxu0 %v7137_v40  ;;  %v810_v40 = vsub.s32 5, %v7443_v43  ;;  %p7280_p4 = scmp.ne.s32.totalorder %s6141_s2, %s7279_s27  ;;  %p7285_p6 = scmp.lt.s32.totalorder %s7279_s27, %s7279_s27 }
 0x31e   :  { %6965 = vmatpush3.bf16.msra.mxu1 %v7138_v12  ;;  %6944 = vmatprep.subr.bf16.mxu0 %v7139_v13  ;;  %v818_v12 = vsub.s32 7, %v7443_v43  ;;  %v807_v13 = vrot.slane %v7569_v63, %v806_v11 }
 0x31f   :  { %6966 = vmatprep.subr.bf16.mxu1 %v7140_v14  ;;  %v815_v14 = vrot.slane %v7569_v63, %v814_v47  ;;  %p7286_p7 = por %p7285_p6, %p7284_p5 }
 0x320   :  { %v819_v16 = vrot.slane %v7569_v63, %v818_v12 }
 0x321   :  { %6945 = vmatpush3.bf16.msra.mxu0 %v7141_v15  ;;  %v811_v15 = vrot.slane %v7569_v63, %v810_v40  ;;  %p7287_p8 = pnand %p7286_p7, %p7280_p4 }
 0x322   :  { %6967 = vmatpush3.bf16.msra.mxu1 %v7142_v17  ;;  %6946 = vmatprep.subr.bf16.mxu0 %v7143_v19 }
 0x323   :  { %6968 = vmatprep.subr.bf16.mxu1 %v7144_v3 }
 0x325   :  { %6947 = vmatpush3.bf16.msra.mxu0 %v7145_v21 }
 0x326   :  { %6969 = vmatpush3.bf16.msra.mxu1 %v7146_v22  ;;  %6948 = vmatprep.subr.bf16.mxu0 %v7147_v24 }
 0x327   :  { %6970 = vmatprep.subr.bf16.mxu1 %v7148_v26 }
 0x329   :  { %6949 = vmatpush3.bf16.msra.mxu0 %v7149_v27 }
 0x32a   :  { %6971 = vmatpush3.bf16.msra.mxu1 %v7150_v29  ;;  %6950 = vmatprep.subr.bf16.mxu0 %v7151_v30 }
 0x32b   :  { %6972 = vmatprep.subr.bf16.mxu1 %v7152_v59 }
 0x32d   :  { %6951 = vmatpush3.bf16.msra.mxu0 %v7153_v56 }
 0x32e   :  { %6973 = vmatpush3.bf16.msra.mxu1 %v7154_v9  ;;  %6980 = vmatprep.subr.bf16.mxu0 %v7155_v53 }
 0x32f   :  { %7002 = vmatprep.subr.bf16.mxu1 %v7156_v36 }
 0x330   :  { %5729 = vmatmul.mubr.bf16.vlgmr.msra.gmra.mrb[8].mxu0 %v5425_v37 }
 0x331   :  { %5769 = vmatmul.mubr.bf16.vlgmr.msra.gmra.mrb[8].mxu1 %v5427_v41  ;;  %6981 = vmatpush3.bf16.msra.mxu0 %v7157_v5 }
 0x332   :  { %7003 = vmatpush3.bf16.msra.mxu1 %v7158_v38  ;;  %6982 = vmatprep.subr.bf16.mxu0 %v7159_v39 }
 0x333   :  { %7004 = vmatprep.subr.bf16.mxu1 %v7160_v42 }
 0x335   :  { %6983 = vmatpush3.bf16.msra.mxu0 %v7161_v44 }
 0x336   :  { %7005 = vmatpush3.bf16.msra.mxu1 %v7162_v45  ;;  %6984 = vmatprep.subr.bf16.mxu0 %v7163_v46 }
 0x337   :  { %7006 = vmatprep.subr.bf16.mxu1 %v7164_v49 }
 0x339   :  { %6985 = vmatpush3.bf16.msra.mxu0 %v7165_v50 }
 0x33a   :  { %7007 = vmatpush3.bf16.msra.mxu1 %v7166_v51  ;;  %6986 = vmatprep.subr.bf16.mxu0 %v7167_v23  ;;  %v6903_v51 = vld [vmem:[#allocation8] ss:$0 sm:$0xff] }
 0x33b   :  { %7008 = vmatprep.subr.bf16.mxu1 %v7168_v52 }
 0x33d   :  { %6987 = vmatpush3.bf16.msra.mxu0 %v7169_v18 }
 0x33e   :  { %7009 = vmatpush3.bf16.msra.mxu1 %v7170_v54  ;;  %6988 = vmatprep.subr.bf16.mxu0 %v7171_v55 }
 0x33f   :  { %7010 = vmatprep.subr.bf16.mxu1 %v7172_v57 }
 0x341   :  { %6989 = vmatpush3.bf16.msra.mxu0 %v7173_v60 }
 0x342   :  { %7011 = vmatpush3.bf16.msra.mxu1 %v7174_v61  ;;  %6990 = vmatprep.subr.bf16.mxu0 %v7175_v10 }
 0x343   :  { %7012 = vmatprep.subr.bf16.mxu1 %v7176_v1 }
 0x345   :  { %6991 = vmatpush3.bf16.msra.mxu0 %v7177_v34 }
 0x346   :  { %7013 = vmatpush3.bf16.msra.mxu1 %v7178_v0  ;;  %6992 = vmatprep.subr.bf16.mxu0 %v7179_v2 }
 0x347   :  { %7014 = vmatprep.subr.bf16.mxu1 %v7180_v4 }
 0x349   :  { %6993 = vmatpush3.bf16.msra.mxu0 %v7181_v28 }
 0x34a   :  { %7015 = vmatpush3.bf16.msra.mxu1 %v7182_v31  ;;  %6994 = vmatprep.subr.bf16.mxu0 %v7183_v6 }
 0x34b   :  { %7016 = vmatprep.subr.bf16.mxu1 %v7184_v62 }
 0x34d   :  { %6995 = vmatpush3.bf16.msra.mxu0 %v7185_v7 }
 0x34e   :  { %7017 = vmatpush3.bf16.msra.mxu1 %v7186_v8 }
 0x3e3   :  { %v5164_v17 = vpop.f32.mrb[4].mxu0  ;;  %v5410_v20 = vpop.f32.mrb[4].mxu1 }
 0x3e4   :  { %v7028_v19 = vadd.f32 %v5164_v17, %v807_v13  ;;  %v5166_v3 = vpop.f32.mrb[5].mxu0  ;;  %v7030_v21 = vadd.f32 %v5410_v20, %v815_v14  ;;  %v5412_v22 = vpop.f32.mrb[5].mxu1 }
 0x3e5   :  { %v7029_v48 = vadd.f32 %v5166_v3, %v811_v15  ;;  %v5168_v24 = vpop.f32.mrb[6].mxu0  ;;  %v7031_v26 = vadd.f32 %v5412_v22, %v819_v16  ;;  %v5414_v27 = vpop.f32.mrb[6].mxu1 }
 0x3e6   :  { %v5421_v25 = vmax.f32 %v7028_v19, 0.0  ;;  %v5169_v43 = vpop.f32.mrb[7].mxu0  ;;  %v5423_v58 = vmax.f32 %v7030_v21, 0.0  ;;  %v5415_v30 = vpop.f32.mrb[7].mxu1 }
 0x3e7   :  { %v5422_v29 = vmax.f32 %v7029_v48, 0.0  ;;  %v5424_v32 = vmax.f32 %v7031_v26, 0.0 }
 0x3e8   :  { %v5429_v56 = vpack.c.bf16 %v5421_v25, %v5421_v25  ;;  %v5431_v63 = vpack.c.bf16 %v5423_v58, %v5423_v58 }
 0x3e9   :  { %v5430_v59 = vpack.c.bf16 %v5422_v29, %v5422_v29  ;;  %v5432_v33 = vpack.c.bf16 %v5424_v32, %v5424_v32 }
 0x3eb   :  { %6073 = vmatprep.mubr.bf16.mxu0 %v5430_v59  ;;  %6113 = vmatprep.mubr.bf16.mxu1 %v5432_v33 }
 0x3ec   :  { %6074 = vmatmul.mubr.bf16.vlgmr.msra.gmra.mrb[12].mxu0 %v5429_v56  ;;  %6114 = vmatmul.mubr.bf16.vlgmr.msra.gmra.mrb[12].mxu1 %v5431_v63 }
 0x403   :  { %v6952_v9 = vpop.f32.mrb[8].mxu0 }
 0x404   :  { %v6974_v53 = vpop.f32.mrb[8].mxu1  ;;  %v6953_v36 = vpop.f32.mrb[9].mxu0 }
 0x405   :  { %v6954_v5 = vadd.f32 %v6953_v36, %v6952_v9  ;;  %v6975_v37 = vpop.f32.mrb[9].mxu1  ;;  %v6955_v38 = vpop.f32.mrb[10].mxu0 }
 0x406   :  { %v6976_v39 = vadd.f32 %v6975_v37, %v6974_v53  ;;  %v6977_v41 = vpop.f32.mrb[10].mxu1  ;;  %v6956_v42 = vpop.f32.mrb[11].mxu0 }
 0x407   :  { %v5731_v44 = vadd.f32 %v6954_v5, %v6870_v35  ;;  %v6978_v45 = vpop.f32.mrb[11].mxu1 }
 0x409   :  { %v5771_v46 = vadd.f32 %v6976_v39, %v5731_v44 }
 0x40b   :  { %5777 = vst.msk [vmem:[#allocation10] sm:$0x3] %vm5776_vm0, %v5771_v46 }
 0x4bf   :  { %v6996_v49 = vpop.f32.mrb[12].mxu0  ;;  %v7018_v50 = vpop.f32.mrb[12].mxu1 }
 0x4c0   :  { %v6997_v23 = vpop.f32.mrb[13].mxu0  ;;  %v7019_v18 = vpop.f32.mrb[13].mxu1 }
 0x4c1   :  { %v6998_v52 = vadd.f32 %v6997_v23, %v6996_v49  ;;  %v6999_v54 = vpop.f32.mrb[14].mxu0  ;;  %v7020_v55 = vadd.f32 %v7019_v18, %v7018_v50  ;;  %v7021_v57 = vpop.f32.mrb[14].mxu1 }
 0x4c2   :  { %v7000_v60 = vpop.f32.mrb[15].mxu0  ;;  %v7022_v10 = vpop.f32.mrb[15].mxu1 }
 0x4c3   :  { %v6076_v61 = vadd.f32 %v6998_v52, %v6903_v51 }
 0x4c5   :  { %v6116_v1 = vadd.f32 %v7020_v55, %v6076_v61 }
 0x4c7   :  { %v6122_v34 = vsel %vm6121_vm1, %v6116_v1, -inf }
 0x4c8   :  { %6123 = vmax.xlane.f32.xlu0 %v6122_v34 }
 0x555   :  { %v6124_v0 = vpop.xlane.xlu0 %6123 }
 0x556   :  { %v6125_v2 = vsub.f32 %v6116_v1, %v6124_v0 }
 0x558   :  { %v6126_v4 = vmul.f32 1.442695, %v6125_v2 }
 0x55a   :  { %7187 = vpow2.f32 %v6126_v4 }
 0x564   :  { %v7188_v28 = vpop.eup %7187 }
 0x565   :  { %v6128_v31 = vsel %vm6121_vm1, %v7188_v28, 0.0 }
 0x566   :  { %6129 = vadd.xlane.f32.xlu0 %v6128_v31 }
 0x567   :  { %7290 = shalt.err (!%p7287_p8)
}
 0x568   :  { %s7291_s4 = scalar_lea.hbm %s7818_s7, 32 }
 0x569   :  { %p7292_p9 = scmp.ne.s32.totalorder %s7818_s7, %s7291_s4  ;;  %p7295_p10 = scmp.lt.u32.totalorder %s7291_s4, %s7818_s7 }
 0x56b   :  { %p7297_p11 = pnand %p7295_p10, %p7292_p9 }
 0x56d   :  { %7300 = shalt.err (!%p7297_p11)
}
 0x56e   :  { %6143 = dma.vmem_to_hbm [thread:$0]  %s6141_s2, 32, %s7818_s7, [#allocation4]  }
 0x56f   :  { %s7342_s13 = smov [#allocation11]  }
 0x570   :  { %s6150_s14 = sshll.u32 %s7342_s13, 4  ;;  %s6151_s14 = int_to_ptr.vmem [resolvable:$true] %s6150_s14 }
 0x571   :  { %s7301_s15 = scalar_lea.vmem %s6151_s14, 32  ;;  %p7306_p13 = scmp.lt.s32.totalorder %s6151_s14, %s6151_s14 }
 0x572   :  { %p7302_p12 = scmp.ne.s32.totalorder %s6151_s14, %s7301_s15  ;;  %p7307_p0 = scmp.lt.s32.totalorder %s7301_s15, %s7301_s15 }
 0x574   :  { %p7308_p1 = por %p7307_p0, %p7306_p13 }
 0x576   :  { %p7309_p2 = pnand %p7308_p1, %p7302_p12 }
 0x5f3   :  { %v6130_v6 = vpop.xlane.xlu0 %6129 }
 0x5f4   :  { %7189 = vrcp.f32 %v6130_v6 }
 0x5fe   :  { %v7190_v62 = vpop.eup %7189 }
 0x5ff   :  { %v6132_v7 = vmul.f32 %v7190_v62, %v7188_v28 }
 0x601   :  { %6133 = vst.msk [vmem:[#allocation11] sm:$0x3] %vm6121_vm1, %v6132_v7 }
 0x602   :  { %7312 = shalt.err (!%p7309_p2)
}
 0x603   :  { %s7313_s7 = scalar_lea.hbm %s7819_s8, 32 }
 0x604   :  { %p7314_p3 = scmp.ne.s32.totalorder %s7819_s8, %s7313_s7  ;;  %p7317_p4 = scmp.lt.u32.totalorder %s7313_s7, %s7819_s8 }
 0x606   :  { %p7319_p5 = pnand %p7317_p4, %p7314_p3 }
 0x608   :  { %7322 = shalt.err (!%p7319_p5)
}
 0x609   :  { %6153 = dma.vmem_to_hbm [thread:$0]  %s6151_s14, 32, %s7819_s8, [#allocation12]  }
 0x60a   :  { %7329 = dma.done.wait [#allocation4], 32  }
 0x60b   :  { %7330 = vsyncadd [#allocation4], 4294967264 }
 0x60c   :  { %7331 = dma.done.wait [#allocation12], 32  }
 0x60d   :  { %7332 = vsyncadd [#allocation12], 4294967264 }
 0x60e   :  { %6160 = vsyncpa [#allocation3], 1 }
 0x60f   :  { %6161 = vsyncpa [#allocation6], 1 }
 0x610   :  { %6162 = vsyncpa [#allocation9], 1 }
 0x611   :  { %6163 = vsyncpa [#allocation4], 1 }
 0x612   :  { %6164 = vsyncpa [#allocation12], 1 }

</bundles_post_ra>
